<compile_context>
chip_gen: v5e
topology: v5e:2x2
jax: 0.10.0
libtpu: 0.0.40
codegen_flags: <defaults>
</compile_context>

<pallas_src>
import jax
import jax.numpy as jnp
from jax import lax
from jax.experimental import pallas as pl
from jax.experimental.pallas import tpu as pltpu

EPS = 1e-5
RENORM_MAX = 1.0 - EPS


# ---------------------------------------------------------------------------
# Hyperbolic math helpers (traced inside the fused kernel).
# ---------------------------------------------------------------------------
def _sq_norm(x):
    # one XLU cross-lane reduce per call -> call sparingly, thread results.
    return jnp.sum(x * x, axis=1, keepdims=True)


def _renorm_scale(norm, maxnorm=RENORM_MAX):
    # torch.renorm(x, 2, 0, maxnorm): per-row scale factor.
    return jnp.where(
        norm > maxnorm, maxnorm * pl.reciprocal(norm + 1e-7, approx=True), 1.0
    )


def _log_map_zero(v, sq_v):
    # reference: diff = v+eps; norm = ||v||; atanh = min(norm, 1-eps);
    #            out = 1/atanh/norm * diff      (yes, the ref clamps, not atanh)
    norm = jnp.sqrt(sq_v)
    inv_norm = lax.rsqrt(sq_v)
    inv_atanh = pl.reciprocal(jnp.minimum(norm, RENORM_MAX), approx=True)
    return inv_atanh * inv_norm * (v + EPS)


def _exp_map_zero(v):
    # reference: v = v+eps; norm = ||v||; out = renorm(tanh(norm)/norm * v)
    # Returns (out, ||out||^2) so callers reuse the row norm without a second
    # cross-lane reduce (renorm norm derived analytically: == tanh(norm)).
    v = v + EPS
    sq = _sq_norm(v)
    norm = jnp.sqrt(sq)
    inv_norm = lax.rsqrt(sq)
    t = jnp.tanh(norm)
    res = t * inv_norm * v
    res_norm = t * (inv_norm * norm)
    scale = _renorm_scale(res_norm)
    out = res * scale
    out_norm = res_norm * scale
    return out, out_norm * out_norm


def _h_add_bias(u, sq_u, bias_row):
    # reference h_add(u, v) with v = bias row broadcast over nodes.
    v = bias_row + EPS                                   # (1, F)
    nv = _sq_norm(v)                                     # (1, 1)
    dot = 2.0 * jnp.sum(u * v, axis=1, keepdims=True)    # (N, 1)
    nu = sq_u                                            # (N, 1)
    inv_d = pl.reciprocal(1.0 + dot + nv * nu + EPS, approx=True)
    res = (1.0 + dot + nv) * inv_d * u + (1.0 - nu) * inv_d * v
    sq_res = _sq_norm(res)
    scale = _renorm_scale(jnp.sqrt(sq_res))
    return res * scale, sq_res * scale * scale


def _hsage_conv(x, sq_x, adj, we, be, wl_top, wl_bot, bl):
    """One HyperbolicSageConv layer (all operands already in registers/VMEM)."""
    # h = h_mul(embed, x) == exp0( log0(x) @ W_embed ),  then h_add bias
    h, sq_h = _exp_map_zero(
        jnp.dot(_log_map_zero(x, sq_x), we, preferred_element_type=jnp.float32)
    )
    h, sq_h = _h_add_bias(h, sq_h, be)

    # neigh = exp0( adj @ log0(h) )   (neighborhood aggregation)
    neigh, sq_neigh = _exp_map_zero(
        jnp.dot(adj, _log_map_zero(h, sq_h), preferred_element_type=jnp.float32)
    )

    # h = h_mul(layer, concat([x, neigh], feature axis)) without materializing
    # the concat:  log0(cat) = s * (cat + eps), with per-row scalar
    # s = 1/min(||cat||,1-eps)/||cat||  and  ||cat||^2 = ||x||^2 + ||neigh||^2,
    # so the matmul splits across the pre-split halves of W_layer.
    sq_cat = sq_x + sq_neigh
    n_cat = jnp.sqrt(sq_cat)
    s = pl.reciprocal(jnp.minimum(n_cat, RENORM_MAX), approx=True) * lax.rsqrt(sq_cat)
    z = (
        jnp.dot(x + EPS, wl_top, preferred_element_type=jnp.float32)
        + jnp.dot(neigh + EPS, wl_bot, preferred_element_type=jnp.float32)
    )
    h2, sq_h2 = _exp_map_zero(s * z)
    h2, sq_h2 = _h_add_bias(h2, sq_h2, bl)
    return h2, sq_h2


# ---------------------------------------------------------------------------
# Fully fused kernel: init + all conv layers + interlayer activations.
# ---------------------------------------------------------------------------
def make_hgnn_kernel(n_conv):
    def kernel(*refs):
        x_ref, adj_ref = refs[0], refs[1]
        o_ref = refs[-1]
        p = refs[2:-1]                       # 5 refs per conv layer
        adj = adj_ref[...]

        # HGNN.init_layer = exp_map_zero
        h, sq_h = _exp_map_zero(x_ref[...])

        for i in range(n_conv):              # static unroll (shapes differ/layer)
            we, be, wlt, wlb, bl = (r[...] for r in p[5 * i : 5 * i + 5])
            h, sq_h = _hsage_conv(h, sq_h, adj, we, be, wlt, wlb, bl)
            if i != n_conv - 1:
                # exp0(relu(log0(h)))
                # TODO(synk): nn.Dropout(0.5) is training-mode randomness;
                # forward here is inference mode (identity), so it is omitted.
                h, sq_h = _exp_map_zero(jnp.maximum(_log_map_zero(h, sq_h), 0.0))

        o_ref[...] = h

    return kernel


def hgnn_forward(x, adj, params):
    """params: list of (w_embed, b_embed, w_layer_top, w_layer_bot, b_layer)."""
    n_conv = len(params)
    flat = []
    for layer_params in params:
        flat.extend(layer_params)
    f_out = params[-1][2].shape[1]

    # Whole arrays are VMEM-resident (tiny shapes).
    # TODO(synk): for large N, tile adj with a (node-row, node-col) grid,
    # reduction axis last, and mark the row axis "parallel" for v7x megacore;
    # whole-array residency would exceed v7x's 64 MiB VMEM at N ~ 4096.
    vmem = lambda: pl.BlockSpec(memory_space=pltpu.MemorySpace.VMEM)
    return pl.pallas_call(
        make_hgnn_kernel(n_conv),
        out_shape=jax.ShapeDtypeStruct((x.shape[0], f_out), jnp.float32),
        in_specs=[vmem() for _ in range(2 + 5 * n_conv)],
        out_specs=vmem(),
    )(x, adj, *flat)


# ---------------------------------------------------------------------------
# Deterministic parameter construction (mirrors HyperbolicSageConv.__init__);
# w_layer is stored pre-split into its top/bottom halves.
# ---------------------------------------------------------------------------
def xavier_uniform(key, shape, gain):
    fan_in, fan_out = shape
    a = gain * jnp.sqrt(6.0 / (fan_in + fan_out))
    return jax.random.uniform(key, shape, jnp.float32, minval=-a, maxval=a)


def make_hgnn_params(key, in_feats, n_hidden, out_feats, n_layers):
    gain = jnp.sqrt(2.0)  # nn.init.calculate_gain('relu')
    dims = [(in_feats, n_hidden)]
    dims += [(n_hidden, n_hidden)] * (n_layers - 1)
    dims += [(n_hidden, out_feats)]
    params = []
    for (fi, fo) in dims:
        key, k1, k2 = jax.random.split(key, 3)
        w_embed = xavier_uniform(k1, (fi, fi), gain)
        b_embed = jnp.zeros((1, fi), jnp.float32)
        w_layer = xavier_uniform(k2, (2 * fi, fo), gain)
        b_layer = jnp.zeros((1, fo), jnp.float32)
        params.append((w_embed, b_embed, w_layer[:fi, :], w_layer[fi:, :], b_layer))
    return params


if __name__ == "__main__":
    key = jax.random.PRNGKey(0)
    N, IN_FEATS, N_HIDDEN, OUT_FEATS, N_LAYERS = 16, 16, 32, 16, 2

    kx, kadj, kparams = jax.random.split(key, 3)
    x = jax.random.normal(kx, (N, IN_FEATS), jnp.float32)
    adj = (jax.random.uniform(kadj, (N, N)) < 0.3).astype(jnp.float32)

    params = make_hgnn_params(kparams, IN_FEATS, N_HIDDEN, OUT_FEATS, N_LAYERS)

    out = hgnn_forward(x, adj, params)
    out = jax.block_until_ready(out)
    assert out.shape == (N, OUT_FEATS)
    assert bool(jnp.all(jnp.isfinite(out)))
    print("KERNEL_OK")
</pallas_src>

<mosaic_0001>
module attributes {stable_mosaic.version = 11 : i64} {
  func.func @kernel(%arg0: memref<16x16xf32, #tpu.memory_space<vmem>>, %arg1: memref<16x16xf32, #tpu.memory_space<vmem>>, %arg2: memref<16x16xf32, #tpu.memory_space<vmem>>, %arg3: memref<1x16xf32, #tpu.memory_space<vmem>>, %arg4: memref<16x32xf32, #tpu.memory_space<vmem>>, %arg5: memref<16x32xf32, #tpu.memory_space<vmem>>, %arg6: memref<1x32xf32, #tpu.memory_space<vmem>>, %arg7: memref<32x32xf32, #tpu.memory_space<vmem>>, %arg8: memref<1x32xf32, #tpu.memory_space<vmem>>, %arg9: memref<32x32xf32, #tpu.memory_space<vmem>>, %arg10: memref<32x32xf32, #tpu.memory_space<vmem>>, %arg11: memref<1x32xf32, #tpu.memory_space<vmem>>, %arg12: memref<32x32xf32, #tpu.memory_space<vmem>>, %arg13: memref<1x32xf32, #tpu.memory_space<vmem>>, %arg14: memref<32x16xf32, #tpu.memory_space<vmem>>, %arg15: memref<32x16xf32, #tpu.memory_space<vmem>>, %arg16: memref<1x16xf32, #tpu.memory_space<vmem>>, %arg17: memref<16x16xf32, #tpu.memory_space<vmem>>) attributes {dimension_semantics = [], scalar_prefetch = 0 : i64, scratch_operands = 0 : i64, tpu.core_type = #tpu.core_type<tc>} {
    %c0 = arith.constant 0 : index
    %c0_0 = arith.constant 0 : index
    %0 = vector.load %arg1[%c0, %c0_0] : memref<16x16xf32, #tpu.memory_space<vmem>>, vector<16x16xf32>
    %c0_1 = arith.constant 0 : index
    %c0_2 = arith.constant 0 : index
    %1 = vector.load %arg0[%c0_1, %c0_2] : memref<16x16xf32, #tpu.memory_space<vmem>>, vector<16x16xf32>
    %cst = arith.constant 9.99999974E-6 : f32
    %2 = vector.broadcast %cst : f32 to vector<16x16xf32>
    %3 = arith.addf %1, %2 : vector<16x16xf32>
    %4 = arith.mulf %3, %3 : vector<16x16xf32>
    %cst_3 = arith.constant dense<0.000000e+00> : vector<16xf32>
    %5 = vector.multi_reduction <add>, %4, %cst_3 [1] : vector<16x16xf32> to vector<16xf32>
    %6 = vector.shape_cast %5 : vector<16xf32> to vector<16x1xf32>
    %7 = math.sqrt %6 : vector<16x1xf32>
    %8 = math.rsqrt %6 : vector<16x1xf32>
    %9 = math.tanh %7 : vector<16x1xf32>
    %10 = arith.mulf %9, %8 : vector<16x1xf32>
    %11 = vector.broadcast %10 : vector<16x1xf32> to vector<16x16xf32>
    %12 = arith.mulf %11, %3 : vector<16x16xf32>
    %13 = arith.mulf %8, %7 : vector<16x1xf32>
    %14 = arith.mulf %9, %13 : vector<16x1xf32>
    %cst_4 = arith.constant 0.999989986 : f32
    %15 = vector.broadcast %cst_4 : f32 to vector<16x1xf32>
    %16 = arith.cmpf ogt, %14, %15 : vector<16x1xf32>
    %cst_5 = arith.constant 1.000000e-07 : f32
    %17 = vector.broadcast %cst_5 : f32 to vector<16x1xf32>
    %18 = arith.addf %14, %17 : vector<16x1xf32>
    %19 = tpu.reciprocal %18 {approx = true} : vector<16x1xf32> -> vector<16x1xf32>
    %cst_6 = arith.constant 0.999989986 : f32
    %20 = vector.broadcast %cst_6 : f32 to vector<16x1xf32>
    %21 = arith.mulf %20, %19 : vector<16x1xf32>
    %cst_7 = arith.constant 1.000000e+00 : f32
    %22 = vector.broadcast %cst_7 : f32 to vector<16x1xf32>
    %23 = arith.select %16, %21, %22 : vector<16x1xi1>, vector<16x1xf32>
    %24 = vector.broadcast %23 : vector<16x1xf32> to vector<16x16xf32>
    %25 = arith.mulf %12, %24 : vector<16x16xf32>
    %26 = arith.mulf %14, %23 : vector<16x1xf32>
    %27 = arith.mulf %26, %26 : vector<16x1xf32>
    %c0_8 = arith.constant 0 : index
    %c0_9 = arith.constant 0 : index
    %28 = vector.load %arg2[%c0_8, %c0_9] : memref<16x16xf32, #tpu.memory_space<vmem>>, vector<16x16xf32>
    %c0_10 = arith.constant 0 : index
    %c0_11 = arith.constant 0 : index
    %29 = vector.load %arg3[%c0_10, %c0_11] : memref<1x16xf32, #tpu.memory_space<vmem>>, vector<1x16xf32>
    %c0_12 = arith.constant 0 : index
    %c0_13 = arith.constant 0 : index
    %30 = vector.load %arg4[%c0_12, %c0_13] : memref<16x32xf32, #tpu.memory_space<vmem>>, vector<16x32xf32>
    %c0_14 = arith.constant 0 : index
    %c0_15 = arith.constant 0 : index
    %31 = vector.load %arg5[%c0_14, %c0_15] : memref<16x32xf32, #tpu.memory_space<vmem>>, vector<16x32xf32>
    %c0_16 = arith.constant 0 : index
    %c0_17 = arith.constant 0 : index
    %32 = vector.load %arg6[%c0_16, %c0_17] : memref<1x32xf32, #tpu.memory_space<vmem>>, vector<1x32xf32>
    %33 = math.sqrt %27 : vector<16x1xf32>
    %34 = math.rsqrt %27 : vector<16x1xf32>
    %cst_18 = arith.constant 0.999989986 : f32
    %35 = vector.broadcast %cst_18 : f32 to vector<16x1xf32>
    %36 = arith.minimumf %33, %35 : vector<16x1xf32>
    %37 = tpu.reciprocal %36 {approx = true} : vector<16x1xf32> -> vector<16x1xf32>
    %38 = arith.mulf %37, %34 : vector<16x1xf32>
    %cst_19 = arith.constant 9.99999974E-6 : f32
    %39 = vector.broadcast %cst_19 : f32 to vector<16x16xf32>
    %40 = arith.addf %25, %39 : vector<16x16xf32>
    %41 = vector.broadcast %38 : vector<16x1xf32> to vector<16x16xf32>
    %42 = arith.mulf %41, %40 : vector<16x16xf32>
    %cst_20 = arith.constant dense<0.000000e+00> : vector<16x16xf32>
    %43 = tpu.matmul %42, %28, %cst_20 {dimension_numbers = #tpu.dot_dimension_numbers<[1], [0], [0], [1], [0, 0, 1, 1], [], []>} : vector<16x16xf32>, vector<16x16xf32>, vector<16x16xf32> -> vector<16x16xf32>
    %cst_21 = arith.constant 9.99999974E-6 : f32
    %44 = vector.broadcast %cst_21 : f32 to vector<16x16xf32>
    %45 = arith.addf %43, %44 : vector<16x16xf32>
    %46 = arith.mulf %45, %45 : vector<16x16xf32>
    %cst_22 = arith.constant dense<0.000000e+00> : vector<16xf32>
    %47 = vector.multi_reduction <add>, %46, %cst_22 [1] : vector<16x16xf32> to vector<16xf32>
    %48 = vector.shape_cast %47 : vector<16xf32> to vector<16x1xf32>
    %49 = math.sqrt %48 : vector<16x1xf32>
    %50 = math.rsqrt %48 : vector<16x1xf32>
    %51 = math.tanh %49 : vector<16x1xf32>
    %52 = arith.mulf %51, %50 : vector<16x1xf32>
    %53 = vector.broadcast %52 : vector<16x1xf32> to vector<16x16xf32>
    %54 = arith.mulf %53, %45 : vector<16x16xf32>
    %55 = arith.mulf %50, %49 : vector<16x1xf32>
    %56 = arith.mulf %51, %55 : vector<16x1xf32>
    %cst_23 = arith.constant 0.999989986 : f32
    %57 = vector.broadcast %cst_23 : f32 to vector<16x1xf32>
    %58 = arith.cmpf ogt, %56, %57 : vector<16x1xf32>
    %cst_24 = arith.constant 1.000000e-07 : f32
    %59 = vector.broadcast %cst_24 : f32 to vector<16x1xf32>
    %60 = arith.addf %56, %59 : vector<16x1xf32>
    %61 = tpu.reciprocal %60 {approx = true} : vector<16x1xf32> -> vector<16x1xf32>
    %cst_25 = arith.constant 0.999989986 : f32
    %62 = vector.broadcast %cst_25 : f32 to vector<16x1xf32>
    %63 = arith.mulf %62, %61 : vector<16x1xf32>
    %cst_26 = arith.constant 1.000000e+00 : f32
    %64 = vector.broadcast %cst_26 : f32 to vector<16x1xf32>
    %65 = arith.select %58, %63, %64 : vector<16x1xi1>, vector<16x1xf32>
    %66 = vector.broadcast %65 : vector<16x1xf32> to vector<16x16xf32>
    %67 = arith.mulf %54, %66 : vector<16x16xf32>
    %68 = arith.mulf %56, %65 : vector<16x1xf32>
    %69 = arith.mulf %68, %68 : vector<16x1xf32>
    %cst_27 = arith.constant 9.99999974E-6 : f32
    %70 = vector.broadcast %cst_27 : f32 to vector<1x16xf32>
    %71 = arith.addf %29, %70 : vector<1x16xf32>
    %72 = arith.mulf %71, %71 : vector<1x16xf32>
    %cst_28 = arith.constant dense<0.000000e+00> : vector<1xf32>
    %73 = vector.multi_reduction <add>, %72, %cst_28 [1] : vector<1x16xf32> to vector<1xf32>
    %74 = vector.shape_cast %73 : vector<1xf32> to vector<1x1xf32>
    %75 = vector.broadcast %71 : vector<1x16xf32> to vector<16x16xf32>
    %76 = arith.mulf %67, %75 : vector<16x16xf32>
    %cst_29 = arith.constant dense<0.000000e+00> : vector<16xf32>
    %77 = vector.multi_reduction <add>, %76, %cst_29 [1] : vector<16x16xf32> to vector<16xf32>
    %78 = vector.shape_cast %77 : vector<16xf32> to vector<16x1xf32>
    %cst_30 = arith.constant 2.000000e+00 : f32
    %79 = vector.broadcast %cst_30 : f32 to vector<16x1xf32>
    %80 = arith.mulf %79, %78 : vector<16x1xf32>
    %cst_31 = arith.constant 1.000000e+00 : f32
    %81 = vector.broadcast %cst_31 : f32 to vector<16x1xf32>
    %82 = arith.addf %81, %80 : vector<16x1xf32>
    %83 = vector.broadcast %74 : vector<1x1xf32> to vector<16x1xf32>
    %84 = arith.mulf %83, %69 : vector<16x1xf32>
    %85 = arith.addf %82, %84 : vector<16x1xf32>
    %cst_32 = arith.constant 9.99999974E-6 : f32
    %86 = vector.broadcast %cst_32 : f32 to vector<16x1xf32>
    %87 = arith.addf %85, %86 : vector<16x1xf32>
    %88 = tpu.reciprocal %87 {approx = true} : vector<16x1xf32> -> vector<16x1xf32>
    %cst_33 = arith.constant 1.000000e+00 : f32
    %89 = vector.broadcast %cst_33 : f32 to vector<16x1xf32>
    %90 = arith.addf %89, %80 : vector<16x1xf32>
    %91 = vector.broadcast %74 : vector<1x1xf32> to vector<16x1xf32>
    %92 = arith.addf %90, %91 : vector<16x1xf32>
    %93 = arith.mulf %92, %88 : vector<16x1xf32>
    %94 = vector.broadcast %93 : vector<16x1xf32> to vector<16x16xf32>
    %95 = arith.mulf %94, %67 : vector<16x16xf32>
    %cst_34 = arith.constant 1.000000e+00 : f32
    %96 = vector.broadcast %cst_34 : f32 to vector<16x1xf32>
    %97 = arith.subf %96, %69 : vector<16x1xf32>
    %98 = arith.mulf %97, %88 : vector<16x1xf32>
    %99 = vector.broadcast %98 : vector<16x1xf32> to vector<16x16xf32>
    %100 = vector.broadcast %71 : vector<1x16xf32> to vector<16x16xf32>
    %101 = arith.mulf %99, %100 : vector<16x16xf32>
    %102 = arith.addf %95, %101 : vector<16x16xf32>
    %103 = arith.mulf %102, %102 : vector<16x16xf32>
    %cst_35 = arith.constant dense<0.000000e+00> : vector<16xf32>
    %104 = vector.multi_reduction <add>, %103, %cst_35 [1] : vector<16x16xf32> to vector<16xf32>
    %105 = vector.shape_cast %104 : vector<16xf32> to vector<16x1xf32>
    %106 = math.sqrt %105 : vector<16x1xf32>
    %cst_36 = arith.constant 0.999989986 : f32
    %107 = vector.broadcast %cst_36 : f32 to vector<16x1xf32>
    %108 = arith.cmpf ogt, %106, %107 : vector<16x1xf32>
    %cst_37 = arith.constant 1.000000e-07 : f32
    %109 = vector.broadcast %cst_37 : f32 to vector<16x1xf32>
    %110 = arith.addf %106, %109 : vector<16x1xf32>
    %111 = tpu.reciprocal %110 {approx = true} : vector<16x1xf32> -> vector<16x1xf32>
    %cst_38 = arith.constant 0.999989986 : f32
    %112 = vector.broadcast %cst_38 : f32 to vector<16x1xf32>
    %113 = arith.mulf %112, %111 : vector<16x1xf32>
    %cst_39 = arith.constant 1.000000e+00 : f32
    %114 = vector.broadcast %cst_39 : f32 to vector<16x1xf32>
    %115 = arith.select %108, %113, %114 : vector<16x1xi1>, vector<16x1xf32>
    %116 = vector.broadcast %115 : vector<16x1xf32> to vector<16x16xf32>
    %117 = arith.mulf %102, %116 : vector<16x16xf32>
    %118 = arith.mulf %105, %115 : vector<16x1xf32>
    %119 = arith.mulf %118, %115 : vector<16x1xf32>
    %120 = math.sqrt %119 : vector<16x1xf32>
    %121 = math.rsqrt %119 : vector<16x1xf32>
    %cst_40 = arith.constant 0.999989986 : f32
    %122 = vector.broadcast %cst_40 : f32 to vector<16x1xf32>
    %123 = arith.minimumf %120, %122 : vector<16x1xf32>
    %124 = tpu.reciprocal %123 {approx = true} : vector<16x1xf32> -> vector<16x1xf32>
    %125 = arith.mulf %124, %121 : vector<16x1xf32>
    %cst_41 = arith.constant 9.99999974E-6 : f32
    %126 = vector.broadcast %cst_41 : f32 to vector<16x16xf32>
    %127 = arith.addf %117, %126 : vector<16x16xf32>
    %128 = vector.broadcast %125 : vector<16x1xf32> to vector<16x16xf32>
    %129 = arith.mulf %128, %127 : vector<16x16xf32>
    %cst_42 = arith.constant dense<0.000000e+00> : vector<16x16xf32>
    %130 = tpu.matmul %0, %129, %cst_42 {dimension_numbers = #tpu.dot_dimension_numbers<[1], [0], [0], [1], [0, 0, 1, 1], [], []>} : vector<16x16xf32>, vector<16x16xf32>, vector<16x16xf32> -> vector<16x16xf32>
    %cst_43 = arith.constant 9.99999974E-6 : f32
    %131 = vector.broadcast %cst_43 : f32 to vector<16x16xf32>
    %132 = arith.addf %130, %131 : vector<16x16xf32>
    %133 = arith.mulf %132, %132 : vector<16x16xf32>
    %cst_44 = arith.constant dense<0.000000e+00> : vector<16xf32>
    %134 = vector.multi_reduction <add>, %133, %cst_44 [1] : vector<16x16xf32> to vector<16xf32>
    %135 = vector.shape_cast %134 : vector<16xf32> to vector<16x1xf32>
    %136 = math.sqrt %135 : vector<16x1xf32>
    %137 = math.rsqrt %135 : vector<16x1xf32>
    %138 = math.tanh %136 : vector<16x1xf32>
    %139 = arith.mulf %138, %137 : vector<16x1xf32>
    %140 = vector.broadcast %139 : vector<16x1xf32> to vector<16x16xf32>
    %141 = arith.mulf %140, %132 : vector<16x16xf32>
    %142 = arith.mulf %137, %136 : vector<16x1xf32>
    %143 = arith.mulf %138, %142 : vector<16x1xf32>
    %cst_45 = arith.constant 0.999989986 : f32
    %144 = vector.broadcast %cst_45 : f32 to vector<16x1xf32>
    %145 = arith.cmpf ogt, %143, %144 : vector<16x1xf32>
    %cst_46 = arith.constant 1.000000e-07 : f32
    %146 = vector.broadcast %cst_46 : f32 to vector<16x1xf32>
    %147 = arith.addf %143, %146 : vector<16x1xf32>
    %148 = tpu.reciprocal %147 {approx = true} : vector<16x1xf32> -> vector<16x1xf32>
    %cst_47 = arith.constant 0.999989986 : f32
    %149 = vector.broadcast %cst_47 : f32 to vector<16x1xf32>
    %150 = arith.mulf %149, %148 : vector<16x1xf32>
    %cst_48 = arith.constant 1.000000e+00 : f32
    %151 = vector.broadcast %cst_48 : f32 to vector<16x1xf32>
    %152 = arith.select %145, %150, %151 : vector<16x1xi1>, vector<16x1xf32>
    %153 = vector.broadcast %152 : vector<16x1xf32> to vector<16x16xf32>
    %154 = arith.mulf %141, %153 : vector<16x16xf32>
    %155 = arith.mulf %143, %152 : vector<16x1xf32>
    %156 = arith.mulf %155, %155 : vector<16x1xf32>
    %157 = arith.addf %27, %156 : vector<16x1xf32>
    %158 = math.sqrt %157 : vector<16x1xf32>
    %cst_49 = arith.constant 0.999989986 : f32
    %159 = vector.broadcast %cst_49 : f32 to vector<16x1xf32>
    %160 = arith.minimumf %158, %159 : vector<16x1xf32>
    %161 = tpu.reciprocal %160 {approx = true} : vector<16x1xf32> -> vector<16x1xf32>
    %162 = math.rsqrt %157 : vector<16x1xf32>
    %163 = arith.mulf %161, %162 : vector<16x1xf32>
    %cst_50 = arith.constant 9.99999974E-6 : f32
    %164 = vector.broadcast %cst_50 : f32 to vector<16x16xf32>
    %165 = arith.addf %25, %164 : vector<16x16xf32>
    %cst_51 = arith.constant dense<0.000000e+00> : vector<16x32xf32>
    %166 = tpu.matmul %165, %30, %cst_51 {dimension_numbers = #tpu.dot_dimension_numbers<[1], [0], [0], [1], [0, 0, 1, 1], [], []>} : vector<16x16xf32>, vector<16x32xf32>, vector<16x32xf32> -> vector<16x32xf32>
    %cst_52 = arith.constant 9.99999974E-6 : f32
    %167 = vector.broadcast %cst_52 : f32 to vector<16x16xf32>
    %168 = arith.addf %154, %167 : vector<16x16xf32>
    %cst_53 = arith.constant dense<0.000000e+00> : vector<16x32xf32>
    %169 = tpu.matmul %168, %31, %cst_53 {dimension_numbers = #tpu.dot_dimension_numbers<[1], [0], [0], [1], [0, 0, 1, 1], [], []>} : vector<16x16xf32>, vector<16x32xf32>, vector<16x32xf32> -> vector<16x32xf32>
    %170 = arith.addf %166, %169 : vector<16x32xf32>
    %171 = vector.broadcast %163 : vector<16x1xf32> to vector<16x32xf32>
    %172 = arith.mulf %171, %170 : vector<16x32xf32>
    %cst_54 = arith.constant 9.99999974E-6 : f32
    %173 = vector.broadcast %cst_54 : f32 to vector<16x32xf32>
    %174 = arith.addf %172, %173 : vector<16x32xf32>
    %175 = arith.mulf %174, %174 : vector<16x32xf32>
    %cst_55 = arith.constant dense<0.000000e+00> : vector<16xf32>
    %176 = vector.multi_reduction <add>, %175, %cst_55 [1] : vector<16x32xf32> to vector<16xf32>
    %177 = vector.shape_cast %176 : vector<16xf32> to vector<16x1xf32>
    %178 = math.sqrt %177 : vector<16x1xf32>
    %179 = math.rsqrt %177 : vector<16x1xf32>
    %180 = math.tanh %178 : vector<16x1xf32>
    %181 = arith.mulf %180, %179 : vector<16x1xf32>
    %182 = vector.broadcast %181 : vector<16x1xf32> to vector<16x32xf32>
    %183 = arith.mulf %182, %174 : vector<16x32xf32>
    %184 = arith.mulf %179, %178 : vector<16x1xf32>
    %185 = arith.mulf %180, %184 : vector<16x1xf32>
    %cst_56 = arith.constant 0.999989986 : f32
    %186 = vector.broadcast %cst_56 : f32 to vector<16x1xf32>
    %187 = arith.cmpf ogt, %185, %186 : vector<16x1xf32>
    %cst_57 = arith.constant 1.000000e-07 : f32
    %188 = vector.broadcast %cst_57 : f32 to vector<16x1xf32>
    %189 = arith.addf %185, %188 : vector<16x1xf32>
    %190 = tpu.reciprocal %189 {approx = true} : vector<16x1xf32> -> vector<16x1xf32>
    %cst_58 = arith.constant 0.999989986 : f32
    %191 = vector.broadcast %cst_58 : f32 to vector<16x1xf32>
    %192 = arith.mulf %191, %190 : vector<16x1xf32>
    %cst_59 = arith.constant 1.000000e+00 : f32
    %193 = vector.broadcast %cst_59 : f32 to vector<16x1xf32>
    %194 = arith.select %187, %192, %193 : vector<16x1xi1>, vector<16x1xf32>
    %195 = vector.broadcast %194 : vector<16x1xf32> to vector<16x32xf32>
    %196 = arith.mulf %183, %195 : vector<16x32xf32>
    %197 = arith.mulf %185, %194 : vector<16x1xf32>
    %198 = arith.mulf %197, %197 : vector<16x1xf32>
    %cst_60 = arith.constant 9.99999974E-6 : f32
    %199 = vector.broadcast %cst_60 : f32 to vector<1x32xf32>
    %200 = arith.addf %32, %199 : vector<1x32xf32>
    %201 = arith.mulf %200, %200 : vector<1x32xf32>
    %cst_61 = arith.constant dense<0.000000e+00> : vector<1xf32>
    %202 = vector.multi_reduction <add>, %201, %cst_61 [1] : vector<1x32xf32> to vector<1xf32>
    %203 = vector.shape_cast %202 : vector<1xf32> to vector<1x1xf32>
    %204 = vector.broadcast %200 : vector<1x32xf32> to vector<16x32xf32>
    %205 = arith.mulf %196, %204 : vector<16x32xf32>
    %cst_62 = arith.constant dense<0.000000e+00> : vector<16xf32>
    %206 = vector.multi_reduction <add>, %205, %cst_62 [1] : vector<16x32xf32> to vector<16xf32>
    %207 = vector.shape_cast %206 : vector<16xf32> to vector<16x1xf32>
    %cst_63 = arith.constant 2.000000e+00 : f32
    %208 = vector.broadcast %cst_63 : f32 to vector<16x1xf32>
    %209 = arith.mulf %208, %207 : vector<16x1xf32>
    %cst_64 = arith.constant 1.000000e+00 : f32
    %210 = vector.broadcast %cst_64 : f32 to vector<16x1xf32>
    %211 = arith.addf %210, %209 : vector<16x1xf32>
    %212 = vector.broadcast %203 : vector<1x1xf32> to vector<16x1xf32>
    %213 = arith.mulf %212, %198 : vector<16x1xf32>
    %214 = arith.addf %211, %213 : vector<16x1xf32>
    %cst_65 = arith.constant 9.99999974E-6 : f32
    %215 = vector.broadcast %cst_65 : f32 to vector<16x1xf32>
    %216 = arith.addf %214, %215 : vector<16x1xf32>
    %217 = tpu.reciprocal %216 {approx = true} : vector<16x1xf32> -> vector<16x1xf32>
    %cst_66 = arith.constant 1.000000e+00 : f32
    %218 = vector.broadcast %cst_66 : f32 to vector<16x1xf32>
    %219 = arith.addf %218, %209 : vector<16x1xf32>
    %220 = vector.broadcast %203 : vector<1x1xf32> to vector<16x1xf32>
    %221 = arith.addf %219, %220 : vector<16x1xf32>
    %222 = arith.mulf %221, %217 : vector<16x1xf32>
    %223 = vector.broadcast %222 : vector<16x1xf32> to vector<16x32xf32>
    %224 = arith.mulf %223, %196 : vector<16x32xf32>
    %cst_67 = arith.constant 1.000000e+00 : f32
    %225 = vector.broadcast %cst_67 : f32 to vector<16x1xf32>
    %226 = arith.subf %225, %198 : vector<16x1xf32>
    %227 = arith.mulf %226, %217 : vector<16x1xf32>
    %228 = vector.broadcast %227 : vector<16x1xf32> to vector<16x32xf32>
    %229 = vector.broadcast %200 : vector<1x32xf32> to vector<16x32xf32>
    %230 = arith.mulf %228, %229 : vector<16x32xf32>
    %231 = arith.addf %224, %230 : vector<16x32xf32>
    %232 = arith.mulf %231, %231 : vector<16x32xf32>
    %cst_68 = arith.constant dense<0.000000e+00> : vector<16xf32>
    %233 = vector.multi_reduction <add>, %232, %cst_68 [1] : vector<16x32xf32> to vector<16xf32>
    %234 = vector.shape_cast %233 : vector<16xf32> to vector<16x1xf32>
    %235 = math.sqrt %234 : vector<16x1xf32>
    %cst_69 = arith.constant 0.999989986 : f32
    %236 = vector.broadcast %cst_69 : f32 to vector<16x1xf32>
    %237 = arith.cmpf ogt, %235, %236 : vector<16x1xf32>
    %cst_70 = arith.constant 1.000000e-07 : f32
    %238 = vector.broadcast %cst_70 : f32 to vector<16x1xf32>
    %239 = arith.addf %235, %238 : vector<16x1xf32>
    %240 = tpu.reciprocal %239 {approx = true} : vector<16x1xf32> -> vector<16x1xf32>
    %cst_71 = arith.constant 0.999989986 : f32
    %241 = vector.broadcast %cst_71 : f32 to vector<16x1xf32>
    %242 = arith.mulf %241, %240 : vector<16x1xf32>
    %cst_72 = arith.constant 1.000000e+00 : f32
    %243 = vector.broadcast %cst_72 : f32 to vector<16x1xf32>
    %244 = arith.select %237, %242, %243 : vector<16x1xi1>, vector<16x1xf32>
    %245 = vector.broadcast %244 : vector<16x1xf32> to vector<16x32xf32>
    %246 = arith.mulf %231, %245 : vector<16x32xf32>
    %247 = arith.mulf %234, %244 : vector<16x1xf32>
    %248 = arith.mulf %247, %244 : vector<16x1xf32>
    %249 = math.sqrt %248 : vector<16x1xf32>
    %250 = math.rsqrt %248 : vector<16x1xf32>
    %cst_73 = arith.constant 0.999989986 : f32
    %251 = vector.broadcast %cst_73 : f32 to vector<16x1xf32>
    %252 = arith.minimumf %249, %251 : vector<16x1xf32>
    %253 = tpu.reciprocal %252 {approx = true} : vector<16x1xf32> -> vector<16x1xf32>
    %254 = arith.mulf %253, %250 : vector<16x1xf32>
    %cst_74 = arith.constant 9.99999974E-6 : f32
    %255 = vector.broadcast %cst_74 : f32 to vector<16x32xf32>
    %256 = arith.addf %246, %255 : vector<16x32xf32>
    %257 = vector.broadcast %254 : vector<16x1xf32> to vector<16x32xf32>
    %258 = arith.mulf %257, %256 : vector<16x32xf32>
    %cst_75 = arith.constant 0.000000e+00 : f32
    %259 = vector.broadcast %cst_75 : f32 to vector<16x32xf32>
    %260 = arith.maximumf %258, %259 : vector<16x32xf32>
    %cst_76 = arith.constant 9.99999974E-6 : f32
    %261 = vector.broadcast %cst_76 : f32 to vector<16x32xf32>
    %262 = arith.addf %260, %261 : vector<16x32xf32>
    %263 = arith.mulf %262, %262 : vector<16x32xf32>
    %cst_77 = arith.constant dense<0.000000e+00> : vector<16xf32>
    %264 = vector.multi_reduction <add>, %263, %cst_77 [1] : vector<16x32xf32> to vector<16xf32>
    %265 = vector.shape_cast %264 : vector<16xf32> to vector<16x1xf32>
    %266 = math.sqrt %265 : vector<16x1xf32>
    %267 = math.rsqrt %265 : vector<16x1xf32>
    %268 = math.tanh %266 : vector<16x1xf32>
    %269 = arith.mulf %268, %267 : vector<16x1xf32>
    %270 = vector.broadcast %269 : vector<16x1xf32> to vector<16x32xf32>
    %271 = arith.mulf %270, %262 : vector<16x32xf32>
    %272 = arith.mulf %267, %266 : vector<16x1xf32>
    %273 = arith.mulf %268, %272 : vector<16x1xf32>
    %cst_78 = arith.constant 0.999989986 : f32
    %274 = vector.broadcast %cst_78 : f32 to vector<16x1xf32>
    %275 = arith.cmpf ogt, %273, %274 : vector<16x1xf32>
    %cst_79 = arith.constant 1.000000e-07 : f32
    %276 = vector.broadcast %cst_79 : f32 to vector<16x1xf32>
    %277 = arith.addf %273, %276 : vector<16x1xf32>
    %278 = tpu.reciprocal %277 {approx = true} : vector<16x1xf32> -> vector<16x1xf32>
    %cst_80 = arith.constant 0.999989986 : f32
    %279 = vector.broadcast %cst_80 : f32 to vector<16x1xf32>
    %280 = arith.mulf %279, %278 : vector<16x1xf32>
    %cst_81 = arith.constant 1.000000e+00 : f32
    %281 = vector.broadcast %cst_81 : f32 to vector<16x1xf32>
    %282 = arith.select %275, %280, %281 : vector<16x1xi1>, vector<16x1xf32>
    %283 = vector.broadcast %282 : vector<16x1xf32> to vector<16x32xf32>
    %284 = arith.mulf %271, %283 : vector<16x32xf32>
    %285 = arith.mulf %273, %282 : vector<16x1xf32>
    %286 = arith.mulf %285, %285 : vector<16x1xf32>
    %c0_82 = arith.constant 0 : index
    %c0_83 = arith.constant 0 : index
    %287 = vector.load %arg7[%c0_82, %c0_83] : memref<32x32xf32, #tpu.memory_space<vmem>>, vector<32x32xf32>
    %c0_84 = arith.constant 0 : index
    %c0_85 = arith.constant 0 : index
    %288 = vector.load %arg8[%c0_84, %c0_85] : memref<1x32xf32, #tpu.memory_space<vmem>>, vector<1x32xf32>
    %c0_86 = arith.constant 0 : index
    %c0_87 = arith.constant 0 : index
    %289 = vector.load %arg9[%c0_86, %c0_87] : memref<32x32xf32, #tpu.memory_space<vmem>>, vector<32x32xf32>
    %c0_88 = arith.constant 0 : index
    %c0_89 = arith.constant 0 : index
    %290 = vector.load %arg10[%c0_88, %c0_89] : memref<32x32xf32, #tpu.memory_space<vmem>>, vector<32x32xf32>
    %c0_90 = arith.constant 0 : index
    %c0_91 = arith.constant 0 : index
    %291 = vector.load %arg11[%c0_90, %c0_91] : memref<1x32xf32, #tpu.memory_space<vmem>>, vector<1x32xf32>
    %292 = math.sqrt %286 : vector<16x1xf32>
    %293 = math.rsqrt %286 : vector<16x1xf32>
    %cst_92 = arith.constant 0.999989986 : f32
    %294 = vector.broadcast %cst_92 : f32 to vector<16x1xf32>
    %295 = arith.minimumf %292, %294 : vector<16x1xf32>
    %296 = tpu.reciprocal %295 {approx = true} : vector<16x1xf32> -> vector<16x1xf32>
    %297 = arith.mulf %296, %293 : vector<16x1xf32>
    %cst_93 = arith.constant 9.99999974E-6 : f32
    %298 = vector.broadcast %cst_93 : f32 to vector<16x32xf32>
    %299 = arith.addf %284, %298 : vector<16x32xf32>
    %300 = vector.broadcast %297 : vector<16x1xf32> to vector<16x32xf32>
    %301 = arith.mulf %300, %299 : vector<16x32xf32>
    %cst_94 = arith.constant dense<0.000000e+00> : vector<16x32xf32>
    %302 = tpu.matmul %301, %287, %cst_94 {dimension_numbers = #tpu.dot_dimension_numbers<[1], [0], [0], [1], [0, 0, 1, 1], [], []>} : vector<16x32xf32>, vector<32x32xf32>, vector<16x32xf32> -> vector<16x32xf32>
    %cst_95 = arith.constant 9.99999974E-6 : f32
    %303 = vector.broadcast %cst_95 : f32 to vector<16x32xf32>
    %304 = arith.addf %302, %303 : vector<16x32xf32>
    %305 = arith.mulf %304, %304 : vector<16x32xf32>
    %cst_96 = arith.constant dense<0.000000e+00> : vector<16xf32>
    %306 = vector.multi_reduction <add>, %305, %cst_96 [1] : vector<16x32xf32> to vector<16xf32>
    %307 = vector.shape_cast %306 : vector<16xf32> to vector<16x1xf32>
    %308 = math.sqrt %307 : vector<16x1xf32>
    %309 = math.rsqrt %307 : vector<16x1xf32>
    %310 = math.tanh %308 : vector<16x1xf32>
    %311 = arith.mulf %310, %309 : vector<16x1xf32>
    %312 = vector.broadcast %311 : vector<16x1xf32> to vector<16x32xf32>
    %313 = arith.mulf %312, %304 : vector<16x32xf32>
    %314 = arith.mulf %309, %308 : vector<16x1xf32>
    %315 = arith.mulf %310, %314 : vector<16x1xf32>
    %cst_97 = arith.constant 0.999989986 : f32
    %316 = vector.broadcast %cst_97 : f32 to vector<16x1xf32>
    %317 = arith.cmpf ogt, %315, %316 : vector<16x1xf32>
    %cst_98 = arith.constant 1.000000e-07 : f32
    %318 = vector.broadcast %cst_98 : f32 to vector<16x1xf32>
    %319 = arith.addf %315, %318 : vector<16x1xf32>
    %320 = tpu.reciprocal %319 {approx = true} : vector<16x1xf32> -> vector<16x1xf32>
    %cst_99 = arith.constant 0.999989986 : f32
    %321 = vector.broadcast %cst_99 : f32 to vector<16x1xf32>
    %322 = arith.mulf %321, %320 : vector<16x1xf32>
    %cst_100 = arith.constant 1.000000e+00 : f32
    %323 = vector.broadcast %cst_100 : f32 to vector<16x1xf32>
    %324 = arith.select %317, %322, %323 : vector<16x1xi1>, vector<16x1xf32>
    %325 = vector.broadcast %324 : vector<16x1xf32> to vector<16x32xf32>
    %326 = arith.mulf %313, %325 : vector<16x32xf32>
    %327 = arith.mulf %315, %324 : vector<16x1xf32>
    %328 = arith.mulf %327, %327 : vector<16x1xf32>
    %cst_101 = arith.constant 9.99999974E-6 : f32
    %329 = vector.broadcast %cst_101 : f32 to vector<1x32xf32>
    %330 = arith.addf %288, %329 : vector<1x32xf32>
    %331 = arith.mulf %330, %330 : vector<1x32xf32>
    %cst_102 = arith.constant dense<0.000000e+00> : vector<1xf32>
    %332 = vector.multi_reduction <add>, %331, %cst_102 [1] : vector<1x32xf32> to vector<1xf32>
    %333 = vector.shape_cast %332 : vector<1xf32> to vector<1x1xf32>
    %334 = vector.broadcast %330 : vector<1x32xf32> to vector<16x32xf32>
    %335 = arith.mulf %326, %334 : vector<16x32xf32>
    %cst_103 = arith.constant dense<0.000000e+00> : vector<16xf32>
    %336 = vector.multi_reduction <add>, %335, %cst_103 [1] : vector<16x32xf32> to vector<16xf32>
    %337 = vector.shape_cast %336 : vector<16xf32> to vector<16x1xf32>
    %cst_104 = arith.constant 2.000000e+00 : f32
    %338 = vector.broadcast %cst_104 : f32 to vector<16x1xf32>
    %339 = arith.mulf %338, %337 : vector<16x1xf32>
    %cst_105 = arith.constant 1.000000e+00 : f32
    %340 = vector.broadcast %cst_105 : f32 to vector<16x1xf32>
    %341 = arith.addf %340, %339 : vector<16x1xf32>
    %342 = vector.broadcast %333 : vector<1x1xf32> to vector<16x1xf32>
    %343 = arith.mulf %342, %328 : vector<16x1xf32>
    %344 = arith.addf %341, %343 : vector<16x1xf32>
    %cst_106 = arith.constant 9.99999974E-6 : f32
    %345 = vector.broadcast %cst_106 : f32 to vector<16x1xf32>
    %346 = arith.addf %344, %345 : vector<16x1xf32>
    %347 = tpu.reciprocal %346 {approx = true} : vector<16x1xf32> -> vector<16x1xf32>
    %cst_107 = arith.constant 1.000000e+00 : f32
    %348 = vector.broadcast %cst_107 : f32 to vector<16x1xf32>
    %349 = arith.addf %348, %339 : vector<16x1xf32>
    %350 = vector.broadcast %333 : vector<1x1xf32> to vector<16x1xf32>
    %351 = arith.addf %349, %350 : vector<16x1xf32>
    %352 = arith.mulf %351, %347 : vector<16x1xf32>
    %353 = vector.broadcast %352 : vector<16x1xf32> to vector<16x32xf32>
    %354 = arith.mulf %353, %326 : vector<16x32xf32>
    %cst_108 = arith.constant 1.000000e+00 : f32
    %355 = vector.broadcast %cst_108 : f32 to vector<16x1xf32>
    %356 = arith.subf %355, %328 : vector<16x1xf32>
    %357 = arith.mulf %356, %347 : vector<16x1xf32>
    %358 = vector.broadcast %357 : vector<16x1xf32> to vector<16x32xf32>
    %359 = vector.broadcast %330 : vector<1x32xf32> to vector<16x32xf32>
    %360 = arith.mulf %358, %359 : vector<16x32xf32>
    %361 = arith.addf %354, %360 : vector<16x32xf32>
    %362 = arith.mulf %361, %361 : vector<16x32xf32>
    %cst_109 = arith.constant dense<0.000000e+00> : vector<16xf32>
    %363 = vector.multi_reduction <add>, %362, %cst_109 [1] : vector<16x32xf32> to vector<16xf32>
    %364 = vector.shape_cast %363 : vector<16xf32> to vector<16x1xf32>
    %365 = math.sqrt %364 : vector<16x1xf32>
    %cst_110 = arith.constant 0.999989986 : f32
    %366 = vector.broadcast %cst_110 : f32 to vector<16x1xf32>
    %367 = arith.cmpf ogt, %365, %366 : vector<16x1xf32>
    %cst_111 = arith.constant 1.000000e-07 : f32
    %368 = vector.broadcast %cst_111 : f32 to vector<16x1xf32>
    %369 = arith.addf %365, %368 : vector<16x1xf32>
    %370 = tpu.reciprocal %369 {approx = true} : vector<16x1xf32> -> vector<16x1xf32>
    %cst_112 = arith.constant 0.999989986 : f32
    %371 = vector.broadcast %cst_112 : f32 to vector<16x1xf32>
    %372 = arith.mulf %371, %370 : vector<16x1xf32>
    %cst_113 = arith.constant 1.000000e+00 : f32
    %373 = vector.broadcast %cst_113 : f32 to vector<16x1xf32>
    %374 = arith.select %367, %372, %373 : vector<16x1xi1>, vector<16x1xf32>
    %375 = vector.broadcast %374 : vector<16x1xf32> to vector<16x32xf32>
    %376 = arith.mulf %361, %375 : vector<16x32xf32>
    %377 = arith.mulf %364, %374 : vector<16x1xf32>
    %378 = arith.mulf %377, %374 : vector<16x1xf32>
    %379 = math.sqrt %378 : vector<16x1xf32>
    %380 = math.rsqrt %378 : vector<16x1xf32>
    %cst_114 = arith.constant 0.999989986 : f32
    %381 = vector.broadcast %cst_114 : f32 to vector<16x1xf32>
    %382 = arith.minimumf %379, %381 : vector<16x1xf32>
    %383 = tpu.reciprocal %382 {approx = true} : vector<16x1xf32> -> vector<16x1xf32>
    %384 = arith.mulf %383, %380 : vector<16x1xf32>
    %cst_115 = arith.constant 9.99999974E-6 : f32
    %385 = vector.broadcast %cst_115 : f32 to vector<16x32xf32>
    %386 = arith.addf %376, %385 : vector<16x32xf32>
    %387 = vector.broadcast %384 : vector<16x1xf32> to vector<16x32xf32>
    %388 = arith.mulf %387, %386 : vector<16x32xf32>
    %cst_116 = arith.constant dense<0.000000e+00> : vector<16x32xf32>
    %389 = tpu.matmul %0, %388, %cst_116 {dimension_numbers = #tpu.dot_dimension_numbers<[1], [0], [0], [1], [0, 0, 1, 1], [], []>} : vector<16x16xf32>, vector<16x32xf32>, vector<16x32xf32> -> vector<16x32xf32>
    %cst_117 = arith.constant 9.99999974E-6 : f32
    %390 = vector.broadcast %cst_117 : f32 to vector<16x32xf32>
    %391 = arith.addf %389, %390 : vector<16x32xf32>
    %392 = arith.mulf %391, %391 : vector<16x32xf32>
    %cst_118 = arith.constant dense<0.000000e+00> : vector<16xf32>
    %393 = vector.multi_reduction <add>, %392, %cst_118 [1] : vector<16x32xf32> to vector<16xf32>
    %394 = vector.shape_cast %393 : vector<16xf32> to vector<16x1xf32>
    %395 = math.sqrt %394 : vector<16x1xf32>
    %396 = math.rsqrt %394 : vector<16x1xf32>
    %397 = math.tanh %395 : vector<16x1xf32>
    %398 = arith.mulf %397, %396 : vector<16x1xf32>
    %399 = vector.broadcast %398 : vector<16x1xf32> to vector<16x32xf32>
    %400 = arith.mulf %399, %391 : vector<16x32xf32>
    %401 = arith.mulf %396, %395 : vector<16x1xf32>
    %402 = arith.mulf %397, %401 : vector<16x1xf32>
    %cst_119 = arith.constant 0.999989986 : f32
    %403 = vector.broadcast %cst_119 : f32 to vector<16x1xf32>
    %404 = arith.cmpf ogt, %402, %403 : vector<16x1xf32>
    %cst_120 = arith.constant 1.000000e-07 : f32
    %405 = vector.broadcast %cst_120 : f32 to vector<16x1xf32>
    %406 = arith.addf %402, %405 : vector<16x1xf32>
    %407 = tpu.reciprocal %406 {approx = true} : vector<16x1xf32> -> vector<16x1xf32>
    %cst_121 = arith.constant 0.999989986 : f32
    %408 = vector.broadcast %cst_121 : f32 to vector<16x1xf32>
    %409 = arith.mulf %408, %407 : vector<16x1xf32>
    %cst_122 = arith.constant 1.000000e+00 : f32
    %410 = vector.broadcast %cst_122 : f32 to vector<16x1xf32>
    %411 = arith.select %404, %409, %410 : vector<16x1xi1>, vector<16x1xf32>
    %412 = vector.broadcast %411 : vector<16x1xf32> to vector<16x32xf32>
    %413 = arith.mulf %400, %412 : vector<16x32xf32>
    %414 = arith.mulf %402, %411 : vector<16x1xf32>
    %415 = arith.mulf %414, %414 : vector<16x1xf32>
    %416 = arith.addf %286, %415 : vector<16x1xf32>
    %417 = math.sqrt %416 : vector<16x1xf32>
    %cst_123 = arith.constant 0.999989986 : f32
    %418 = vector.broadcast %cst_123 : f32 to vector<16x1xf32>
    %419 = arith.minimumf %417, %418 : vector<16x1xf32>
    %420 = tpu.reciprocal %419 {approx = true} : vector<16x1xf32> -> vector<16x1xf32>
    %421 = math.rsqrt %416 : vector<16x1xf32>
    %422 = arith.mulf %420, %421 : vector<16x1xf32>
    %cst_124 = arith.constant 9.99999974E-6 : f32
    %423 = vector.broadcast %cst_124 : f32 to vector<16x32xf32>
    %424 = arith.addf %284, %423 : vector<16x32xf32>
    %cst_125 = arith.constant dense<0.000000e+00> : vector<16x32xf32>
    %425 = tpu.matmul %424, %289, %cst_125 {dimension_numbers = #tpu.dot_dimension_numbers<[1], [0], [0], [1], [0, 0, 1, 1], [], []>} : vector<16x32xf32>, vector<32x32xf32>, vector<16x32xf32> -> vector<16x32xf32>
    %cst_126 = arith.constant 9.99999974E-6 : f32
    %426 = vector.broadcast %cst_126 : f32 to vector<16x32xf32>
    %427 = arith.addf %413, %426 : vector<16x32xf32>
    %cst_127 = arith.constant dense<0.000000e+00> : vector<16x32xf32>
    %428 = tpu.matmul %427, %290, %cst_127 {dimension_numbers = #tpu.dot_dimension_numbers<[1], [0], [0], [1], [0, 0, 1, 1], [], []>} : vector<16x32xf32>, vector<32x32xf32>, vector<16x32xf32> -> vector<16x32xf32>
    %429 = arith.addf %425, %428 : vector<16x32xf32>
    %430 = vector.broadcast %422 : vector<16x1xf32> to vector<16x32xf32>
    %431 = arith.mulf %430, %429 : vector<16x32xf32>
    %cst_128 = arith.constant 9.99999974E-6 : f32
    %432 = vector.broadcast %cst_128 : f32 to vector<16x32xf32>
    %433 = arith.addf %431, %432 : vector<16x32xf32>
    %434 = arith.mulf %433, %433 : vector<16x32xf32>
    %cst_129 = arith.constant dense<0.000000e+00> : vector<16xf32>
    %435 = vector.multi_reduction <add>, %434, %cst_129 [1] : vector<16x32xf32> to vector<16xf32>
    %436 = vector.shape_cast %435 : vector<16xf32> to vector<16x1xf32>
    %437 = math.sqrt %436 : vector<16x1xf32>
    %438 = math.rsqrt %436 : vector<16x1xf32>
    %439 = math.tanh %437 : vector<16x1xf32>
    %440 = arith.mulf %439, %438 : vector<16x1xf32>
    %441 = vector.broadcast %440 : vector<16x1xf32> to vector<16x32xf32>
    %442 = arith.mulf %441, %433 : vector<16x32xf32>
    %443 = arith.mulf %438, %437 : vector<16x1xf32>
    %444 = arith.mulf %439, %443 : vector<16x1xf32>
    %cst_130 = arith.constant 0.999989986 : f32
    %445 = vector.broadcast %cst_130 : f32 to vector<16x1xf32>
    %446 = arith.cmpf ogt, %444, %445 : vector<16x1xf32>
    %cst_131 = arith.constant 1.000000e-07 : f32
    %447 = vector.broadcast %cst_131 : f32 to vector<16x1xf32>
    %448 = arith.addf %444, %447 : vector<16x1xf32>
    %449 = tpu.reciprocal %448 {approx = true} : vector<16x1xf32> -> vector<16x1xf32>
    %cst_132 = arith.constant 0.999989986 : f32
    %450 = vector.broadcast %cst_132 : f32 to vector<16x1xf32>
    %451 = arith.mulf %450, %449 : vector<16x1xf32>
    %cst_133 = arith.constant 1.000000e+00 : f32
    %452 = vector.broadcast %cst_133 : f32 to vector<16x1xf32>
    %453 = arith.select %446, %451, %452 : vector<16x1xi1>, vector<16x1xf32>
    %454 = vector.broadcast %453 : vector<16x1xf32> to vector<16x32xf32>
    %455 = arith.mulf %442, %454 : vector<16x32xf32>
    %456 = arith.mulf %444, %453 : vector<16x1xf32>
    %457 = arith.mulf %456, %456 : vector<16x1xf32>
    %cst_134 = arith.constant 9.99999974E-6 : f32
    %458 = vector.broadcast %cst_134 : f32 to vector<1x32xf32>
    %459 = arith.addf %291, %458 : vector<1x32xf32>
    %460 = arith.mulf %459, %459 : vector<1x32xf32>
    %cst_135 = arith.constant dense<0.000000e+00> : vector<1xf32>
    %461 = vector.multi_reduction <add>, %460, %cst_135 [1] : vector<1x32xf32> to vector<1xf32>
    %462 = vector.shape_cast %461 : vector<1xf32> to vector<1x1xf32>
    %463 = vector.broadcast %459 : vector<1x32xf32> to vector<16x32xf32>
    %464 = arith.mulf %455, %463 : vector<16x32xf32>
    %cst_136 = arith.constant dense<0.000000e+00> : vector<16xf32>
    %465 = vector.multi_reduction <add>, %464, %cst_136 [1] : vector<16x32xf32> to vector<16xf32>
    %466 = vector.shape_cast %465 : vector<16xf32> to vector<16x1xf32>
    %cst_137 = arith.constant 2.000000e+00 : f32
    %467 = vector.broadcast %cst_137 : f32 to vector<16x1xf32>
    %468 = arith.mulf %467, %466 : vector<16x1xf32>
    %cst_138 = arith.constant 1.000000e+00 : f32
    %469 = vector.broadcast %cst_138 : f32 to vector<16x1xf32>
    %470 = arith.addf %469, %468 : vector<16x1xf32>
    %471 = vector.broadcast %462 : vector<1x1xf32> to vector<16x1xf32>
    %472 = arith.mulf %471, %457 : vector<16x1xf32>
    %473 = arith.addf %470, %472 : vector<16x1xf32>
    %cst_139 = arith.constant 9.99999974E-6 : f32
    %474 = vector.broadcast %cst_139 : f32 to vector<16x1xf32>
    %475 = arith.addf %473, %474 : vector<16x1xf32>
    %476 = tpu.reciprocal %475 {approx = true} : vector<16x1xf32> -> vector<16x1xf32>
    %cst_140 = arith.constant 1.000000e+00 : f32
    %477 = vector.broadcast %cst_140 : f32 to vector<16x1xf32>
    %478 = arith.addf %477, %468 : vector<16x1xf32>
    %479 = vector.broadcast %462 : vector<1x1xf32> to vector<16x1xf32>
    %480 = arith.addf %478, %479 : vector<16x1xf32>
    %481 = arith.mulf %480, %476 : vector<16x1xf32>
    %482 = vector.broadcast %481 : vector<16x1xf32> to vector<16x32xf32>
    %483 = arith.mulf %482, %455 : vector<16x32xf32>
    %cst_141 = arith.constant 1.000000e+00 : f32
    %484 = vector.broadcast %cst_141 : f32 to vector<16x1xf32>
    %485 = arith.subf %484, %457 : vector<16x1xf32>
    %486 = arith.mulf %485, %476 : vector<16x1xf32>
    %487 = vector.broadcast %486 : vector<16x1xf32> to vector<16x32xf32>
    %488 = vector.broadcast %459 : vector<1x32xf32> to vector<16x32xf32>
    %489 = arith.mulf %487, %488 : vector<16x32xf32>
    %490 = arith.addf %483, %489 : vector<16x32xf32>
    %491 = arith.mulf %490, %490 : vector<16x32xf32>
    %cst_142 = arith.constant dense<0.000000e+00> : vector<16xf32>
    %492 = vector.multi_reduction <add>, %491, %cst_142 [1] : vector<16x32xf32> to vector<16xf32>
    %493 = vector.shape_cast %492 : vector<16xf32> to vector<16x1xf32>
    %494 = math.sqrt %493 : vector<16x1xf32>
    %cst_143 = arith.constant 0.999989986 : f32
    %495 = vector.broadcast %cst_143 : f32 to vector<16x1xf32>
    %496 = arith.cmpf ogt, %494, %495 : vector<16x1xf32>
    %cst_144 = arith.constant 1.000000e-07 : f32
    %497 = vector.broadcast %cst_144 : f32 to vector<16x1xf32>
    %498 = arith.addf %494, %497 : vector<16x1xf32>
    %499 = tpu.reciprocal %498 {approx = true} : vector<16x1xf32> -> vector<16x1xf32>
    %cst_145 = arith.constant 0.999989986 : f32
    %500 = vector.broadcast %cst_145 : f32 to vector<16x1xf32>
    %501 = arith.mulf %500, %499 : vector<16x1xf32>
    %cst_146 = arith.constant 1.000000e+00 : f32
    %502 = vector.broadcast %cst_146 : f32 to vector<16x1xf32>
    %503 = arith.select %496, %501, %502 : vector<16x1xi1>, vector<16x1xf32>
    %504 = vector.broadcast %503 : vector<16x1xf32> to vector<16x32xf32>
    %505 = arith.mulf %490, %504 : vector<16x32xf32>
    %506 = arith.mulf %493, %503 : vector<16x1xf32>
    %507 = arith.mulf %506, %503 : vector<16x1xf32>
    %508 = math.sqrt %507 : vector<16x1xf32>
    %509 = math.rsqrt %507 : vector<16x1xf32>
    %cst_147 = arith.constant 0.999989986 : f32
    %510 = vector.broadcast %cst_147 : f32 to vector<16x1xf32>
    %511 = arith.minimumf %508, %510 : vector<16x1xf32>
    %512 = tpu.reciprocal %511 {approx = true} : vector<16x1xf32> -> vector<16x1xf32>
    %513 = arith.mulf %512, %509 : vector<16x1xf32>
    %cst_148 = arith.constant 9.99999974E-6 : f32
    %514 = vector.broadcast %cst_148 : f32 to vector<16x32xf32>
    %515 = arith.addf %505, %514 : vector<16x32xf32>
    %516 = vector.broadcast %513 : vector<16x1xf32> to vector<16x32xf32>
    %517 = arith.mulf %516, %515 : vector<16x32xf32>
    %cst_149 = arith.constant 0.000000e+00 : f32
    %518 = vector.broadcast %cst_149 : f32 to vector<16x32xf32>
    %519 = arith.maximumf %517, %518 : vector<16x32xf32>
    %cst_150 = arith.constant 9.99999974E-6 : f32
    %520 = vector.broadcast %cst_150 : f32 to vector<16x32xf32>
    %521 = arith.addf %519, %520 : vector<16x32xf32>
    %522 = arith.mulf %521, %521 : vector<16x32xf32>
    %cst_151 = arith.constant dense<0.000000e+00> : vector<16xf32>
    %523 = vector.multi_reduction <add>, %522, %cst_151 [1] : vector<16x32xf32> to vector<16xf32>
    %524 = vector.shape_cast %523 : vector<16xf32> to vector<16x1xf32>
    %525 = math.sqrt %524 : vector<16x1xf32>
    %526 = math.rsqrt %524 : vector<16x1xf32>
    %527 = math.tanh %525 : vector<16x1xf32>
    %528 = arith.mulf %527, %526 : vector<16x1xf32>
    %529 = vector.broadcast %528 : vector<16x1xf32> to vector<16x32xf32>
    %530 = arith.mulf %529, %521 : vector<16x32xf32>
    %531 = arith.mulf %526, %525 : vector<16x1xf32>
    %532 = arith.mulf %527, %531 : vector<16x1xf32>
    %cst_152 = arith.constant 0.999989986 : f32
    %533 = vector.broadcast %cst_152 : f32 to vector<16x1xf32>
    %534 = arith.cmpf ogt, %532, %533 : vector<16x1xf32>
    %cst_153 = arith.constant 1.000000e-07 : f32
    %535 = vector.broadcast %cst_153 : f32 to vector<16x1xf32>
    %536 = arith.addf %532, %535 : vector<16x1xf32>
    %537 = tpu.reciprocal %536 {approx = true} : vector<16x1xf32> -> vector<16x1xf32>
    %cst_154 = arith.constant 0.999989986 : f32
    %538 = vector.broadcast %cst_154 : f32 to vector<16x1xf32>
    %539 = arith.mulf %538, %537 : vector<16x1xf32>
    %cst_155 = arith.constant 1.000000e+00 : f32
    %540 = vector.broadcast %cst_155 : f32 to vector<16x1xf32>
    %541 = arith.select %534, %539, %540 : vector<16x1xi1>, vector<16x1xf32>
    %542 = vector.broadcast %541 : vector<16x1xf32> to vector<16x32xf32>
    %543 = arith.mulf %530, %542 : vector<16x32xf32>
    %544 = arith.mulf %532, %541 : vector<16x1xf32>
    %545 = arith.mulf %544, %544 : vector<16x1xf32>
    %c0_156 = arith.constant 0 : index
    %c0_157 = arith.constant 0 : index
    %546 = vector.load %arg12[%c0_156, %c0_157] : memref<32x32xf32, #tpu.memory_space<vmem>>, vector<32x32xf32>
    %c0_158 = arith.constant 0 : index
    %c0_159 = arith.constant 0 : index
    %547 = vector.load %arg13[%c0_158, %c0_159] : memref<1x32xf32, #tpu.memory_space<vmem>>, vector<1x32xf32>
    %c0_160 = arith.constant 0 : index
    %c0_161 = arith.constant 0 : index
    %548 = vector.load %arg14[%c0_160, %c0_161] : memref<32x16xf32, #tpu.memory_space<vmem>>, vector<32x16xf32>
    %c0_162 = arith.constant 0 : index
    %c0_163 = arith.constant 0 : index
    %549 = vector.load %arg15[%c0_162, %c0_163] : memref<32x16xf32, #tpu.memory_space<vmem>>, vector<32x16xf32>
    %c0_164 = arith.constant 0 : index
    %c0_165 = arith.constant 0 : index
    %550 = vector.load %arg16[%c0_164, %c0_165] : memref<1x16xf32, #tpu.memory_space<vmem>>, vector<1x16xf32>
    %551 = math.sqrt %545 : vector<16x1xf32>
    %552 = math.rsqrt %545 : vector<16x1xf32>
    %cst_166 = arith.constant 0.999989986 : f32
    %553 = vector.broadcast %cst_166 : f32 to vector<16x1xf32>
    %554 = arith.minimumf %551, %553 : vector<16x1xf32>
    %555 = tpu.reciprocal %554 {approx = true} : vector<16x1xf32> -> vector<16x1xf32>
    %556 = arith.mulf %555, %552 : vector<16x1xf32>
    %cst_167 = arith.constant 9.99999974E-6 : f32
    %557 = vector.broadcast %cst_167 : f32 to vector<16x32xf32>
    %558 = arith.addf %543, %557 : vector<16x32xf32>
    %559 = vector.broadcast %556 : vector<16x1xf32> to vector<16x32xf32>
    %560 = arith.mulf %559, %558 : vector<16x32xf32>
    %cst_168 = arith.constant dense<0.000000e+00> : vector<16x32xf32>
    %561 = tpu.matmul %560, %546, %cst_168 {dimension_numbers = #tpu.dot_dimension_numbers<[1], [0], [0], [1], [0, 0, 1, 1], [], []>} : vector<16x32xf32>, vector<32x32xf32>, vector<16x32xf32> -> vector<16x32xf32>
    %cst_169 = arith.constant 9.99999974E-6 : f32
    %562 = vector.broadcast %cst_169 : f32 to vector<16x32xf32>
    %563 = arith.addf %561, %562 : vector<16x32xf32>
    %564 = arith.mulf %563, %563 : vector<16x32xf32>
    %cst_170 = arith.constant dense<0.000000e+00> : vector<16xf32>
    %565 = vector.multi_reduction <add>, %564, %cst_170 [1] : vector<16x32xf32> to vector<16xf32>
    %566 = vector.shape_cast %565 : vector<16xf32> to vector<16x1xf32>
    %567 = math.sqrt %566 : vector<16x1xf32>
    %568 = math.rsqrt %566 : vector<16x1xf32>
    %569 = math.tanh %567 : vector<16x1xf32>
    %570 = arith.mulf %569, %568 : vector<16x1xf32>
    %571 = vector.broadcast %570 : vector<16x1xf32> to vector<16x32xf32>
    %572 = arith.mulf %571, %563 : vector<16x32xf32>
    %573 = arith.mulf %568, %567 : vector<16x1xf32>
    %574 = arith.mulf %569, %573 : vector<16x1xf32>
    %cst_171 = arith.constant 0.999989986 : f32
    %575 = vector.broadcast %cst_171 : f32 to vector<16x1xf32>
    %576 = arith.cmpf ogt, %574, %575 : vector<16x1xf32>
    %cst_172 = arith.constant 1.000000e-07 : f32
    %577 = vector.broadcast %cst_172 : f32 to vector<16x1xf32>
    %578 = arith.addf %574, %577 : vector<16x1xf32>
    %579 = tpu.reciprocal %578 {approx = true} : vector<16x1xf32> -> vector<16x1xf32>
    %cst_173 = arith.constant 0.999989986 : f32
    %580 = vector.broadcast %cst_173 : f32 to vector<16x1xf32>
    %581 = arith.mulf %580, %579 : vector<16x1xf32>
    %cst_174 = arith.constant 1.000000e+00 : f32
    %582 = vector.broadcast %cst_174 : f32 to vector<16x1xf32>
    %583 = arith.select %576, %581, %582 : vector<16x1xi1>, vector<16x1xf32>
    %584 = vector.broadcast %583 : vector<16x1xf32> to vector<16x32xf32>
    %585 = arith.mulf %572, %584 : vector<16x32xf32>
    %586 = arith.mulf %574, %583 : vector<16x1xf32>
    %587 = arith.mulf %586, %586 : vector<16x1xf32>
    %cst_175 = arith.constant 9.99999974E-6 : f32
    %588 = vector.broadcast %cst_175 : f32 to vector<1x32xf32>
    %589 = arith.addf %547, %588 : vector<1x32xf32>
    %590 = arith.mulf %589, %589 : vector<1x32xf32>
    %cst_176 = arith.constant dense<0.000000e+00> : vector<1xf32>
    %591 = vector.multi_reduction <add>, %590, %cst_176 [1] : vector<1x32xf32> to vector<1xf32>
    %592 = vector.shape_cast %591 : vector<1xf32> to vector<1x1xf32>
    %593 = vector.broadcast %589 : vector<1x32xf32> to vector<16x32xf32>
    %594 = arith.mulf %585, %593 : vector<16x32xf32>
    %cst_177 = arith.constant dense<0.000000e+00> : vector<16xf32>
    %595 = vector.multi_reduction <add>, %594, %cst_177 [1] : vector<16x32xf32> to vector<16xf32>
    %596 = vector.shape_cast %595 : vector<16xf32> to vector<16x1xf32>
    %cst_178 = arith.constant 2.000000e+00 : f32
    %597 = vector.broadcast %cst_178 : f32 to vector<16x1xf32>
    %598 = arith.mulf %597, %596 : vector<16x1xf32>
    %cst_179 = arith.constant 1.000000e+00 : f32
    %599 = vector.broadcast %cst_179 : f32 to vector<16x1xf32>
    %600 = arith.addf %599, %598 : vector<16x1xf32>
    %601 = vector.broadcast %592 : vector<1x1xf32> to vector<16x1xf32>
    %602 = arith.mulf %601, %587 : vector<16x1xf32>
    %603 = arith.addf %600, %602 : vector<16x1xf32>
    %cst_180 = arith.constant 9.99999974E-6 : f32
    %604 = vector.broadcast %cst_180 : f32 to vector<16x1xf32>
    %605 = arith.addf %603, %604 : vector<16x1xf32>
    %606 = tpu.reciprocal %605 {approx = true} : vector<16x1xf32> -> vector<16x1xf32>
    %cst_181 = arith.constant 1.000000e+00 : f32
    %607 = vector.broadcast %cst_181 : f32 to vector<16x1xf32>
    %608 = arith.addf %607, %598 : vector<16x1xf32>
    %609 = vector.broadcast %592 : vector<1x1xf32> to vector<16x1xf32>
    %610 = arith.addf %608, %609 : vector<16x1xf32>
    %611 = arith.mulf %610, %606 : vector<16x1xf32>
    %612 = vector.broadcast %611 : vector<16x1xf32> to vector<16x32xf32>
    %613 = arith.mulf %612, %585 : vector<16x32xf32>
    %cst_182 = arith.constant 1.000000e+00 : f32
    %614 = vector.broadcast %cst_182 : f32 to vector<16x1xf32>
    %615 = arith.subf %614, %587 : vector<16x1xf32>
    %616 = arith.mulf %615, %606 : vector<16x1xf32>
    %617 = vector.broadcast %616 : vector<16x1xf32> to vector<16x32xf32>
    %618 = vector.broadcast %589 : vector<1x32xf32> to vector<16x32xf32>
    %619 = arith.mulf %617, %618 : vector<16x32xf32>
    %620 = arith.addf %613, %619 : vector<16x32xf32>
    %621 = arith.mulf %620, %620 : vector<16x32xf32>
    %cst_183 = arith.constant dense<0.000000e+00> : vector<16xf32>
    %622 = vector.multi_reduction <add>, %621, %cst_183 [1] : vector<16x32xf32> to vector<16xf32>
    %623 = vector.shape_cast %622 : vector<16xf32> to vector<16x1xf32>
    %624 = math.sqrt %623 : vector<16x1xf32>
    %cst_184 = arith.constant 0.999989986 : f32
    %625 = vector.broadcast %cst_184 : f32 to vector<16x1xf32>
    %626 = arith.cmpf ogt, %624, %625 : vector<16x1xf32>
    %cst_185 = arith.constant 1.000000e-07 : f32
    %627 = vector.broadcast %cst_185 : f32 to vector<16x1xf32>
    %628 = arith.addf %624, %627 : vector<16x1xf32>
    %629 = tpu.reciprocal %628 {approx = true} : vector<16x1xf32> -> vector<16x1xf32>
    %cst_186 = arith.constant 0.999989986 : f32
    %630 = vector.broadcast %cst_186 : f32 to vector<16x1xf32>
    %631 = arith.mulf %630, %629 : vector<16x1xf32>
    %cst_187 = arith.constant 1.000000e+00 : f32
    %632 = vector.broadcast %cst_187 : f32 to vector<16x1xf32>
    %633 = arith.select %626, %631, %632 : vector<16x1xi1>, vector<16x1xf32>
    %634 = vector.broadcast %633 : vector<16x1xf32> to vector<16x32xf32>
    %635 = arith.mulf %620, %634 : vector<16x32xf32>
    %636 = arith.mulf %623, %633 : vector<16x1xf32>
    %637 = arith.mulf %636, %633 : vector<16x1xf32>
    %638 = math.sqrt %637 : vector<16x1xf32>
    %639 = math.rsqrt %637 : vector<16x1xf32>
    %cst_188 = arith.constant 0.999989986 : f32
    %640 = vector.broadcast %cst_188 : f32 to vector<16x1xf32>
    %641 = arith.minimumf %638, %640 : vector<16x1xf32>
    %642 = tpu.reciprocal %641 {approx = true} : vector<16x1xf32> -> vector<16x1xf32>
    %643 = arith.mulf %642, %639 : vector<16x1xf32>
    %cst_189 = arith.constant 9.99999974E-6 : f32
    %644 = vector.broadcast %cst_189 : f32 to vector<16x32xf32>
    %645 = arith.addf %635, %644 : vector<16x32xf32>
    %646 = vector.broadcast %643 : vector<16x1xf32> to vector<16x32xf32>
    %647 = arith.mulf %646, %645 : vector<16x32xf32>
    %cst_190 = arith.constant dense<0.000000e+00> : vector<16x32xf32>
    %648 = tpu.matmul %0, %647, %cst_190 {dimension_numbers = #tpu.dot_dimension_numbers<[1], [0], [0], [1], [0, 0, 1, 1], [], []>} : vector<16x16xf32>, vector<16x32xf32>, vector<16x32xf32> -> vector<16x32xf32>
    %cst_191 = arith.constant 9.99999974E-6 : f32
    %649 = vector.broadcast %cst_191 : f32 to vector<16x32xf32>
    %650 = arith.addf %648, %649 : vector<16x32xf32>
    %651 = arith.mulf %650, %650 : vector<16x32xf32>
    %cst_192 = arith.constant dense<0.000000e+00> : vector<16xf32>
    %652 = vector.multi_reduction <add>, %651, %cst_192 [1] : vector<16x32xf32> to vector<16xf32>
    %653 = vector.shape_cast %652 : vector<16xf32> to vector<16x1xf32>
    %654 = math.sqrt %653 : vector<16x1xf32>
    %655 = math.rsqrt %653 : vector<16x1xf32>
    %656 = math.tanh %654 : vector<16x1xf32>
    %657 = arith.mulf %656, %655 : vector<16x1xf32>
    %658 = vector.broadcast %657 : vector<16x1xf32> to vector<16x32xf32>
    %659 = arith.mulf %658, %650 : vector<16x32xf32>
    %660 = arith.mulf %655, %654 : vector<16x1xf32>
    %661 = arith.mulf %656, %660 : vector<16x1xf32>
    %cst_193 = arith.constant 0.999989986 : f32
    %662 = vector.broadcast %cst_193 : f32 to vector<16x1xf32>
    %663 = arith.cmpf ogt, %661, %662 : vector<16x1xf32>
    %cst_194 = arith.constant 1.000000e-07 : f32
    %664 = vector.broadcast %cst_194 : f32 to vector<16x1xf32>
    %665 = arith.addf %661, %664 : vector<16x1xf32>
    %666 = tpu.reciprocal %665 {approx = true} : vector<16x1xf32> -> vector<16x1xf32>
    %cst_195 = arith.constant 0.999989986 : f32
    %667 = vector.broadcast %cst_195 : f32 to vector<16x1xf32>
    %668 = arith.mulf %667, %666 : vector<16x1xf32>
    %cst_196 = arith.constant 1.000000e+00 : f32
    %669 = vector.broadcast %cst_196 : f32 to vector<16x1xf32>
    %670 = arith.select %663, %668, %669 : vector<16x1xi1>, vector<16x1xf32>
    %671 = vector.broadcast %670 : vector<16x1xf32> to vector<16x32xf32>
    %672 = arith.mulf %659, %671 : vector<16x32xf32>
    %673 = arith.mulf %661, %670 : vector<16x1xf32>
    %674 = arith.mulf %673, %673 : vector<16x1xf32>
    %675 = arith.addf %545, %674 : vector<16x1xf32>
    %676 = math.sqrt %675 : vector<16x1xf32>
    %cst_197 = arith.constant 0.999989986 : f32
    %677 = vector.broadcast %cst_197 : f32 to vector<16x1xf32>
    %678 = arith.minimumf %676, %677 : vector<16x1xf32>
    %679 = tpu.reciprocal %678 {approx = true} : vector<16x1xf32> -> vector<16x1xf32>
    %680 = math.rsqrt %675 : vector<16x1xf32>
    %681 = arith.mulf %679, %680 : vector<16x1xf32>
    %cst_198 = arith.constant 9.99999974E-6 : f32
    %682 = vector.broadcast %cst_198 : f32 to vector<16x32xf32>
    %683 = arith.addf %543, %682 : vector<16x32xf32>
    %cst_199 = arith.constant dense<0.000000e+00> : vector<16x16xf32>
    %684 = tpu.matmul %683, %548, %cst_199 {dimension_numbers = #tpu.dot_dimension_numbers<[1], [0], [0], [1], [0, 0, 1, 1], [], []>} : vector<16x32xf32>, vector<32x16xf32>, vector<16x16xf32> -> vector<16x16xf32>
    %cst_200 = arith.constant 9.99999974E-6 : f32
    %685 = vector.broadcast %cst_200 : f32 to vector<16x32xf32>
    %686 = arith.addf %672, %685 : vector<16x32xf32>
    %cst_201 = arith.constant dense<0.000000e+00> : vector<16x16xf32>
    %687 = tpu.matmul %686, %549, %cst_201 {dimension_numbers = #tpu.dot_dimension_numbers<[1], [0], [0], [1], [0, 0, 1, 1], [], []>} : vector<16x32xf32>, vector<32x16xf32>, vector<16x16xf32> -> vector<16x16xf32>
    %688 = arith.addf %684, %687 : vector<16x16xf32>
    %689 = vector.broadcast %681 : vector<16x1xf32> to vector<16x16xf32>
    %690 = arith.mulf %689, %688 : vector<16x16xf32>
    %cst_202 = arith.constant 9.99999974E-6 : f32
    %691 = vector.broadcast %cst_202 : f32 to vector<16x16xf32>
    %692 = arith.addf %690, %691 : vector<16x16xf32>
    %693 = arith.mulf %692, %692 : vector<16x16xf32>
    %cst_203 = arith.constant dense<0.000000e+00> : vector<16xf32>
    %694 = vector.multi_reduction <add>, %693, %cst_203 [1] : vector<16x16xf32> to vector<16xf32>
    %695 = vector.shape_cast %694 : vector<16xf32> to vector<16x1xf32>
    %696 = math.sqrt %695 : vector<16x1xf32>
    %697 = math.rsqrt %695 : vector<16x1xf32>
    %698 = math.tanh %696 : vector<16x1xf32>
    %699 = arith.mulf %698, %697 : vector<16x1xf32>
    %700 = vector.broadcast %699 : vector<16x1xf32> to vector<16x16xf32>
    %701 = arith.mulf %700, %692 : vector<16x16xf32>
    %702 = arith.mulf %697, %696 : vector<16x1xf32>
    %703 = arith.mulf %698, %702 : vector<16x1xf32>
    %cst_204 = arith.constant 0.999989986 : f32
    %704 = vector.broadcast %cst_204 : f32 to vector<16x1xf32>
    %705 = arith.cmpf ogt, %703, %704 : vector<16x1xf32>
    %cst_205 = arith.constant 1.000000e-07 : f32
    %706 = vector.broadcast %cst_205 : f32 to vector<16x1xf32>
    %707 = arith.addf %703, %706 : vector<16x1xf32>
    %708 = tpu.reciprocal %707 {approx = true} : vector<16x1xf32> -> vector<16x1xf32>
    %cst_206 = arith.constant 0.999989986 : f32
    %709 = vector.broadcast %cst_206 : f32 to vector<16x1xf32>
    %710 = arith.mulf %709, %708 : vector<16x1xf32>
    %cst_207 = arith.constant 1.000000e+00 : f32
    %711 = vector.broadcast %cst_207 : f32 to vector<16x1xf32>
    %712 = arith.select %705, %710, %711 : vector<16x1xi1>, vector<16x1xf32>
    %713 = vector.broadcast %712 : vector<16x1xf32> to vector<16x16xf32>
    %714 = arith.mulf %701, %713 : vector<16x16xf32>
    %715 = arith.mulf %703, %712 : vector<16x1xf32>
    %716 = arith.mulf %715, %715 : vector<16x1xf32>
    %cst_208 = arith.constant 9.99999974E-6 : f32
    %717 = vector.broadcast %cst_208 : f32 to vector<1x16xf32>
    %718 = arith.addf %550, %717 : vector<1x16xf32>
    %719 = arith.mulf %718, %718 : vector<1x16xf32>
    %cst_209 = arith.constant dense<0.000000e+00> : vector<1xf32>
    %720 = vector.multi_reduction <add>, %719, %cst_209 [1] : vector<1x16xf32> to vector<1xf32>
    %721 = vector.shape_cast %720 : vector<1xf32> to vector<1x1xf32>
    %722 = vector.broadcast %718 : vector<1x16xf32> to vector<16x16xf32>
    %723 = arith.mulf %714, %722 : vector<16x16xf32>
    %cst_210 = arith.constant dense<0.000000e+00> : vector<16xf32>
    %724 = vector.multi_reduction <add>, %723, %cst_210 [1] : vector<16x16xf32> to vector<16xf32>
    %725 = vector.shape_cast %724 : vector<16xf32> to vector<16x1xf32>
    %cst_211 = arith.constant 2.000000e+00 : f32
    %726 = vector.broadcast %cst_211 : f32 to vector<16x1xf32>
    %727 = arith.mulf %726, %725 : vector<16x1xf32>
    %cst_212 = arith.constant 1.000000e+00 : f32
    %728 = vector.broadcast %cst_212 : f32 to vector<16x1xf32>
    %729 = arith.addf %728, %727 : vector<16x1xf32>
    %730 = vector.broadcast %721 : vector<1x1xf32> to vector<16x1xf32>
    %731 = arith.mulf %730, %716 : vector<16x1xf32>
    %732 = arith.addf %729, %731 : vector<16x1xf32>
    %cst_213 = arith.constant 9.99999974E-6 : f32
    %733 = vector.broadcast %cst_213 : f32 to vector<16x1xf32>
    %734 = arith.addf %732, %733 : vector<16x1xf32>
    %735 = tpu.reciprocal %734 {approx = true} : vector<16x1xf32> -> vector<16x1xf32>
    %cst_214 = arith.constant 1.000000e+00 : f32
    %736 = vector.broadcast %cst_214 : f32 to vector<16x1xf32>
    %737 = arith.addf %736, %727 : vector<16x1xf32>
    %738 = vector.broadcast %721 : vector<1x1xf32> to vector<16x1xf32>
    %739 = arith.addf %737, %738 : vector<16x1xf32>
    %740 = arith.mulf %739, %735 : vector<16x1xf32>
    %741 = vector.broadcast %740 : vector<16x1xf32> to vector<16x16xf32>
    %742 = arith.mulf %741, %714 : vector<16x16xf32>
    %cst_215 = arith.constant 1.000000e+00 : f32
    %743 = vector.broadcast %cst_215 : f32 to vector<16x1xf32>
    %744 = arith.subf %743, %716 : vector<16x1xf32>
    %745 = arith.mulf %744, %735 : vector<16x1xf32>
    %746 = vector.broadcast %745 : vector<16x1xf32> to vector<16x16xf32>
    %747 = vector.broadcast %718 : vector<1x16xf32> to vector<16x16xf32>
    %748 = arith.mulf %746, %747 : vector<16x16xf32>
    %749 = arith.addf %742, %748 : vector<16x16xf32>
    %750 = arith.mulf %749, %749 : vector<16x16xf32>
    %cst_216 = arith.constant dense<0.000000e+00> : vector<16xf32>
    %751 = vector.multi_reduction <add>, %750, %cst_216 [1] : vector<16x16xf32> to vector<16xf32>
    %752 = vector.shape_cast %751 : vector<16xf32> to vector<16x1xf32>
    %753 = math.sqrt %752 : vector<16x1xf32>
    %cst_217 = arith.constant 0.999989986 : f32
    %754 = vector.broadcast %cst_217 : f32 to vector<16x1xf32>
    %755 = arith.cmpf ogt, %753, %754 : vector<16x1xf32>
    %cst_218 = arith.constant 1.000000e-07 : f32
    %756 = vector.broadcast %cst_218 : f32 to vector<16x1xf32>
    %757 = arith.addf %753, %756 : vector<16x1xf32>
    %758 = tpu.reciprocal %757 {approx = true} : vector<16x1xf32> -> vector<16x1xf32>
    %cst_219 = arith.constant 0.999989986 : f32
    %759 = vector.broadcast %cst_219 : f32 to vector<16x1xf32>
    %760 = arith.mulf %759, %758 : vector<16x1xf32>
    %cst_220 = arith.constant 1.000000e+00 : f32
    %761 = vector.broadcast %cst_220 : f32 to vector<16x1xf32>
    %762 = arith.select %755, %760, %761 : vector<16x1xi1>, vector<16x1xf32>
    %763 = vector.broadcast %762 : vector<16x1xf32> to vector<16x16xf32>
    %764 = arith.mulf %749, %763 : vector<16x16xf32>
    %c0_221 = arith.constant 0 : index
    %c0_222 = arith.constant 0 : index
    %765 = vector.load %arg17[%c0_221, %c0_222] : memref<16x16xf32, #tpu.memory_space<vmem>>, vector<16x16xf32>
    tpu.vector_store %arg17[%c0_221, %c0_222], %764 {strides = array<i32>} : memref<16x16xf32, #tpu.memory_space<vmem>>, vector<16x16xf32>,
    return
  }
}

</mosaic_0001>

<bundles_post_ra>
// kernel: tpu_custom_call.1
= control target key start
LH: loop header
LB: loop body
LE: loop exit
PB: predicated region body
PF: predicated region fallthrough
CT: control target
= control target key end

     0   :  { %s3712_s0 = inlined_call_operand.vmem [shape: f32[16,16], index: 0, kind: input, shape index: {}]   ;;  %s3713_s1 = inlined_call_operand.hbm [shape: f32[16,16], index: 1, kind: input, shape index: {}]   ;;  %s3714_s2 = inlined_call_operand.hbm [shape: f32[16,16], index: 2, kind: input, shape index: {}]   ;;  %s3715_s3 = inlined_call_operand.vmem [shape: f32[1,16], index: 3, kind: input, shape index: {}]   ;;  %s3716_s4 = inlined_call_operand.hbm [shape: f32[16,32], index: 4, kind: input, shape index: {}]   ;;  %s3717_s5 = inlined_call_operand.hbm [shape: f32[16,32], index: 5, kind: input, shape index: {}]   ;;  %s3718_s6 = inlined_call_operand.vmem [shape: f32[1,32], index: 6, kind: input, shape index: {}]   ;;  %s3719_s7 = inlined_call_operand.vmem [shape: f32[32,32], index: 7, kind: input, shape index: {}]   ;;  %s3720_s8 = inlined_call_operand.vmem [shape: f32[1,32], index: 8, kind: input, shape index: {}]   ;;  %s3721_s9 = inlined_call_operand.vmem [shape: f32[32,32], index: 9, kind: input, shape index: {}]   ;;  %s3722_s10 = inlined_call_operand.hbm [shape: f32[32,32], index: 10, kind: input, shape index: {}]   ;;  %s3723_s11 = inlined_call_operand.vmem [shape: f32[1,32], index: 11, kind: input, shape index: {}]   ;;  %s3724_s12 = inlined_call_operand.hbm [shape: f32[32,32], index: 12, kind: input, shape index: {}]   ;;  %s3725_s13 = inlined_call_operand.vmem [shape: f32[1,32], index: 13, kind: input, shape index: {}]   ;;  %s3726_s14 = inlined_call_operand.vmem [shape: f32[32,16], index: 14, kind: input, shape index: {}]   ;;  %s3727_s15 = inlined_call_operand.vmem [shape: f32[32,16], index: 15, kind: input, shape index: {}]   ;;  %s3728_s16 = inlined_call_operand.vmem [shape: f32[1,16], index: 16, kind: input, shape index: {}]   ;;  %s3729_s17 = inlined_call_operand.hbm [shape: f32[16,16], index: 17, kind: output, shape index: {}]  }
   0x1   :  { %3731 = sst [smem:[#allocation19_spill]] %s3712_s0 }
   0x2   :  { %3732 = sst [smem:[#allocation20_spill]] %s3713_s1 }
   0x3   :  { %22 = vsyncpa [#allocation3], 0 }
   0x4   :  { %23 = vsyncpa [#allocation6], 0 }
   0x5   :  { %24 = vsyncpa [#allocation9], 0 }
   0x6   :  { %25 = vsyncpa [#allocation12], 0 }
   0x7   :  { %26 = vsyncpa [#allocation4], 0  ;;  %s46_s26 = sshll.u32 %s3714_s2, 4  ;;  %s3168_s27 = smov [#allocation5]   ;;  %s47_s26 = int_to_ptr.hbm [resolvable:$true] %s46_s26 }
   0x8   :  { %s48_s28 = sshll.u32 %s3168_s27, 4  ;;  %s74_s30 = sshll.u32 %s3717_s5, 4  ;;  %s49_s28 = int_to_ptr.vmem [resolvable:$true] %s48_s28  ;;  %s75_s30 = int_to_ptr.hbm [resolvable:$true] %s74_s30 }
   0x9   :  { %s3169_s18 = smov 128   ;;  %s3170_s19 = smov 8  }
   0xa   :  { %54 = dma.hbm_to_vmem [thread:$0]  %s47_s26, 256, %s49_s28, [#allocation6], %s3169_s18, %s3169_s18, %s3170_s19  }
   0xb   :  { %s3171_s1 = smov [#allocation8]   ;;  %s3733_s2 = sld [smem:[#allocation20_spill]] }
   0xc   :  { %s76_s20 = sshll.u32 %s3171_s1, 4  ;;  %s61_s25 = sshll.u32 %s3716_s4, 4  ;;  %s77_s20 = int_to_ptr.vmem [resolvable:$true] %s76_s20  ;;  %s62_s25 = int_to_ptr.hbm [resolvable:$true] %s61_s25 }
   0xd   :  { %82 = dma.hbm_to_vmem [thread:$0]  %s75_s30, 256, %s77_s20, [#allocation9], %s3169_s18, %s3169_s18, %s3170_s19  }
   0xe   :  { %s3172_s27 = smov [#allocation2]   ;;  %s3173_s26 = smov [#allocation7]  }
   0xf   :  { %s35_s29 = sshll.u32 %s3172_s27, 4  ;;  %s63_s28 = sshll.u32 %s3173_s26, 4  ;;  %s36_s29 = int_to_ptr.vmem [resolvable:$true] %s35_s29  ;;  %s64_s28 = int_to_ptr.vmem [resolvable:$true] %s63_s28 }
  0x10   :  { %s95_s21 = sshll.u32 %s3722_s10, 4  ;;  %s110_s20 = sshll.u32 %s3724_s12, 4  ;;  %s96_s21 = int_to_ptr.hbm [resolvable:$true] %s95_s21  ;;  %s111_s20 = int_to_ptr.hbm [resolvable:$true] %s110_s20 }
  0x11   :  { %s33_s23 = sshll.u32 %s3733_s2, 4  ;;  %s3174_s22 = smov [#allocation10]   ;;  %s34_s23 = int_to_ptr.hbm [resolvable:$true] %s33_s23 }
  0x12   :  { %41 = dma.hbm_to_vmem [thread:$0]  %s34_s23, 256, %s36_s29, [#allocation3], %s3169_s18, %s3169_s18, %s3170_s19  }
  0x13   :  { %69 = dma.hbm_to_vmem [thread:$0]  %s62_s25, 256, %s64_s28, [#allocation6], %s3169_s18, %s3169_s18, %s3170_s19  }
  0x14   :  { %s97_s2 = sshll.u32 %s3174_s22, 4  ;;  %s3175_s23 = smov [#allocation11]   ;;  %s98_s2 = int_to_ptr.vmem [resolvable:$true] %s97_s2 }
  0x15   :  { %103 = dma.hbm_to_vmem [thread:$0]  %s96_s21, 512, %s98_s2, [#allocation9], %s3169_s18, %s3169_s18, %s3170_s19  }
  0x16   :  { %s112_s10 = sshll.u32 %s3175_s23, 4  ;;  %s113_s10 = int_to_ptr.vmem [resolvable:$true] %s112_s10 }
  0x17   :  { %118 = dma.hbm_to_vmem [thread:$0]  %s111_s20, 512, %s113_s10, [#allocation12], %s3169_s18, %s3169_s18, %s3170_s19  }
  0x18   :  { %3158 = dma.done.wait [#allocation3], 256  }
  0x19   :  { %3159 = vsyncadd [#allocation3], 4294967040 }
  0x1a   :  { %3160 = dma.done.wait [#allocation6], 512  }
  0x1b   :  { %3161 = vsyncadd [#allocation6], 4294966784 }
  0x1c   :  { %3162 = dma.done.wait [#allocation9], 768  }
  0x1d   :  { %3163 = vsyncadd [#allocation9], 4294966528 }
  0x1e   :  { %3164 = dma.done.wait [#allocation12], 512  }
  0x1f   :  { %3165 = vsyncadd [#allocation12], 4294966784  ;;  %s3734_s24 = sld [smem:[#allocation19_spill]]  ;;  %vm159_vm0 = vcmask 130048   ;;  %v240_v8 = vld [vmem:[#allocation7 + $0x8] sm:$0xff]  ;;  %v239_v9 = vld [vmem:[#allocation7] sm:$0xff] }
  0x20   :  { %761 = vmatpush.msra.mxu3 %v240_v8  ;;  %v237_v27 = vld [vmem:[#allocation5 + $0x8] sm:$0xff]  ;;  %v236_v28 = vld [vmem:[#allocation5] sm:$0xff] }
  0x21   :  { %318 = vmatpush.msra.mxu0 %v237_v27 }
  0x22   :  { %762 = vmatpush.msra.mxu3 %v239_v9 }
  0x23   :  { %319 = vmatpush.msra.mxu0 %v236_v28  ;;  %v238_v28 = vld [vmem:[%s3715_s3] sm:$0x1] }
  0x25   :  { %v153_v0 = vld [vmem:[%s3734_s24] sm:$0xff]  ;;  %v154_v1 = vld [vmem:[%s3734_s24 + $0x8] sm:$0xff] }
  0x26   :  { %v3309_v2 = vadd.f32 1e-05, %v153_v0  ;;  %v3313_v4 = vadd.f32 1e-05, %v154_v1 }
  0x28   :  { %v157_v3 = vmul.f32 %v3309_v2, %v3309_v2  ;;  %v158_v6 = vmul.f32 %v3313_v4, %v3313_v4 }
  0x2a   :  { %v160_v5 = vsel %vm159_vm0, %v157_v3, 0.0  ;;  %v163_v7 = vsel %vm159_vm0, %v158_v6, 0.0 }
  0x2b   :  { %161 = vadd.xlane.f32.xlu0 %v160_v5 }
  0x33   :  { %164 = vadd.xlane.f32.xlu0 %v163_v7 }
  0x9e   :  { %v162_v10 = vpop.xlane.xlu0 %161 }
  0x9f   :  { %2682 = vrsqrt.f32 %v162_v10  ;;  %vm173_vm1 = vcmp.eq.f32.partialorder %v162_v10, inf  ;;  %v176_v22 = vand.u32 2147483648, %v162_v10  ;;  %vm175_vm2 = vcmp.eq.f32.partialorder %v162_v10, 0.0 }
  0xa0   :  { %vm196_vm4 = vweird.f32 %v162_v10 }
  0xa5   :  { %v2683_v11 = vpop.eup %2682 }
  0xa6   :  { %v165_v12 = vpop.xlane.xlu0 %164  ;;  %v167_v13 = vmul.f32 %v2683_v11, %v162_v10  ;;  %vm197_vm3 = vweird.f32 %v2683_v11 }
  0xa7   :  { %2684 = vrsqrt.f32 %v165_v12  ;;  %vm198_vm5 = vmor %vm196_vm4, %vm197_vm3  ;;  %vm185_vm6 = vcmp.eq.f32.partialorder %v165_v12, inf  ;;  %v188_v33 = vand.u32 2147483648, %v165_v12  ;;  %vm187_vm7 = vcmp.eq.f32.partialorder %v165_v12, 0.0 }
  0xa8   :  { %v168_v14 = vmul.f32 %v2683_v11, %v167_v13  ;;  %vm206_vm9 = vweird.f32 %v165_v12 }
  0xaa   :  { %v169_v15 = vmul.f32 0.5, %v168_v14 }
  0xac   :  { %v170_v16 = vsub.f32 1.5, %v169_v15 }
  0xad   :  { %v2685_v17 = vpop.eup %2684 }
  0xae   :  { %v171_v18 = vmul.f32 %v2683_v11, %v170_v16  ;;  %v179_v19 = vmul.f32 %v2685_v17, %v165_v12  ;;  %vm207_vm8 = vweird.f32 %v2685_v17 }
  0xaf   :  { %vm208_vm10 = vmor %vm206_vm9, %vm207_vm8  ;;  %vm407_vm8 = vcmask 122880  }
  0xb0   :  { %v172_v20 = vmul.f32 %v171_v18, %v162_v10  ;;  %v180_v21 = vmul.f32 %v2685_v17, %v179_v19  ;;  %v199_v30 = vsel %vm198_vm5, %v2683_v11, %v171_v18 }
  0xb2   :  { %v174_v23 = vsel %vm173_vm1, %v162_v10, %v172_v20  ;;  %v181_v24 = vmul.f32 0.5, %v180_v21 }
  0xb3   :  { %v177_v25 = vsel %vm175_vm2, %v176_v22, %v174_v23 }
  0xb4   :  { %2686 = vtanh.f32 %v177_v25  ;;  %v182_v26 = vsub.f32 1.5, %v181_v24  ;;  %v216_v32 = vmul.f32 %v199_v30, %v177_v25 }
  0xb6   :  { %v183_v29 = vmul.f32 %v2685_v17, %v182_v26 }
  0xb8   :  { %v184_v31 = vmul.f32 %v183_v29, %v165_v12  ;;  %v209_v39 = vsel %vm208_vm10, %v2685_v17, %v183_v29  ;;  %v3348_v29 = vadd.f32 1e-05, %v238_v28 }
  0xba   :  { %v2687_v34 = vpop.eup %2686  ;;  %v186_v35 = vsel %vm185_vm6, %v165_v12, %v184_v31 }
  0xbb   :  { %v218_v36 = vmul.f32 %v2687_v34, %v216_v32  ;;  %v189_v37 = vsel %vm187_vm7, %v188_v33, %v186_v35  ;;  %v212_v42 = vmul.f32 %v2687_v34, %v199_v30  ;;  %v406_v30 = vmul.f32 %v3348_v29, %v3348_v29 }
  0xbc   :  { %2688 = vtanh.f32 %v189_v37  ;;  %v217_v40 = vmul.f32 %v209_v39, %v189_v37 }
  0xbd   :  { %v222_v38 = vadd.f32 1e-07, %v218_v36  ;;  %v214_v47 = vmul.f32 %v212_v42, %v3309_v2  ;;  %vm220_vm11 = vcmp.gt.f32.partialorder %v218_v36, 0.99999  ;;  %v408_v31 = vsel %vm407_vm8, %v406_v30, 0.0 }
  0xbe   :  { %409 = vadd.xlane.f32.xlu2 %v408_v31 }
  0xbf   :  { %2690 = vrcp.f32 %v222_v38 }
  0xc2   :  { %v2689_v41 = vpop.eup %2688 }
  0xc3   :  { %v219_v43 = vmul.f32 %v2689_v41, %v217_v40  ;;  %v213_v53 = vmul.f32 %v2689_v41, %v209_v39 }
  0xc5   :  { %v2691_v44 = vpop.eup %2690  ;;  %v223_v45 = vadd.f32 1e-07, %v219_v43  ;;  %v215_v56 = vmul.f32 %v213_v53, %v3313_v4  ;;  %vm221_vm12 = vcmp.gt.f32.partialorder %v219_v43, 0.99999 }
  0xc6   :  { %v226_v46 = vmul.f32 0.99999, %v2691_v44 }
  0xc7   :  { %2692 = vrcp.f32 %v223_v45 }
  0xc8   :  { %v228_v48 = vsel %vm220_vm11, %v226_v46, 1.0 }
  0xc9   :  { %v230_v49 = vmul.f32 %v228_v48, %v214_v47  ;;  %v232_v50 = vmul.f32 %v228_v48, %v218_v36 }
  0xcb   :  { %v3320_v51 = vmul.f32 %v232_v50, %v232_v50  ;;  %v294_v52 = vadd.f32 1e-05, %v230_v49 }
  0xcd   :  { %v2693_v54 = vpop.eup %2692  ;;  %2694 = vrsqrt.f32 %v3320_v51  ;;  %2655 = vmatmul.msk.f32.vlgmr.msra.gmra.mxu3 %vm159_vm0, %v294_v52  ;;  %vm251_vm13 = vcmp.eq.f32.partialorder %v3320_v51, inf  ;;  %v254_v8 = vand.u32 2147483648, %v3320_v51  ;;  %vm253_vm14 = vcmp.eq.f32.partialorder %v3320_v51, 0.0 }
  0xce   :  { %v227_v55 = vmul.f32 0.99999, %v2693_v54  ;;  %vm274_vm2 = vweird.f32 %v3320_v51 }
  0xd0   :  { %v229_v57 = vsel %vm221_vm12, %v227_v55, 1.0 }
  0xd1   :  { %v231_v58 = vmul.f32 %v229_v57, %v215_v56  ;;  %v233_v59 = vmul.f32 %v229_v57, %v219_v43 }
  0xd3   :  { %v2695_v60 = vpop.eup %2694  ;;  %v3325_v61 = vmul.f32 %v233_v59, %v233_v59  ;;  %v295_v62 = vadd.f32 1e-05, %v231_v58 }
  0xd4   :  { %v245_v63 = vmul.f32 %v2695_v60, %v3320_v51  ;;  %vm275_vm15 = vweird.f32 %v2695_v60 }
  0xd5   :  { %2696 = vrsqrt.f32 %v3325_v61  ;;  %2656 = vmatmul.msk.f32.gmra.mxu3 %vm159_vm0, %v295_v62  ;;  %vm263_vm1 = vcmp.eq.f32.partialorder %v3325_v61, inf  ;;  %v266_v16 = vand.u32 2147483648, %v3325_v61  ;;  %vm265_vm3 = vcmp.eq.f32.partialorder %v3325_v61, 0.0  ;;  %vm276_vm4 = vmor %vm274_vm2, %vm275_vm15 }
  0xd6   :  { %v246_v0 = vmul.f32 %v2695_v60, %v245_v63  ;;  %vm284_vm6 = vweird.f32 %v3325_v61 }
  0xd8   :  { %v247_v1 = vmul.f32 0.5, %v246_v0 }
  0xda   :  { %v248_v2 = vsub.f32 1.5, %v247_v1 }
  0xdb   :  { %v2697_v3 = vpop.eup %2696 }
  0xdc   :  { %v249_v5 = vmul.f32 %v2695_v60, %v248_v2  ;;  %v257_v4 = vmul.f32 %v2697_v3, %v3325_v61  ;;  %vm285_vm5 = vweird.f32 %v2697_v3 }
  0xdd   :  { %vm286_vm7 = vmor %vm284_vm6, %vm285_vm5 }
  0xde   :  { %v250_v6 = vmul.f32 %v249_v5, %v3320_v51  ;;  %v258_v7 = vmul.f32 %v2697_v3, %v257_v4  ;;  %v277_v20 = vsel %vm276_vm4, %v2695_v60, %v249_v5 }
  0xe0   :  { %v252_v9 = vsel %vm251_vm13, %v3320_v51, %v250_v6  ;;  %v259_v10 = vmul.f32 0.5, %v258_v7 }
  0xe1   :  { %v255_v11 = vsel %vm253_vm14, %v254_v8, %v252_v9 }
  0xe2   :  { %v288_v12 = vmin.f32 %v255_v11, 0.99999  ;;  %v260_v13 = vsub.f32 1.5, %v259_v10 }
  0xe4   :  { %2698 = vrcp.f32 %v288_v12  ;;  %v261_v14 = vmul.f32 %v2697_v3, %v260_v13  ;;  %v412_v13 = vperm.slane %v3348_v29, 0 }
  0xe6   :  { %v262_v15 = vmul.f32 %v261_v14, %v3325_v61  ;;  %v287_v25 = vsel %vm286_vm7, %v2697_v3, %v261_v14 }
  0xe8   :  { %v264_v17 = vsel %vm263_vm1, %v3325_v61, %v262_v15 }
  0xe9   :  { %v267_v18 = vsel %vm265_vm3, %v266_v16, %v264_v17 }
  0xea   :  { %v2699_v19 = vpop.eup %2698  ;;  %v289_v21 = vmin.f32 %v267_v18, 0.99999 }
  0xeb   :  { %v292_v22 = vmul.f32 %v2699_v19, %v277_v20 }
  0xec   :  { %2700 = vrcp.f32 %v289_v21 }
  0xed   :  { %v296_v23 = vmul.f32 %v294_v52, %v292_v22 }
  0xef   :  { %2649 = vmatmul.msk.f32.vlgmr.msra.gmra.mxu0 %vm159_vm0, %v296_v23 }
  0xf2   :  { %v2701_v24 = vpop.eup %2700 }
  0xf3   :  { %v293_v26 = vmul.f32 %v2701_v24, %v287_v25 }
  0xf5   :  { %v297_v27 = vmul.f32 %v295_v62, %v293_v26 }
  0xf7   :  { %2650 = vmatmul.msk.f32.gmra.mxu0 %vm159_vm0, %v297_v27 }
 0x131   :  { %v410_v29 = vpop.xlane.xlu2 %409 }
 0x132   :  { %v426_v30 = vperm.slane %v410_v29, 0 }
 0x16c   :  { %v321_v32 = vpop.f32.mrf.mxu0 }
 0x16d   :  { %v3353_v36 = vadd.f32 1e-05, %v321_v32 }
 0x16f   :  { %v327_v38 = vmul.f32 %v3353_v36, %v3353_v36 }
 0x171   :  { %v329_v39 = vsel %vm159_vm0, %v327_v38, 0.0 }
 0x174   :  { %v324_v33 = vpop.f32.mrf.mxu0 }
 0x175   :  { %v325_v34 = vadd.f32 1e-05, %v324_v33 }
 0x177   :  { %v328_v35 = vmul.f32 %v325_v34, %v325_v34 }
 0x179   :  { %v332_v37 = vsel %vm159_vm0, %v328_v35, 0.0 }
 0x17a   :  { %333 = vadd.xlane.f32.xlu1 %v332_v37 }
 0x182   :  { %330 = vadd.xlane.f32.xlu1 %v329_v39 }
 0x1ed   :  { %v334_v40 = vpop.xlane.xlu1 %333 }
 0x1ee   :  { %2702 = vrsqrt.f32 %v334_v40  ;;  %vm354_vm9 = vcmp.eq.f32.partialorder %v334_v40, inf  ;;  %v357_v53 = vand.u32 2147483648, %v334_v40  ;;  %vm356_vm10 = vcmp.eq.f32.partialorder %v334_v40, 0.0 }
 0x1ef   :  { %vm375_vm12 = vweird.f32 %v334_v40 }
 0x1f4   :  { %v2703_v41 = vpop.eup %2702 }
 0x1f5   :  { %v331_v42 = vpop.xlane.xlu1 %330  ;;  %v348_v43 = vmul.f32 %v2703_v41, %v334_v40  ;;  %vm376_vm11 = vweird.f32 %v2703_v41 }
 0x1f6   :  { %2704 = vrsqrt.f32 %v331_v42  ;;  %vm377_vm13 = vmor %vm375_vm12, %vm376_vm11  ;;  %vm342_vm14 = vcmp.eq.f32.partialorder %v331_v42, inf  ;;  %v345_v63 = vand.u32 2147483648, %v331_v42  ;;  %vm344_vm15 = vcmp.eq.f32.partialorder %v331_v42, 0.0 }
 0x1f7   :  { %v349_v44 = vmul.f32 %v2703_v41, %v348_v43  ;;  %vm365_vm2 = vweird.f32 %v331_v42 }
 0x1f9   :  { %v350_v45 = vmul.f32 0.5, %v349_v44 }
 0x1fb   :  { %v351_v46 = vsub.f32 1.5, %v350_v45 }
 0x1fc   :  { %v2705_v47 = vpop.eup %2704 }
 0x1fd   :  { %v352_v48 = vmul.f32 %v2703_v41, %v351_v46  ;;  %v336_v49 = vmul.f32 %v2705_v47, %v331_v42  ;;  %vm366_vm1 = vweird.f32 %v2705_v47 }
 0x1fe   :  { %vm367_vm3 = vmor %vm365_vm2, %vm366_vm1 }
 0x1ff   :  { %v353_v50 = vmul.f32 %v352_v48, %v334_v40  ;;  %v337_v52 = vmul.f32 %v2705_v47, %v336_v49  ;;  %v378_v59 = vsel %vm377_vm13, %v2703_v41, %v352_v48 }
 0x201   :  { %v355_v54 = vsel %vm354_vm9, %v334_v40, %v353_v50  ;;  %v338_v55 = vmul.f32 0.5, %v337_v52 }
 0x202   :  { %v358_v56 = vsel %vm356_vm10, %v357_v53, %v355_v54 }
 0x203   :  { %2706 = vtanh.f32 %v358_v56  ;;  %v339_v57 = vsub.f32 1.5, %v338_v55  ;;  %v386_v62 = vmul.f32 %v378_v59, %v358_v56 }
 0x205   :  { %v340_v58 = vmul.f32 %v2705_v47, %v339_v57 }
 0x207   :  { %v341_v60 = vmul.f32 %v340_v58, %v331_v42  ;;  %v368_v4 = vsel %vm367_vm3, %v2705_v47, %v340_v58 }
 0x209   :  { %v2707_v0 = vpop.eup %2706  ;;  %v343_v1 = vsel %vm342_vm14, %v331_v42, %v341_v60 }
 0x20a   :  { %v388_v2 = vmul.f32 %v2707_v0, %v386_v62  ;;  %v346_v3 = vsel %vm344_vm15, %v345_v63, %v343_v1  ;;  %v382_v8 = vmul.f32 %v2707_v0, %v378_v59 }
 0x20b   :  { %2708 = vtanh.f32 %v346_v3  ;;  %v385_v6 = vmul.f32 %v368_v4, %v346_v3 }
 0x20c   :  { %v392_v5 = vadd.f32 1e-07, %v388_v2  ;;  %v384_v14 = vmul.f32 %v382_v8, %v325_v34  ;;  %vm390_vm4 = vcmp.gt.f32.partialorder %v388_v2, 0.99999 }
 0x20e   :  { %2710 = vrcp.f32 %v392_v5 }
 0x211   :  { %v2709_v7 = vpop.eup %2708 }
 0x212   :  { %v387_v9 = vmul.f32 %v2709_v7, %v385_v6  ;;  %v381_v19 = vmul.f32 %v2709_v7, %v368_v4 }
 0x214   :  { %v2711_v10 = vpop.eup %2710  ;;  %v391_v11 = vadd.f32 1e-07, %v387_v9  ;;  %v383_v23 = vmul.f32 %v381_v19, %v3353_v36  ;;  %vm389_vm5 = vcmp.gt.f32.partialorder %v387_v9, 0.99999 }
 0x215   :  { %v396_v12 = vmul.f32 0.99999, %v2711_v10 }
 0x216   :  { %2712 = vrcp.f32 %v391_v11 }
 0x217   :  { %v398_v15 = vsel %vm390_vm4, %v396_v12, 1.0 }
 0x218   :  { %v400_v16 = vmul.f32 %v398_v15, %v384_v14  ;;  %v402_v17 = vmul.f32 %v398_v15, %v388_v2 }
 0x21a   :  { %v415_v18 = vmul.f32 %v412_v13, %v400_v16  ;;  %v404_v31 = vmul.f32 %v402_v17, %v402_v17 }
 0x21c   :  { %v2713_v20 = vpop.eup %2712  ;;  %v419_v21 = vsel %vm159_vm0, %v415_v18, 0.0  ;;  %v428_v34 = vmul.f32 %v426_v30, %v404_v31  ;;  %v442_v44 = vsub.f32 1.0, %v404_v31 }
 0x21d   :  { %420 = vadd.xlane.f32.xlu2 %v419_v21  ;;  %v395_v22 = vmul.f32 0.99999, %v2713_v20 }
 0x21f   :  { %v397_v24 = vsel %vm389_vm5, %v395_v22, 1.0 }
 0x220   :  { %v399_v25 = vmul.f32 %v397_v24, %v383_v23  ;;  %v401_v26 = vmul.f32 %v397_v24, %v387_v9 }
 0x222   :  { %v414_v27 = vmul.f32 %v412_v13, %v399_v25  ;;  %v403_v39 = vmul.f32 %v401_v26, %v401_v26 }
 0x224   :  { %v416_v28 = vsel %vm159_vm0, %v414_v27, 0.0  ;;  %v427_v41 = vmul.f32 %v426_v30, %v403_v39  ;;  %v441_v54 = vsub.f32 1.0, %v403_v39 }
 0x225   :  { %417 = vadd.xlane.f32.xlu0 %v416_v28 }
 0x290   :  { %v421_v32 = vpop.xlane.xlu2 %420 }
 0x291   :  { %v423_v33 = vmul.f32 2.0, %v421_v32 }
 0x293   :  { %v425_v35 = vadd.f32 1.0, %v423_v33 }
 0x295   :  { %v430_v37 = vadd.f32 %v428_v34, %v425_v35  ;;  %v436_v45 = vadd.f32 %v426_v30, %v425_v35 }
 0x297   :  { %v432_v38 = vadd.f32 1e-05, %v430_v37 }
 0x298   :  { %v418_v40 = vpop.xlane.xlu0 %417 }
 0x299   :  { %2714 = vrcp.f32 %v432_v38  ;;  %v422_v36 = vmul.f32 2.0, %v418_v40 }
 0x29b   :  { %v424_v42 = vadd.f32 1.0, %v422_v36 }
 0x29d   :  { %v429_v43 = vadd.f32 %v427_v41, %v424_v42  ;;  %v435_v55 = vadd.f32 %v426_v30, %v424_v42 }
 0x29f   :  { %v2715_v46 = vpop.eup %2714  ;;  %v431_v47 = vadd.f32 1e-05, %v429_v43 }
 0x2a0   :  { %v438_v48 = vmul.f32 %v2715_v46, %v436_v45  ;;  %v444_v49 = vmul.f32 %v2715_v46, %v442_v44 }
 0x2a1   :  { %2716 = vrcp.f32 %v431_v47 }
 0x2a2   :  { %v440_v50 = vmul.f32 %v438_v48, %v400_v16  ;;  %v446_v52 = vmul.f32 %v444_v49, %v412_v13 }
 0x2a4   :  { %v3363_v53 = vadd.f32 %v446_v52, %v440_v50 }
 0x2a6   :  { %v450_v56 = vmul.f32 %v3363_v53, %v3363_v53 }
 0x2a7   :  { %v2717_v57 = vpop.eup %2716 }
 0x2a8   :  { %v437_v58 = vmul.f32 %v2717_v57, %v435_v55  ;;  %v454_v59 = vsel %vm159_vm0, %v450_v56, 0.0  ;;  %v443_v60 = vmul.f32 %v2717_v57, %v441_v54 }
 0x2a9   :  { %455 = vadd.xlane.f32.xlu1 %v454_v59 }
 0x2aa   :  { %v439_v62 = vmul.f32 %v437_v58, %v399_v25  ;;  %v445_v63 = vmul.f32 %v443_v60, %v412_v13 }
 0x2ac   :  { %v3368_v0 = vadd.f32 %v445_v63, %v439_v62 }
 0x2ae   :  { %v449_v1 = vmul.f32 %v3368_v0, %v3368_v0 }
 0x2b0   :  { %v451_v2 = vsel %vm159_vm0, %v449_v1, 0.0 }
 0x2b1   :  { %452 = vadd.xlane.f32.xlu2 %v451_v2 }
 0x31c   :  { %v456_v3 = vpop.xlane.xlu1 %455 }
 0x31d   :  { %2718 = vrsqrt.f32 %v456_v3  ;;  %vm476_vm6 = vcmp.eq.f32.partialorder %v456_v3, inf  ;;  %v479_v15 = vand.u32 2147483648, %v456_v3  ;;  %vm478_vm7 = vcmp.eq.f32.partialorder %v456_v3, 0.0 }
 0x323   :  { %v2719_v5 = vpop.eup %2718 }
 0x324   :  { %v470_v4 = vmul.f32 %v2719_v5, %v456_v3  ;;  %v453_v6 = vpop.xlane.xlu2 %452 }
 0x325   :  { %2720 = vrsqrt.f32 %v453_v6  ;;  %vm464_vm9 = vcmp.eq.f32.partialorder %v453_v6, inf  ;;  %v467_v23 = vand.u32 2147483648, %v453_v6  ;;  %vm466_vm10 = vcmp.eq.f32.partialorder %v453_v6, 0.0 }
 0x326   :  { %v471_v7 = vmul.f32 %v2719_v5, %v470_v4 }
 0x328   :  { %v472_v8 = vmul.f32 0.5, %v471_v7 }
 0x32a   :  { %v473_v9 = vsub.f32 1.5, %v472_v8 }
 0x32b   :  { %v2721_v10 = vpop.eup %2720 }
 0x32c   :  { %v458_v11 = vmul.f32 %v2721_v10, %v453_v6  ;;  %v474_v12 = vmul.f32 %v2719_v5, %v473_v9 }
 0x32e   :  { %v475_v13 = vmul.f32 %v474_v12, %v456_v3  ;;  %v459_v14 = vmul.f32 %v2721_v10, %v458_v11  ;;  %v152_v11 = vld [vmem:[#allocation2 + $0x8] sm:$0xff] }
 0x330   :  { %v477_v16 = vsel %vm476_vm6, %v456_v3, %v475_v13  ;;  %v460_v17 = vmul.f32 0.5, %v459_v14 }
 0x331   :  { %v480_v18 = vsel %vm478_vm7, %v479_v15, %v477_v16 }
 0x332   :  { %v484_v19 = vadd.f32 1e-07, %v480_v18  ;;  %v461_v20 = vsub.f32 1.5, %v460_v17  ;;  %vm482_vm11 = vcmp.gt.f32.partialorder %v480_v18, 0.99999 }
 0x334   :  { %2722 = vrcp.f32 %v484_v19  ;;  %v462_v21 = vmul.f32 %v2721_v10, %v461_v20  ;;  %v151_v10 = vld [vmem:[#allocation2] sm:$0xff]  ;;  %v242_v19 = vld [vmem:[#allocation8 + $0x8] sm:$0xff]  ;;  %v241_v20 = vld [vmem:[#allocation8] sm:$0xff] }
 0x335   :  { %732 = vmatpush.msra.mxu2 %v242_v19 }
 0x336   :  { %v463_v22 = vmul.f32 %v462_v21, %v453_v6 }
 0x337   :  { %733 = vmatpush.msra.mxu2 %v241_v20 }
 0x338   :  { %v465_v24 = vsel %vm464_vm9, %v453_v6, %v463_v22 }
 0x339   :  { %v468_v25 = vsel %vm466_vm10, %v467_v23, %v465_v24 }
 0x33a   :  { %v2723_v26 = vpop.eup %2722  ;;  %v483_v27 = vadd.f32 1e-07, %v468_v25  ;;  %vm481_vm12 = vcmp.gt.f32.partialorder %v468_v25, 0.99999 }
 0x33b   :  { %v488_v28 = vmul.f32 0.99999, %v2723_v26 }
 0x33c   :  { %2724 = vrcp.f32 %v483_v27 }
 0x33d   :  { %v490_v29 = vsel %vm482_vm11, %v488_v28, 1.0 }
 0x33e   :  { %v494_v30 = vmul.f32 %v490_v29, %v456_v3  ;;  %v492_v57 = vmul.f32 %v490_v29, %v3363_v53 }
 0x340   :  { %v496_v31 = vmul.f32 %v494_v30, %v490_v29  ;;  %v548_v3 = vadd.f32 1e-05, %v492_v57 }
 0x342   :  { %v2725_v32 = vpop.eup %2724  ;;  %2726 = vrsqrt.f32 %v496_v31  ;;  %vm516_vm13 = vcmp.eq.f32.partialorder %v496_v31, inf  ;;  %v519_v47 = vand.u32 2147483648, %v496_v31  ;;  %vm518_vm14 = vcmp.eq.f32.partialorder %v496_v31, 0.0 }
 0x343   :  { %v487_v33 = vmul.f32 0.99999, %v2725_v32  ;;  %vm537_vm2 = vweird.f32 %v496_v31 }
 0x345   :  { %v489_v34 = vsel %vm481_vm12, %v487_v33, 1.0 }
 0x346   :  { %v493_v35 = vmul.f32 %v489_v34, %v453_v6  ;;  %v491_v4 = vmul.f32 %v489_v34, %v3368_v0 }
 0x348   :  { %v2727_v37 = vpop.eup %2726  ;;  %v495_v38 = vmul.f32 %v493_v35, %v489_v34  ;;  %v547_v8 = vadd.f32 1e-05, %v491_v4 }
 0x349   :  { %v510_v39 = vmul.f32 %v2727_v37, %v496_v31  ;;  %vm538_vm15 = vweird.f32 %v2727_v37 }
 0x34a   :  { %2728 = vrsqrt.f32 %v495_v38  ;;  %vm504_vm1 = vcmp.eq.f32.partialorder %v495_v38, inf  ;;  %v507_v58 = vand.u32 2147483648, %v495_v38  ;;  %vm506_vm3 = vcmp.eq.f32.partialorder %v495_v38, 0.0  ;;  %vm539_vm4 = vmor %vm537_vm2, %vm538_vm15 }
 0x34b   :  { %v511_v40 = vmul.f32 %v2727_v37, %v510_v39  ;;  %vm527_vm6 = vweird.f32 %v495_v38 }
 0x34d   :  { %v512_v36 = vmul.f32 0.5, %v511_v40 }
 0x34f   :  { %v513_v41 = vsub.f32 1.5, %v512_v36 }
 0x350   :  { %v2729_v42 = vpop.eup %2728 }
 0x351   :  { %v514_v43 = vmul.f32 %v2727_v37, %v513_v41  ;;  %v498_v44 = vmul.f32 %v2729_v42, %v495_v38  ;;  %vm528_vm5 = vweird.f32 %v2729_v42 }
 0x352   :  { %vm529_vm7 = vmor %vm527_vm6, %vm528_vm5 }
 0x353   :  { %v515_v45 = vmul.f32 %v514_v43, %v496_v31  ;;  %v499_v46 = vmul.f32 %v2729_v42, %v498_v44  ;;  %v540_v63 = vsel %vm539_vm4, %v2727_v37, %v514_v43 }
 0x355   :  { %v517_v48 = vsel %vm516_vm13, %v496_v31, %v515_v45  ;;  %v500_v49 = vmul.f32 0.5, %v499_v46 }
 0x356   :  { %v520_v50 = vsel %vm518_vm14, %v519_v47, %v517_v48 }
 0x357   :  { %v542_v52 = vmin.f32 %v520_v50, 0.99999  ;;  %v501_v54 = vsub.f32 1.5, %v500_v49 }
 0x359   :  { %2730 = vrcp.f32 %v542_v52  ;;  %v502_v55 = vmul.f32 %v2729_v42, %v501_v54 }
 0x35b   :  { %v503_v56 = vmul.f32 %v502_v55, %v495_v38  ;;  %v530_v6 = vsel %vm529_vm7, %v2729_v42, %v502_v55 }
 0x35d   :  { %v505_v59 = vsel %vm504_vm1, %v495_v38, %v503_v56 }
 0x35e   :  { %v508_v60 = vsel %vm506_vm3, %v507_v58, %v505_v59 }
 0x35f   :  { %v2731_v62 = vpop.eup %2730  ;;  %v541_v1 = vmin.f32 %v508_v60, 0.99999 }
 0x360   :  { %v546_v2 = vmul.f32 %v2731_v62, %v540_v63 }
 0x361   :  { %2732 = vrcp.f32 %v541_v1 }
 0x362   :  { %v550_v5 = vmul.f32 %v548_v3, %v546_v2 }
 0x364   :  { %571 = vmatpush.msra.mxu1 %v550_v5 }
 0x367   :  { %v2733_v53 = vpop.eup %2732 }
 0x368   :  { %v545_v7 = vmul.f32 %v2733_v53, %v530_v6 }
 0x36a   :  { %v549_v9 = vmul.f32 %v547_v8, %v545_v7 }
 0x36c   :  { %572 = vmatpush.msra.mxu1 %v549_v9 }
 0x36d   :  { %2651 = vmatmul.msk.f32.vlgmr.msra.gmra.mxu1 %vm159_vm0, %v151_v10 }
 0x375   :  { %2652 = vmatmul.msk.f32.gmra.mxu1 %vm159_vm0, %v152_v11 }
 0x3ea   :  { %v574_v12 = vpop.f32.mrf.mxu1 }
 0x3eb   :  { %v3377_v13 = vadd.f32 1e-05, %v574_v12 }
 0x3ed   :  { %v580_v0 = vmul.f32 %v3377_v13, %v3377_v13 }
 0x3ef   :  { %v582_v14 = vsel %vm159_vm0, %v580_v0, 0.0 }
 0x3f0   :  { %583 = vadd.xlane.f32.xlu0 %v582_v14 }
 0x3f2   :  { %v577_v15 = vpop.f32.mrf.mxu1 }
 0x3f3   :  { %v3382_v16 = vadd.f32 1e-05, %v577_v15 }
 0x3f5   :  { %v581_v17 = vmul.f32 %v3382_v16, %v3382_v16 }
 0x3f7   :  { %v585_v18 = vsel %vm159_vm0, %v581_v17, 0.0 }
 0x3f8   :  { %586 = vadd.xlane.f32.xlu1 %v585_v18 }
 0x463   :  { %v584_v21 = vpop.xlane.xlu0 %583 }
 0x464   :  { %2734 = vrsqrt.f32 %v584_v21  ;;  %vm595_vm9 = vcmp.eq.f32.partialorder %v584_v21, inf  ;;  %v598_v33 = vand.u32 2147483648, %v584_v21  ;;  %vm597_vm10 = vcmp.eq.f32.partialorder %v584_v21, 0.0 }
 0x465   :  { %vm618_vm12 = vweird.f32 %v584_v21 }
 0x46a   :  { %v2735_v22 = vpop.eup %2734 }
 0x46b   :  { %v587_v23 = vpop.xlane.xlu1 %586  ;;  %v589_v24 = vmul.f32 %v2735_v22, %v584_v21  ;;  %vm619_vm11 = vweird.f32 %v2735_v22 }
 0x46c   :  { %2736 = vrsqrt.f32 %v587_v23  ;;  %vm620_vm13 = vmor %vm618_vm12, %vm619_vm11  ;;  %vm607_vm14 = vcmp.eq.f32.partialorder %v587_v23, inf  ;;  %v610_v42 = vand.u32 2147483648, %v587_v23  ;;  %vm609_vm15 = vcmp.eq.f32.partialorder %v587_v23, 0.0 }
 0x46d   :  { %v590_v25 = vmul.f32 %v2735_v22, %v589_v24  ;;  %vm628_vm2 = vweird.f32 %v587_v23 }
 0x46f   :  { %v591_v26 = vmul.f32 0.5, %v590_v25 }
 0x471   :  { %v592_v27 = vsub.f32 1.5, %v591_v26  ;;  %v243_v26 = vld [vmem:[%s3718_s6] sm:$0x1] }
 0x472   :  { %v2737_v28 = vpop.eup %2736 }
 0x473   :  { %v593_v29 = vmul.f32 %v2735_v22, %v592_v27  ;;  %v601_v30 = vmul.f32 %v2737_v28, %v587_v23  ;;  %vm629_vm1 = vweird.f32 %v2737_v28  ;;  %v3396_v27 = vadd.f32 1e-05, %v243_v26 }
 0x474   :  { %vm630_vm3 = vmor %vm628_vm2, %vm629_vm1  ;;  %vm776_vm2 = vcmask 261120  }
 0x475   :  { %v594_v31 = vmul.f32 %v593_v29, %v584_v21  ;;  %v602_v32 = vmul.f32 %v2737_v28, %v601_v30  ;;  %v621_v40 = vsel %vm620_vm13, %v2735_v22, %v593_v29  ;;  %v854_v29 = vmul.f32 %v3396_v27, %v3396_v27 }
 0x476   :  { %v860_v26 = vperm.slane %v3396_v27, 0 }
 0x477   :  { %v596_v34 = vsel %vm595_vm9, %v584_v21, %v594_v31  ;;  %v603_v35 = vmul.f32 0.5, %v602_v32  ;;  %vm855_vm9 = vcmask 253952  }
 0x478   :  { %v599_v37 = vsel %vm597_vm10, %v598_v33, %v596_v34  ;;  %v856_v32 = vsel %vm855_vm9, %v854_v29, 0.0 }
 0x479   :  { %2738 = vtanh.f32 %v599_v37  ;;  %v604_v38 = vsub.f32 1.5, %v603_v35  ;;  %v638_v41 = vmul.f32 %v621_v40, %v599_v37  ;;  %857 = vadd.xlane.f32.xlu1 %v856_v32  ;;  %v764_v37 = vpop.f32.mrf.mxu3 }
 0x47b   :  { %v605_v39 = vmul.f32 %v2737_v28, %v604_v38 }
 0x47d   :  { %v606_v36 = vmul.f32 %v605_v39, %v587_v23  ;;  %v631_v48 = vsel %vm630_vm3, %v2737_v28, %v605_v39 }
 0x47f   :  { %v2739_v43 = vpop.eup %2738  ;;  %v608_v44 = vsel %vm607_vm14, %v587_v23, %v606_v36 }
 0x480   :  { %v640_v45 = vmul.f32 %v2739_v43, %v638_v41  ;;  %v611_v46 = vsel %vm609_vm15, %v610_v42, %v608_v44  ;;  %v634_v52 = vmul.f32 %v2739_v43, %v621_v40 }
 0x481   :  { %2740 = vtanh.f32 %v611_v46  ;;  %v639_v49 = vmul.f32 %v631_v48, %v611_v46 }
 0x482   :  { %v644_v47 = vadd.f32 1e-07, %v640_v45  ;;  %v636_v58 = vmul.f32 %v634_v52, %v3377_v13  ;;  %vm642_vm4 = vcmp.gt.f32.partialorder %v640_v45, 0.99999 }
 0x484   :  { %2742 = vrcp.f32 %v644_v47 }
 0x487   :  { %v2741_v50 = vpop.eup %2740 }
 0x488   :  { %v641_v54 = vmul.f32 %v2741_v50, %v639_v49  ;;  %v635_v1 = vmul.f32 %v2741_v50, %v631_v48 }
 0x48a   :  { %v2743_v55 = vpop.eup %2742  ;;  %v645_v56 = vadd.f32 1e-07, %v641_v54  ;;  %v637_v5 = vmul.f32 %v635_v1, %v3382_v16  ;;  %vm643_vm5 = vcmp.gt.f32.partialorder %v641_v54, 0.99999 }
 0x48b   :  { %v648_v57 = vmul.f32 0.99999, %v2743_v55 }
 0x48c   :  { %2744 = vrcp.f32 %v645_v56 }
 0x48d   :  { %v650_v59 = vsel %vm642_vm4, %v648_v57, 1.0 }
 0x48e   :  { %v652_v60 = vmul.f32 %v650_v59, %v636_v58  ;;  %v654_v62 = vmul.f32 %v650_v59, %v640_v45  ;;  %v767_v45 = vpop.f32.mrf.mxu3 }
 0x490   :  { %v710_v63 = vadd.f32 1e-05, %v652_v60  ;;  %v656_v8 = vmul.f32 %v654_v62, %v654_v62 }
 0x492   :  { %v2745_v2 = vpop.eup %2744  ;;  %2653 = vmatmul.msk.f32.vlgmr.msra.gmra.mxu2 %vm159_vm0, %v710_v63  ;;  %v658_v9 = vadd.f32 %v656_v8, %v3320_v51 }
 0x493   :  { %v649_v3 = vmul.f32 0.99999, %v2745_v2 }
 0x494   :  { %2746 = vrsqrt.f32 %v658_v9  ;;  %vm667_vm6 = vcmp.eq.f32.partialorder %v658_v9, inf  ;;  %v670_v24 = vand.u32 2147483648, %v658_v9  ;;  %vm669_vm7 = vcmp.eq.f32.partialorder %v658_v9, 0.0 }
 0x495   :  { %v651_v4 = vsel %vm643_vm5, %v649_v3, 1.0  ;;  %vm694_vm13 = vweird.f32 %v658_v9 }
 0x496   :  { %v653_v53 = vmul.f32 %v651_v4, %v637_v5  ;;  %v655_v6 = vmul.f32 %v651_v4, %v641_v54 }
 0x498   :  { %v711_v7 = vadd.f32 1e-05, %v653_v53  ;;  %v657_v10 = vmul.f32 %v655_v6, %v655_v6 }
 0x49a   :  { %2654 = vmatmul.msk.f32.gmra.mxu2 %vm159_vm0, %v711_v7  ;;  %v659_v11 = vadd.f32 %v657_v10, %v3325_v61  ;;  %v2747_v12 = vpop.eup %2746 }
 0x49b   :  { %v661_v13 = vmul.f32 %v2747_v12, %v658_v9  ;;  %vm695_vm12 = vweird.f32 %v2747_v12 }
 0x49c   :  { %2748 = vrsqrt.f32 %v659_v11  ;;  %vm679_vm10 = vcmp.eq.f32.partialorder %v659_v11, inf  ;;  %v682_v31 = vand.u32 2147483648, %v659_v11  ;;  %vm681_vm11 = vcmp.eq.f32.partialorder %v659_v11, 0.0  ;;  %vm696_vm14 = vmor %vm694_vm13, %vm695_vm12 }
 0x49d   :  { %v662_v0 = vmul.f32 %v2747_v12, %v661_v13  ;;  %vm704_vm1 = vweird.f32 %v659_v11 }
 0x49f   :  { %v663_v15 = vmul.f32 0.5, %v662_v0 }
 0x4a1   :  { %v664_v17 = vsub.f32 1.5, %v663_v15 }
 0x4a2   :  { %v2749_v14 = vpop.eup %2748 }
 0x4a3   :  { %v673_v16 = vmul.f32 %v2749_v14, %v659_v11  ;;  %v665_v19 = vmul.f32 %v2747_v12, %v664_v17  ;;  %vm705_vm15 = vweird.f32 %v2749_v14 }
 0x4a4   :  { %vm706_vm3 = vmor %vm704_vm1, %vm705_vm15 }
 0x4a5   :  { %v674_v18 = vmul.f32 %v2749_v14, %v673_v16  ;;  %v666_v21 = vmul.f32 %v665_v19, %v658_v9  ;;  %v697_v38 = vsel %vm696_vm14, %v2747_v12, %v665_v19 }
 0x4a7   :  { %v675_v20 = vmul.f32 0.5, %v674_v18  ;;  %v668_v23 = vsel %vm667_vm6, %v658_v9, %v666_v21 }
 0x4a8   :  { %v671_v25 = vsel %vm669_vm7, %v670_v24, %v668_v23 }
 0x4a9   :  { %v676_v22 = vsub.f32 1.5, %v675_v20  ;;  %v684_v28 = vmin.f32 %v671_v25, 0.99999 }
 0x4ab   :  { %v677_v51 = vmul.f32 %v2749_v14, %v676_v22  ;;  %2750 = vrcp.f32 %v684_v28 }
 0x4ad   :  { %v678_v61 = vmul.f32 %v677_v51, %v659_v11  ;;  %v707_v46 = vsel %vm706_vm3, %v2749_v14, %v677_v51 }
 0x4af   :  { %v680_v30 = vsel %vm679_vm10, %v659_v11, %v678_v61 }
 0x4b0   :  { %v683_v33 = vsel %vm681_vm11, %v682_v31, %v680_v30 }
 0x4b1   :  { %v685_v34 = vmin.f32 %v683_v33, 0.99999  ;;  %v2751_v35 = vpop.eup %2750 }
 0x4b2   :  { %v708_v40 = vmul.f32 %v2751_v35, %v697_v38 }
 0x4b3   :  { %2752 = vrcp.f32 %v685_v34 }
 0x4b9   :  { %v2753_v43 = vpop.eup %2752 }
 0x4ba   :  { %v709_v48 = vmul.f32 %v2753_v43, %v707_v46 }
 0x515   :  { %v735_v39 = vpop.f32.mrf.mxu2 }
 0x516   :  { %v765_v36 = vadd.f32 %v764_v37, %v735_v39 }
 0x518   :  { %v770_v41 = vmul.f32 %v765_v36, %v708_v40 }
 0x51a   :  { %v3401_v42 = vadd.f32 1e-05, %v770_v41 }
 0x51c   :  { %v774_v44 = vmul.f32 %v3401_v42, %v3401_v42 }
 0x51d   :  { %v738_v47 = vpop.f32.mrf.mxu2 }
 0x51e   :  { %v768_v49 = vadd.f32 %v767_v45, %v738_v47  ;;  %v777_v50 = vsel %vm776_vm2, %v774_v44, 0.0 }
 0x51f   :  { %778 = vadd.xlane.f32.xlu2 %v777_v50 }
 0x520   :  { %v771_v52 = vmul.f32 %v768_v49, %v709_v48 }
 0x522   :  { %v3406_v54 = vadd.f32 1e-05, %v771_v52 }
 0x524   :  { %v775_v55 = vmul.f32 %v3406_v54, %v3406_v54 }
 0x526   :  { %v780_v56 = vsel %vm776_vm2, %v775_v55, 0.0 }
 0x527   :  { %781 = vadd.xlane.f32.xlu0 %v780_v56 }
 0x592   :  { %v779_v57 = vpop.xlane.xlu2 %778 }
 0x593   :  { %2754 = vrsqrt.f32 %v779_v57  ;;  %vm790_vm4 = vcmp.eq.f32.partialorder %v779_v57, inf  ;;  %v793_v6 = vand.u32 2147483648, %v779_v57  ;;  %vm792_vm5 = vcmp.eq.f32.partialorder %v779_v57, 0.0 }
 0x594   :  { %vm813_vm7 = vweird.f32 %v779_v57 }
 0x599   :  { %v2755_v58 = vpop.eup %2754 }
 0x59a   :  { %v782_v59 = vpop.xlane.xlu0 %781  ;;  %v784_v60 = vmul.f32 %v2755_v58, %v779_v57  ;;  %vm814_vm6 = vweird.f32 %v2755_v58 }
 0x59b   :  { %2756 = vrsqrt.f32 %v782_v59  ;;  %vm815_vm10 = vmor %vm813_vm7, %vm814_vm6  ;;  %vm802_vm11 = vcmp.eq.f32.partialorder %v782_v59, inf  ;;  %v805_v14 = vand.u32 2147483648, %v782_v59  ;;  %vm804_vm12 = vcmp.eq.f32.partialorder %v782_v59, 0.0 }
 0x59c   :  { %v785_v62 = vmul.f32 %v2755_v58, %v784_v60  ;;  %vm823_vm14 = vweird.f32 %v782_v59 }
 0x59e   :  { %v786_v63 = vmul.f32 0.5, %v785_v62 }
 0x5a0   :  { %v787_v1 = vsub.f32 1.5, %v786_v63 }
 0x5a1   :  { %v2757_v2 = vpop.eup %2756 }
 0x5a2   :  { %v788_v3 = vmul.f32 %v2755_v58, %v787_v1  ;;  %v796_v5 = vmul.f32 %v2757_v2, %v782_v59  ;;  %vm824_vm13 = vweird.f32 %v2757_v2 }
 0x5a3   :  { %vm825_vm15 = vmor %vm823_vm14, %vm824_vm13 }
 0x5a4   :  { %v789_v4 = vmul.f32 %v788_v3, %v779_v57  ;;  %v797_v53 = vmul.f32 %v2757_v2, %v796_v5  ;;  %v816_v12 = vsel %vm815_vm10, %v2755_v58, %v788_v3 }
 0x5a6   :  { %v791_v7 = vsel %vm790_vm4, %v779_v57, %v789_v4  ;;  %v798_v8 = vmul.f32 0.5, %v797_v53 }
 0x5a7   :  { %v794_v9 = vsel %vm792_vm5, %v793_v6, %v791_v7 }
 0x5a8   :  { %2758 = vtanh.f32 %v794_v9  ;;  %v799_v10 = vsub.f32 1.5, %v798_v8  ;;  %v833_v0 = vmul.f32 %v816_v12, %v794_v9 }
 0x5aa   :  { %v800_v11 = vmul.f32 %v2757_v2, %v799_v10 }
 0x5ac   :  { %v801_v13 = vmul.f32 %v800_v11, %v782_v59  ;;  %v826_v20 = vsel %vm825_vm15, %v2757_v2, %v800_v11 }
 0x5ae   :  { %v2759_v15 = vpop.eup %2758  ;;  %v803_v16 = vsel %vm802_vm11, %v782_v59, %v801_v13 }
 0x5af   :  { %v835_v17 = vmul.f32 %v2759_v15, %v833_v0  ;;  %v806_v18 = vsel %vm804_vm12, %v805_v14, %v803_v16  ;;  %v829_v23 = vmul.f32 %v2759_v15, %v816_v12 }
 0x5b0   :  { %2760 = vtanh.f32 %v806_v18  ;;  %v834_v21 = vmul.f32 %v826_v20, %v806_v18 }
 0x5b1   :  { %v839_v19 = vadd.f32 1e-07, %v835_v17  ;;  %v831_v28 = vmul.f32 %v829_v23, %v3401_v42  ;;  %vm837_vm1 = vcmp.gt.f32.partialorder %v835_v17, 0.99999  ;;  %v858_v42 = vpop.xlane.xlu1 %857 }
 0x5b2   :  { %v874_v43 = vperm.slane %v858_v42, 0 }
 0x5b3   :  { %2762 = vrcp.f32 %v839_v19 }
 0x5b6   :  { %v2761_v22 = vpop.eup %2760 }
 0x5b7   :  { %v836_v51 = vmul.f32 %v2761_v22, %v834_v21  ;;  %v830_v33 = vmul.f32 %v2761_v22, %v826_v20 }
 0x5b9   :  { %v2763_v24 = vpop.eup %2762  ;;  %v840_v25 = vadd.f32 1e-07, %v836_v51  ;;  %v832_v38 = vmul.f32 %v830_v33, %v3406_v54  ;;  %vm838_vm3 = vcmp.gt.f32.partialorder %v836_v51, 0.99999 }
 0x5ba   :  { %v843_v61 = vmul.f32 0.99999, %v2763_v24 }
 0x5bb   :  { %2764 = vrcp.f32 %v840_v25 }
 0x5bc   :  { %v845_v29 = vsel %vm837_vm1, %v843_v61, 1.0 }
 0x5bd   :  { %v847_v30 = vmul.f32 %v845_v29, %v831_v28  ;;  %v849_v31 = vmul.f32 %v845_v29, %v835_v17 }
 0x5bf   :  { %v862_v32 = vmul.f32 %v860_v26, %v847_v30  ;;  %v851_v44 = vmul.f32 %v849_v31, %v849_v31 }
 0x5c1   :  { %v2765_v34 = vpop.eup %2764  ;;  %v864_v35 = vsel %vm776_vm2, %v862_v32, 0.0  ;;  %v875_v47 = vmul.f32 %v874_v43, %v851_v44  ;;  %v889_v59 = vsub.f32 1.0, %v851_v44 }
 0x5c2   :  { %865 = vadd.xlane.f32.xlu2 %v864_v35  ;;  %v844_v37 = vmul.f32 0.99999, %v2765_v34 }
 0x5c4   :  { %v846_v39 = vsel %vm838_vm3, %v844_v37, 1.0 }
 0x5c5   :  { %v848_v40 = vmul.f32 %v846_v39, %v832_v38  ;;  %v850_v27 = vmul.f32 %v846_v39, %v836_v51 }
 0x5c7   :  { %v863_v36 = vmul.f32 %v860_v26, %v848_v40  ;;  %v852_v52 = vmul.f32 %v850_v27, %v850_v27 }
 0x5c9   :  { %v867_v41 = vsel %vm776_vm2, %v863_v36, 0.0  ;;  %v876_v56 = vmul.f32 %v874_v43, %v852_v52  ;;  %v890_v53 = vsub.f32 1.0, %v852_v52 }
 0x5ca   :  { %868 = vadd.xlane.f32.xlu0 %v867_v41 }
 0x635   :  { %v866_v45 = vpop.xlane.xlu2 %865 }
 0x636   :  { %v870_v46 = vmul.f32 2.0, %v866_v45 }
 0x638   :  { %v872_v48 = vadd.f32 1.0, %v870_v46 }
 0x63a   :  { %v877_v49 = vadd.f32 %v875_v47, %v872_v48  ;;  %v883_v60 = vadd.f32 %v874_v43, %v872_v48 }
 0x63c   :  { %v879_v50 = vadd.f32 1e-05, %v877_v49 }
 0x63d   :  { %v869_v55 = vpop.xlane.xlu0 %868 }
 0x63e   :  { %2766 = vrcp.f32 %v879_v50  ;;  %v871_v54 = vmul.f32 2.0, %v869_v55 }
 0x640   :  { %v873_v57 = vadd.f32 1.0, %v871_v54 }
 0x642   :  { %v878_v58 = vadd.f32 %v876_v56, %v873_v57  ;;  %v884_v6 = vadd.f32 %v874_v43, %v873_v57 }
 0x644   :  { %v2767_v62 = vpop.eup %2766  ;;  %v880_v63 = vadd.f32 1e-05, %v878_v58 }
 0x645   :  { %v885_v1 = vmul.f32 %v2767_v62, %v883_v60  ;;  %v891_v2 = vmul.f32 %v2767_v62, %v889_v59 }
 0x646   :  { %2768 = vrcp.f32 %v880_v63 }
 0x647   :  { %v887_v3 = vmul.f32 %v885_v1, %v847_v30  ;;  %v893_v5 = vmul.f32 %v891_v2, %v860_v26 }
 0x649   :  { %v3416_v4 = vadd.f32 %v893_v5, %v887_v3 }
 0x64b   :  { %v897_v7 = vmul.f32 %v3416_v4, %v3416_v4 }
 0x64c   :  { %v2769_v8 = vpop.eup %2768 }
 0x64d   :  { %v886_v9 = vmul.f32 %v2769_v8, %v884_v6  ;;  %v899_v10 = vsel %vm776_vm2, %v897_v7, 0.0  ;;  %v892_v11 = vmul.f32 %v2769_v8, %v890_v53 }
 0x64e   :  { %900 = vadd.xlane.f32.xlu1 %v899_v10 }
 0x64f   :  { %v888_v12 = vmul.f32 %v886_v9, %v848_v40  ;;  %v894_v13 = vmul.f32 %v892_v11, %v860_v26 }
 0x651   :  { %v3421_v0 = vadd.f32 %v894_v13, %v888_v12 }
 0x653   :  { %v898_v14 = vmul.f32 %v3421_v0, %v3421_v0 }
 0x655   :  { %v902_v15 = vsel %vm776_vm2, %v898_v14, 0.0 }
 0x656   :  { %903 = vadd.xlane.f32.xlu2 %v902_v15 }
 0x6c1   :  { %v901_v16 = vpop.xlane.xlu1 %900 }
 0x6c2   :  { %2770 = vrsqrt.f32 %v901_v16  ;;  %vm912_vm4 = vcmp.eq.f32.partialorder %v901_v16, inf  ;;  %v915_v26 = vand.u32 2147483648, %v901_v16  ;;  %vm914_vm5 = vcmp.eq.f32.partialorder %v901_v16, 0.0 }
 0x6c8   :  { %v2771_v17 = vpop.eup %2770 }
 0x6c9   :  { %v906_v18 = vmul.f32 %v2771_v17, %v901_v16  ;;  %v904_v19 = vpop.xlane.xlu2 %903 }
 0x6ca   :  { %2772 = vrsqrt.f32 %v904_v19  ;;  %vm924_vm6 = vcmp.eq.f32.partialorder %v904_v19, inf  ;;  %v927_v35 = vand.u32 2147483648, %v904_v19  ;;  %vm926_vm7 = vcmp.eq.f32.partialorder %v904_v19, 0.0 }
 0x6cb   :  { %v907_v20 = vmul.f32 %v2771_v17, %v906_v18 }
 0x6cd   :  { %v908_v21 = vmul.f32 0.5, %v907_v20 }
 0x6cf   :  { %v909_v22 = vsub.f32 1.5, %v908_v21 }
 0x6d0   :  { %v2773_v23 = vpop.eup %2772 }
 0x6d1   :  { %v918_v51 = vmul.f32 %v2773_v23, %v904_v19  ;;  %v910_v24 = vmul.f32 %v2771_v17, %v909_v22 }
 0x6d3   :  { %v919_v25 = vmul.f32 %v2773_v23, %v918_v51  ;;  %v911_v61 = vmul.f32 %v910_v24, %v901_v16 }
 0x6d5   :  { %v920_v28 = vmul.f32 0.5, %v919_v25  ;;  %v913_v29 = vsel %vm912_vm4, %v901_v16, %v911_v61 }
 0x6d6   :  { %v916_v30 = vsel %vm914_vm5, %v915_v26, %v913_v29  ;;  %v1089_v26 = vld [vmem:[%s3721_s9 + $0x18] sm:$0xff]  ;;  %v1087_v29 = vld [vmem:[%s3721_s9 + $0x8] sm:$0xff] }
 0x6d7   :  { %v921_v31 = vsub.f32 1.5, %v920_v28  ;;  %v931_v32 = vadd.f32 1e-07, %v916_v30  ;;  %vm929_vm10 = vcmp.gt.f32.partialorder %v916_v30, 0.99999  ;;  %v1088_v28 = vld [vmem:[%s3721_s9 + $0x10] sm:$0xff]  ;;  %1603 = vmatpush.msrb.mxu3 %v1089_v26 }
 0x6d8   :  { %v1086_v30 = vld [vmem:[%s3721_s9] sm:$0xff] }
 0x6d9   :  { %2774 = vrcp.f32 %v931_v32  ;;  %v922_v33 = vmul.f32 %v2773_v23, %v921_v31  ;;  %1604 = vmatpush.msrb.mxu3 %v1088_v28 }
 0x6db   :  { %v923_v34 = vmul.f32 %v922_v33, %v904_v19  ;;  %1605 = vmatpush.msrb.mxu3 %v1087_v29 }
 0x6dd   :  { %v925_v37 = vsel %vm924_vm6, %v904_v19, %v923_v34  ;;  %1606 = vmatpush.msrb.mxu3 %v1086_v30 }
 0x6de   :  { %v928_v38 = vsel %vm926_vm7, %v927_v35, %v925_v37 }
 0x6df   :  { %v2775_v39 = vpop.eup %2774  ;;  %v932_v40 = vadd.f32 1e-07, %v928_v38  ;;  %vm930_vm11 = vcmp.gt.f32.partialorder %v928_v38, 0.99999 }
 0x6e0   :  { %v935_v27 = vmul.f32 0.99999, %v2775_v39 }
 0x6e1   :  { %2776 = vrcp.f32 %v932_v40 }
 0x6e2   :  { %v937_v36 = vsel %vm929_vm10, %v935_v27, 1.0 }
 0x6e3   :  { %v941_v41 = vmul.f32 %v937_v36, %v901_v16  ;;  %v939_v6 = vmul.f32 %v937_v36, %v3416_v4 }
 0x6e5   :  { %v943_v42 = vmul.f32 %v941_v41, %v937_v36  ;;  %v995_v14 = vadd.f32 1e-05, %v939_v6 }
 0x6e7   :  { %v2777_v43 = vpop.eup %2776  ;;  %2778 = vrsqrt.f32 %v943_v42  ;;  %vm952_vm12 = vcmp.eq.f32.partialorder %v943_v42, inf  ;;  %v955_v60 = vand.u32 2147483648, %v943_v42  ;;  %vm954_vm13 = vcmp.eq.f32.partialorder %v943_v42, 0.0 }
 0x6e8   :  { %v936_v44 = vmul.f32 0.99999, %v2777_v43  ;;  %vm975_vm1 = vweird.f32 %v943_v42 }
 0x6ea   :  { %v938_v45 = vsel %vm930_vm11, %v936_v44, 1.0 }
 0x6eb   :  { %v942_v46 = vmul.f32 %v938_v45, %v904_v19  ;;  %v940_v17 = vmul.f32 %v938_v45, %v3421_v0 }
 0x6ed   :  { %v2779_v47 = vpop.eup %2778  ;;  %v944_v48 = vmul.f32 %v942_v46, %v938_v45  ;;  %v996_v22 = vadd.f32 1e-05, %v940_v17 }
 0x6ee   :  { %v946_v49 = vmul.f32 %v2779_v47, %v943_v42  ;;  %vm976_vm14 = vweird.f32 %v2779_v47 }
 0x6ef   :  { %2780 = vrsqrt.f32 %v944_v48  ;;  %vm964_vm15 = vcmp.eq.f32.partialorder %v944_v48, inf  ;;  %v967_v7 = vand.u32 2147483648, %v944_v48  ;;  %vm966_vm3 = vcmp.eq.f32.partialorder %v944_v48, 0.0  ;;  %vm977_vm4 = vmor %vm975_vm1, %vm976_vm14 }
 0x6f0   :  { %v947_v50 = vmul.f32 %v2779_v47, %v946_v49  ;;  %vm985_vm6 = vweird.f32 %v944_v48 }
 0x6f2   :  { %v948_v52 = vmul.f32 0.5, %v947_v50  ;;  %v1082_v50 = vld [vmem:[%s3719_s7 + $0x8] sm:$0xff] }
 0x6f4   :  { %v949_v55 = vsub.f32 1.5, %v948_v52 }
 0x6f5   :  { %v2781_v54 = vpop.eup %2780 }
 0x6f6   :  { %v950_v56 = vmul.f32 %v2779_v47, %v949_v55  ;;  %v958_v57 = vmul.f32 %v2781_v54, %v944_v48  ;;  %vm986_vm5 = vweird.f32 %v2781_v54 }
 0x6f7   :  { %vm987_vm7 = vmor %vm985_vm6, %vm986_vm5 }
 0x6f8   :  { %v951_v58 = vmul.f32 %v950_v56, %v943_v42  ;;  %v959_v59 = vmul.f32 %v2781_v54, %v958_v57  ;;  %v978_v11 = vsel %vm977_vm4, %v2779_v47, %v950_v56  ;;  %v1084_v47 = vld [vmem:[%s3719_s7 + $0x18] sm:$0xff]  ;;  %v1081_v57 = vld [vmem:[%s3719_s7] sm:$0xff] }
 0x6f9   :  { %1167 = vmatpush.msrb.mxu0 %v1084_v47 }
 0x6fa   :  { %v953_v62 = vsel %vm952_vm12, %v943_v42, %v951_v58  ;;  %v960_v63 = vmul.f32 0.5, %v959_v59 }
 0x6fb   :  { %v956_v1 = vsel %vm954_vm13, %v955_v60, %v953_v62 }
 0x6fc   :  { %v989_v2 = vmin.f32 %v956_v1, 0.99999  ;;  %v961_v3 = vsub.f32 1.5, %v960_v63 }
 0x6fe   :  { %2782 = vrcp.f32 %v989_v2  ;;  %v962_v5 = vmul.f32 %v2781_v54, %v961_v3 }
 0x700   :  { %v963_v53 = vmul.f32 %v962_v5, %v944_v48  ;;  %v988_v19 = vsel %vm987_vm7, %v2781_v54, %v962_v5 }
 0x702   :  { %v965_v8 = vsel %vm964_vm15, %v944_v48, %v963_v53  ;;  %v1083_v48 = vld [vmem:[%s3719_s7 + $0x10] sm:$0xff]  ;;  %s2633_s7 = sshll.u32 %s3729_s17, 4  ;;  %s2634_s7 = int_to_ptr.hbm [resolvable:$true] %s2633_s7 }
 0x703   :  { %v968_v9 = vsel %vm966_vm3, %v967_v7, %v965_v8  ;;  %1168 = vmatpush.msrb.mxu0 %v1083_v48 }
 0x704   :  { %v2783_v10 = vpop.eup %2782  ;;  %v990_v12 = vmin.f32 %v968_v9, 0.99999 }
 0x705   :  { %v993_v13 = vmul.f32 %v2783_v10, %v978_v11  ;;  %1169 = vmatpush.msrb.mxu0 %v1082_v50  ;;  %v1085_v50 = vld [vmem:[%s3720_s8] sm:$0x1] }
 0x706   :  { %2784 = vrcp.f32 %v990_v12 }
 0x707   :  { %v997_v15 = vmul.f32 %v995_v14, %v993_v13  ;;  %1170 = vmatpush.msrb.mxu0 %v1081_v57 }
 0x709   :  { %v999_v16 = vmax.f32 %v997_v15, 0.0 }
 0x70b   :  { %v3428_v4 = vadd.f32 1e-05, %v999_v16 }
 0x70c   :  { %v2785_v18 = vpop.eup %2784 }
 0x70d   :  { %v1003_v20 = vmul.f32 %v3428_v4, %v3428_v4  ;;  %v994_v21 = vmul.f32 %v2785_v18, %v988_v19 }
 0x70f   :  { %v1005_v23 = vsel %vm776_vm2, %v1003_v20, 0.0  ;;  %v998_v51 = vmul.f32 %v996_v22, %v994_v21 }
 0x710   :  { %1006 = vadd.xlane.f32.xlu0 %v1005_v23 }
 0x711   :  { %v1000_v24 = vmax.f32 %v998_v51, 0.0 }
 0x713   :  { %v3433_v25 = vadd.f32 1e-05, %v1000_v24 }
 0x715   :  { %v1004_v0 = vmul.f32 %v3433_v25, %v3433_v25 }
 0x717   :  { %v1008_v61 = vsel %vm776_vm2, %v1004_v0, 0.0 }
 0x718   :  { %1009 = vadd.xlane.f32.xlu1 %v1008_v61 }
 0x783   :  { %v1007_v31 = vpop.xlane.xlu0 %1006 }
 0x784   :  { %2786 = vrsqrt.f32 %v1007_v31  ;;  %vm1018_vm10 = vcmp.eq.f32.partialorder %v1007_v31, inf  ;;  %v1021_v42 = vand.u32 2147483648, %v1007_v31  ;;  %vm1020_vm11 = vcmp.eq.f32.partialorder %v1007_v31, 0.0 }
 0x785   :  { %vm1041_vm13 = vweird.f32 %v1007_v31 }
 0x78a   :  { %v2787_v32 = vpop.eup %2786 }
 0x78b   :  { %v1012_v33 = vmul.f32 %v2787_v32, %v1007_v31  ;;  %v1010_v34 = vpop.xlane.xlu1 %1009  ;;  %vm1042_vm12 = vweird.f32 %v2787_v32 }
 0x78c   :  { %2788 = vrsqrt.f32 %v1010_v34  ;;  %vm1043_vm14 = vmor %vm1041_vm13, %vm1042_vm12  ;;  %vm1030_vm15 = vcmp.eq.f32.partialorder %v1010_v34, inf  ;;  %v1033_v56 = vand.u32 2147483648, %v1010_v34  ;;  %vm1032_vm1 = vcmp.eq.f32.partialorder %v1010_v34, 0.0 }
 0x78d   :  { %v1013_v35 = vmul.f32 %v2787_v32, %v1012_v33  ;;  %vm1051_vm4 = vweird.f32 %v1010_v34 }
 0x78f   :  { %v1014_v37 = vmul.f32 0.5, %v1013_v35 }
 0x791   :  { %v1015_v38 = vsub.f32 1.5, %v1014_v37 }
 0x792   :  { %v2789_v39 = vpop.eup %2788 }
 0x793   :  { %v1016_v40 = vmul.f32 %v2787_v32, %v1015_v38  ;;  %v1024_v27 = vmul.f32 %v2789_v39, %v1010_v34  ;;  %vm1052_vm3 = vweird.f32 %v2789_v39 }
 0x794   :  { %vm1053_vm5 = vmor %vm1051_vm4, %vm1052_vm3 }
 0x795   :  { %v1017_v36 = vmul.f32 %v1016_v40, %v1007_v31  ;;  %v1025_v41 = vmul.f32 %v2789_v39, %v1024_v27  ;;  %v1044_v52 = vsel %vm1043_vm14, %v2787_v32, %v1016_v40 }
 0x797   :  { %v1019_v43 = vsel %vm1018_vm10, %v1007_v31, %v1017_v36  ;;  %v1026_v44 = vmul.f32 0.5, %v1025_v41 }
 0x798   :  { %v1022_v45 = vsel %vm1020_vm11, %v1021_v42, %v1019_v43 }
 0x799   :  { %2790 = vtanh.f32 %v1022_v45  ;;  %v1027_v46 = vsub.f32 1.5, %v1026_v44  ;;  %v1061_v54 = vmul.f32 %v1044_v52, %v1022_v45 }
 0x79b   :  { %v1028_v49 = vmul.f32 %v2789_v39, %v1027_v46 }
 0x79d   :  { %v1029_v55 = vmul.f32 %v1028_v49, %v1010_v34  ;;  %v1054_v1 = vsel %vm1053_vm5, %v2789_v39, %v1028_v49 }
 0x79f   :  { %v2791_v58 = vpop.eup %2790  ;;  %v1031_v59 = vsel %vm1030_vm15, %v1010_v34, %v1029_v55 }
 0x7a0   :  { %v1063_v60 = vmul.f32 %v2791_v58, %v1061_v54  ;;  %v1034_v62 = vsel %vm1032_vm1, %v1033_v56, %v1031_v59  ;;  %v1057_v5 = vmul.f32 %v2791_v58, %v1044_v52  ;;  %v3491_v52 = vadd.f32 1e-05, %v1085_v50 }
 0x7a1   :  { %2792 = vtanh.f32 %v1034_v62  ;;  %v1062_v2 = vmul.f32 %v1054_v1, %v1034_v62 }
 0x7a2   :  { %v1067_v63 = vadd.f32 1e-07, %v1063_v60  ;;  %v1059_v9 = vmul.f32 %v1057_v5, %v3428_v4  ;;  %vm1065_vm6 = vcmp.gt.f32.partialorder %v1063_v60, 0.99999  ;;  %v1257_v55 = vmul.f32 %v3491_v52, %v3491_v52 }
 0x7a4   :  { %2794 = vrcp.f32 %v1067_v63  ;;  %v1258_v54 = vsel %vm855_vm9, %v1257_v55, 0.0 }
 0x7a5   :  { %1259 = vadd.xlane.f32.xlu1 %v1258_v54 }
 0x7a7   :  { %v2793_v3 = vpop.eup %2792 }
 0x7a8   :  { %v1064_v53 = vmul.f32 %v2793_v3, %v1062_v2  ;;  %v1058_v15 = vmul.f32 %v2793_v3, %v1054_v1 }
 0x7aa   :  { %v2795_v6 = vpop.eup %2794  ;;  %v1068_v7 = vadd.f32 1e-07, %v1064_v53  ;;  %v1060_v18 = vmul.f32 %v1058_v15, %v3433_v25  ;;  %vm1066_vm7 = vcmp.gt.f32.partialorder %v1064_v53, 0.99999 }
 0x7ab   :  { %v1071_v8 = vmul.f32 0.99999, %v2795_v6 }
 0x7ac   :  { %2796 = vrcp.f32 %v1068_v7 }
 0x7ad   :  { %v1073_v10 = vsel %vm1065_vm6, %v1071_v8, 1.0 }
 0x7ae   :  { %v1075_v11 = vmul.f32 %v1073_v10, %v1059_v9  ;;  %v1077_v12 = vmul.f32 %v1073_v10, %v1063_v60 }
 0x7b0   :  { %v3463_v13 = vmul.f32 %v1077_v12, %v1077_v12  ;;  %v1145_v14 = vadd.f32 1e-05, %v1075_v11 }
 0x7b2   :  { %v2797_v16 = vpop.eup %2796  ;;  %2798 = vrsqrt.f32 %v3463_v13  ;;  %2663 = vmatmul.msk.f32.vlgmr.msrb.gmra.mxu3 %vm776_vm2, %v1145_v14  ;;  %vm1102_vm10 = vcmp.eq.f32.partialorder %v3463_v13, inf  ;;  %v1105_v31 = vand.u32 2147483648, %v3463_v13  ;;  %vm1104_vm11 = vcmp.eq.f32.partialorder %v3463_v13, 0.0 }
 0x7b3   :  { %v1072_v17 = vmul.f32 0.99999, %v2797_v16  ;;  %vm1125_vm14 = vweird.f32 %v3463_v13 }
 0x7b5   :  { %v1074_v19 = vsel %vm1066_vm7, %v1072_v17, 1.0 }
 0x7b6   :  { %v1076_v4 = vmul.f32 %v1074_v19, %v1060_v18  ;;  %v1078_v20 = vmul.f32 %v1074_v19, %v1064_v53 }
 0x7b8   :  { %v2799_v21 = vpop.eup %2798  ;;  %v3468_v22 = vmul.f32 %v1078_v20, %v1078_v20  ;;  %v1146_v23 = vadd.f32 1e-05, %v1076_v4 }
 0x7b9   :  { %v1096_v51 = vmul.f32 %v2799_v21, %v3463_v13  ;;  %vm1126_vm12 = vweird.f32 %v2799_v21 }
 0x7ba   :  { %2800 = vrsqrt.f32 %v3468_v22  ;;  %2664 = vmatmul.msk.f32.gmra.mxu3 %vm776_vm2, %v1146_v23  ;;  %vm1114_vm13 = vcmp.eq.f32.partialorder %v3468_v22, inf  ;;  %v1117_v40 = vand.u32 2147483648, %v3468_v22  ;;  %vm1116_vm15 = vcmp.eq.f32.partialorder %v3468_v22, 0.0  ;;  %vm1127_vm1 = vmor %vm1125_vm14, %vm1126_vm12 }
 0x7bb   :  { %v1097_v24 = vmul.f32 %v2799_v21, %v1096_v51  ;;  %vm1135_vm4 = vweird.f32 %v3468_v22 }
 0x7bd   :  { %v1098_v0 = vmul.f32 0.5, %v1097_v24 }
 0x7bf   :  { %v1099_v61 = vsub.f32 1.5, %v1098_v0 }
 0x7c0   :  { %v2801_v26 = vpop.eup %2800 }
 0x7c1   :  { %v1100_v28 = vmul.f32 %v2799_v21, %v1099_v61  ;;  %v1108_v25 = vmul.f32 %v2801_v26, %v3468_v22  ;;  %vm1136_vm3 = vweird.f32 %v2801_v26 }
 0x7c2   :  { %vm1137_vm5 = vmor %vm1135_vm4, %vm1136_vm3 }
 0x7c3   :  { %v1101_v29 = vmul.f32 %v1100_v28, %v3463_v13  ;;  %v1109_v30 = vmul.f32 %v2801_v26, %v1108_v25  ;;  %v1128_v42 = vsel %vm1127_vm1, %v2799_v21, %v1100_v28 }
 0x7c5   :  { %v1103_v32 = vsel %vm1102_vm10, %v3463_v13, %v1101_v29  ;;  %v1110_v33 = vmul.f32 0.5, %v1109_v30 }
 0x7c6   :  { %v1106_v34 = vsel %vm1104_vm11, %v1105_v31, %v1103_v32 }
 0x7c7   :  { %v1139_v35 = vmin.f32 %v1106_v34, 0.99999  ;;  %v1111_v37 = vsub.f32 1.5, %v1110_v33 }
 0x7c9   :  { %2802 = vrcp.f32 %v1139_v35  ;;  %v1112_v38 = vmul.f32 %v2801_v26, %v1111_v37  ;;  %v1262_v37 = vperm.slane %v3491_v52, 0 }
 0x7cb   :  { %v1113_v39 = vmul.f32 %v1112_v38, %v3468_v22  ;;  %v1138_v47 = vsel %vm1137_vm5, %v2801_v26, %v1112_v38 }
 0x7cd   :  { %v1115_v27 = vsel %vm1114_vm13, %v3468_v22, %v1113_v39 }
 0x7ce   :  { %v1118_v36 = vsel %vm1116_vm15, %v1117_v40, %v1115_v27 }
 0x7cf   :  { %v2803_v41 = vpop.eup %2802  ;;  %v1140_v43 = vmin.f32 %v1118_v36, 0.99999 }
 0x7d0   :  { %v1143_v44 = vmul.f32 %v2803_v41, %v1128_v42 }
 0x7d1   :  { %2804 = vrcp.f32 %v1140_v43 }
 0x7d2   :  { %v1147_v45 = vmul.f32 %v1145_v14, %v1143_v44 }
 0x7d4   :  { %2657 = vmatmul.msk.f32.vlgmr.msrb.gmra.mxu0 %vm776_vm2, %v1147_v45 }
 0x7d7   :  { %v2805_v46 = vpop.eup %2804 }
 0x7d8   :  { %v1144_v48 = vmul.f32 %v2805_v46, %v1138_v47 }
 0x7da   :  { %v1148_v49 = vmul.f32 %v1146_v23, %v1144_v48 }
 0x7dc   :  { %2658 = vmatmul.msk.f32.gmra.mxu0 %vm776_vm2, %v1148_v49 }
 0x818   :  { %v1260_v52 = vpop.xlane.xlu1 %1259 }
 0x819   :  { %v1276_v55 = vperm.slane %v1260_v52, 0 }
 0x851   :  { %v1172_v56 = vpop.f32.mrf.mxu0 }
 0x852   :  { %v1173_v57 = vadd.f32 1e-05, %v1172_v56 }
 0x854   :  { %v1178_v58 = vmul.f32 %v1173_v57, %v1173_v57 }
 0x856   :  { %v1180_v59 = vsel %vm776_vm2, %v1178_v58, 0.0 }
 0x857   :  { %1181 = vadd.xlane.f32.xlu0 %v1180_v59 }
 0x859   :  { %v1175_v60 = vpop.f32.mrf.mxu0 }
 0x85a   :  { %v3497_v62 = vadd.f32 1e-05, %v1175_v60 }
 0x85c   :  { %v1179_v63 = vmul.f32 %v3497_v62, %v3497_v62 }
 0x85e   :  { %v1183_v1 = vsel %vm776_vm2, %v1179_v63, 0.0 }
 0x85f   :  { %1184 = vadd.xlane.f32.xlu2 %v1183_v1 }
 0x8ca   :  { %v1182_v2 = vpop.xlane.xlu0 %1181 }
 0x8cb   :  { %2806 = vrsqrt.f32 %v1182_v2  ;;  %vm1193_vm6 = vcmp.eq.f32.partialorder %v1182_v2, inf  ;;  %v1196_v15 = vand.u32 2147483648, %v1182_v2  ;;  %vm1195_vm7 = vcmp.eq.f32.partialorder %v1182_v2, 0.0 }
 0x8cc   :  { %vm1216_vm11 = vweird.f32 %v1182_v2 }
 0x8d1   :  { %v2807_v3 = vpop.eup %2806 }
 0x8d2   :  { %v1185_v5 = vpop.xlane.xlu2 %1184  ;;  %v1187_v53 = vmul.f32 %v2807_v3, %v1182_v2  ;;  %vm1217_vm10 = vweird.f32 %v2807_v3 }
 0x8d3   :  { %2808 = vrsqrt.f32 %v1185_v5  ;;  %vm1218_vm12 = vmor %vm1216_vm11, %vm1217_vm10  ;;  %vm1205_vm13 = vcmp.eq.f32.partialorder %v1185_v5, inf  ;;  %v1208_v51 = vand.u32 2147483648, %v1185_v5  ;;  %vm1207_vm14 = vcmp.eq.f32.partialorder %v1185_v5, 0.0 }
 0x8d4   :  { %v1188_v6 = vmul.f32 %v2807_v3, %v1187_v53  ;;  %vm1226_vm1 = vweird.f32 %v1185_v5 }
 0x8d6   :  { %v1189_v7 = vmul.f32 0.5, %v1188_v6 }
 0x8d8   :  { %v1190_v8 = vsub.f32 1.5, %v1189_v7 }
 0x8d9   :  { %v2809_v9 = vpop.eup %2808 }
 0x8da   :  { %v1191_v10 = vmul.f32 %v2807_v3, %v1190_v8  ;;  %v1199_v11 = vmul.f32 %v2809_v9, %v1185_v5  ;;  %vm1227_vm15 = vweird.f32 %v2809_v9 }
 0x8db   :  { %vm1228_vm3 = vmor %vm1226_vm1, %vm1227_vm15 }
 0x8dc   :  { %v1192_v12 = vmul.f32 %v1191_v10, %v1182_v2  ;;  %v1200_v14 = vmul.f32 %v2809_v9, %v1199_v11  ;;  %v1219_v20 = vsel %vm1218_vm12, %v2807_v3, %v1191_v10 }
 0x8de   :  { %v1194_v16 = vsel %vm1193_vm6, %v1182_v2, %v1192_v12  ;;  %v1201_v17 = vmul.f32 0.5, %v1200_v14 }
 0x8df   :  { %v1197_v18 = vsel %vm1195_vm7, %v1196_v15, %v1194_v16 }
 0x8e0   :  { %2810 = vtanh.f32 %v1197_v18  ;;  %v1202_v19 = vsub.f32 1.5, %v1201_v17  ;;  %v1236_v23 = vmul.f32 %v1219_v20, %v1197_v18 }
 0x8e2   :  { %v1203_v4 = vmul.f32 %v2809_v9, %v1202_v19 }
 0x8e4   :  { %v1204_v21 = vmul.f32 %v1203_v4, %v1185_v5  ;;  %v1229_v25 = vsel %vm1228_vm3, %v2809_v9, %v1203_v4 }
 0x8e6   :  { %v2811_v24 = vpop.eup %2810  ;;  %v1206_v0 = vsel %vm1205_vm13, %v1185_v5, %v1204_v21 }
 0x8e7   :  { %v1238_v61 = vmul.f32 %v2811_v24, %v1236_v23  ;;  %v1209_v26 = vsel %vm1207_vm14, %v1208_v51, %v1206_v0  ;;  %v1232_v31 = vmul.f32 %v2811_v24, %v1219_v20 }
 0x8e8   :  { %2812 = vtanh.f32 %v1209_v26  ;;  %v1237_v29 = vmul.f32 %v1229_v25, %v1209_v26 }
 0x8e9   :  { %v1242_v28 = vadd.f32 1e-07, %v1238_v61  ;;  %v1234_v38 = vmul.f32 %v1232_v31, %v1173_v57  ;;  %vm1240_vm4 = vcmp.gt.f32.partialorder %v1238_v61, 0.99999 }
 0x8eb   :  { %2814 = vrcp.f32 %v1242_v28 }
 0x8ee   :  { %v2813_v30 = vpop.eup %2812 }
 0x8ef   :  { %v1239_v32 = vmul.f32 %v2813_v30, %v1237_v29  ;;  %v1233_v41 = vmul.f32 %v2813_v30, %v1229_v25 }
 0x8f1   :  { %v2815_v33 = vpop.eup %2814  ;;  %v1243_v34 = vadd.f32 1e-07, %v1239_v32  ;;  %v1235_v45 = vmul.f32 %v1233_v41, %v3497_v62  ;;  %vm1241_vm5 = vcmp.gt.f32.partialorder %v1239_v32, 0.99999 }
 0x8f2   :  { %v1246_v35 = vmul.f32 0.99999, %v2815_v33 }
 0x8f3   :  { %2816 = vrcp.f32 %v1243_v34 }
 0x8f4   :  { %v1248_v39 = vsel %vm1240_vm4, %v1246_v35, 1.0 }
 0x8f5   :  { %v1250_v40 = vmul.f32 %v1248_v39, %v1234_v38  ;;  %v1252_v27 = vmul.f32 %v1248_v39, %v1238_v61 }
 0x8f7   :  { %v1264_v36 = vmul.f32 %v1262_v37, %v1250_v40  ;;  %v1254_v54 = vmul.f32 %v1252_v27, %v1252_v27 }
 0x8f9   :  { %v2817_v42 = vpop.eup %2816  ;;  %v1266_v43 = vsel %vm776_vm2, %v1264_v36, 0.0  ;;  %v1277_v58 = vmul.f32 %v1276_v55, %v1254_v54  ;;  %v1291_v6 = vsub.f32 1.0, %v1254_v54 }
 0x8fa   :  { %1267 = vadd.xlane.f32.xlu0 %v1266_v43  ;;  %v1247_v44 = vmul.f32 0.99999, %v2817_v42 }
 0x8fc   :  { %v1249_v46 = vsel %vm1241_vm5, %v1247_v44, 1.0 }
 0x8fd   :  { %v1251_v47 = vmul.f32 %v1249_v46, %v1235_v45  ;;  %v1253_v48 = vmul.f32 %v1249_v46, %v1239_v32 }
 0x8ff   :  { %v1265_v49 = vmul.f32 %v1262_v37, %v1251_v47  ;;  %v1255_v1 = vmul.f32 %v1253_v48, %v1253_v48 }
 0x901   :  { %v1269_v50 = vsel %vm776_vm2, %v1265_v49, 0.0  ;;  %v1278_v3 = vmul.f32 %v1276_v55, %v1255_v1  ;;  %v1292_v16 = vsub.f32 1.0, %v1255_v1 }
 0x902   :  { %1270 = vadd.xlane.f32.xlu2 %v1269_v50 }
 0x96d   :  { %v1268_v56 = vpop.xlane.xlu0 %1267 }
 0x96e   :  { %v1272_v57 = vmul.f32 2.0, %v1268_v56 }
 0x970   :  { %v1274_v59 = vadd.f32 1.0, %v1272_v57 }
 0x972   :  { %v1279_v60 = vadd.f32 %v1277_v58, %v1274_v59  ;;  %v1285_v7 = vadd.f32 %v1276_v55, %v1274_v59 }
 0x974   :  { %v1281_v63 = vadd.f32 1e-05, %v1279_v60 }
 0x975   :  { %v1271_v2 = vpop.xlane.xlu2 %1270 }
 0x976   :  { %2818 = vrcp.f32 %v1281_v63  ;;  %v1273_v62 = vmul.f32 2.0, %v1271_v2 }
 0x978   :  { %v1275_v5 = vadd.f32 1.0, %v1273_v62 }
 0x97a   :  { %v1280_v53 = vadd.f32 %v1278_v3, %v1275_v5  ;;  %v1286_v17 = vadd.f32 %v1276_v55, %v1275_v5 }
 0x97c   :  { %v2819_v8 = vpop.eup %2818  ;;  %v1282_v9 = vadd.f32 1e-05, %v1280_v53 }
 0x97d   :  { %v1287_v10 = vmul.f32 %v2819_v8, %v1285_v7  ;;  %v1293_v11 = vmul.f32 %v2819_v8, %v1291_v6 }
 0x97e   :  { %2820 = vrcp.f32 %v1282_v9 }
 0x97f   :  { %v1289_v12 = vmul.f32 %v1287_v10, %v1250_v40  ;;  %v1295_v14 = vmul.f32 %v1293_v11, %v1262_v37 }
 0x981   :  { %v3506_v15 = vadd.f32 %v1295_v14, %v1289_v12 }
 0x983   :  { %v1299_v18 = vmul.f32 %v3506_v15, %v3506_v15 }
 0x984   :  { %v2821_v19 = vpop.eup %2820 }
 0x985   :  { %v1288_v4 = vmul.f32 %v2821_v19, %v1286_v17  ;;  %v1301_v20 = vsel %vm776_vm2, %v1299_v18, 0.0  ;;  %v1294_v21 = vmul.f32 %v2821_v19, %v1292_v16 }
 0x986   :  { %1302 = vadd.xlane.f32.xlu2 %v1301_v20 }
 0x987   :  { %v1290_v23 = vmul.f32 %v1288_v4, %v1251_v47  ;;  %v1296_v51 = vmul.f32 %v1294_v21, %v1262_v37 }
 0x989   :  { %v3511_v24 = vadd.f32 %v1296_v51, %v1290_v23 }
 0x98b   :  { %v1300_v0 = vmul.f32 %v3511_v24, %v3511_v24 }
 0x98d   :  { %v1304_v61 = vsel %vm776_vm2, %v1300_v0, 0.0 }
 0x98e   :  { %1305 = vadd.xlane.f32.xlu1 %v1304_v61 }
 0x9f9   :  { %v1303_v26 = vpop.xlane.xlu2 %1302 }
 0x9fa   :  { %2822 = vrsqrt.f32 %v1303_v26  ;;  %vm1314_vm6 = vcmp.eq.f32.partialorder %v1303_v26, inf  ;;  %v1317_v39 = vand.u32 2147483648, %v1303_v26  ;;  %vm1316_vm7 = vcmp.eq.f32.partialorder %v1303_v26, 0.0 }
 0xa00   :  { %v2823_v28 = vpop.eup %2822 }
 0xa01   :  { %v1308_v25 = vmul.f32 %v2823_v28, %v1303_v26  ;;  %v1306_v29 = vpop.xlane.xlu1 %1305 }
 0xa02   :  { %2824 = vrsqrt.f32 %v1306_v29  ;;  %vm1326_vm10 = vcmp.eq.f32.partialorder %v1306_v29, inf  ;;  %v1329_v45 = vand.u32 2147483648, %v1306_v29  ;;  %vm1328_vm11 = vcmp.eq.f32.partialorder %v1306_v29, 0.0 }
 0xa03   :  { %v1309_v30 = vmul.f32 %v2823_v28, %v1308_v25 }
 0xa05   :  { %v1310_v31 = vmul.f32 0.5, %v1309_v30 }
 0xa07   :  { %v1311_v32 = vsub.f32 1.5, %v1310_v31 }
 0xa08   :  { %v2825_v33 = vpop.eup %2824 }
 0xa09   :  { %v1320_v34 = vmul.f32 %v2825_v33, %v1306_v29  ;;  %v1312_v35 = vmul.f32 %v2823_v28, %v1311_v32 }
 0xa0b   :  { %v1321_v37 = vmul.f32 %v2825_v33, %v1320_v34  ;;  %v1313_v38 = vmul.f32 %v1312_v35, %v1303_v26  ;;  %v2986_v34 = vld [vmem:[#allocation2] sm:$0xff] }
 0xa0d   :  { %v1322_v40 = vmul.f32 0.5, %v1321_v37  ;;  %v1315_v27 = vsel %vm1314_vm6, %v1303_v26, %v1313_v38 }
 0xa0e   :  { %v1318_v36 = vsel %vm1316_vm7, %v1317_v39, %v1315_v27 }
 0xa0f   :  { %v1323_v41 = vsub.f32 1.5, %v1322_v40  ;;  %v1333_v42 = vadd.f32 1e-07, %v1318_v36  ;;  %vm1331_vm12 = vcmp.gt.f32.partialorder %v1318_v36, 0.99999 }
 0xa11   :  { %v1324_v43 = vmul.f32 %v2825_v33, %v1323_v41  ;;  %2826 = vrcp.f32 %v1333_v42  ;;  %v1093_v41 = vld [vmem:[#allocation10 + $0x18] sm:$0xff]  ;;  %v1092_v42 = vld [vmem:[#allocation10 + $0x10] sm:$0xff] }
 0xa12   :  { %1574 = vmatpush.msrb.mxu2 %v1093_v41 }
 0xa13   :  { %v1325_v44 = vmul.f32 %v1324_v43, %v1306_v29  ;;  %v1091_v43 = vld [vmem:[#allocation10 + $0x8] sm:$0xff] }
 0xa14   :  { %1575 = vmatpush.msrb.mxu2 %v1092_v42 }
 0xa15   :  { %v1327_v46 = vsel %vm1326_vm10, %v1306_v29, %v1325_v44  ;;  %v1090_v44 = vld [vmem:[#allocation10] sm:$0xff] }
 0xa16   :  { %v1330_v47 = vsel %vm1328_vm11, %v1329_v45, %v1327_v46  ;;  %1576 = vmatpush.msrb.mxu2 %v1091_v43 }
 0xa17   :  { %v2827_v48 = vpop.eup %2826  ;;  %v1334_v49 = vadd.f32 1e-07, %v1330_v47  ;;  %vm1332_vm13 = vcmp.gt.f32.partialorder %v1330_v47, 0.99999 }
 0xa18   :  { %v1337_v50 = vmul.f32 0.99999, %v2827_v48  ;;  %1577 = vmatpush.msrb.mxu2 %v1090_v44 }
 0xa19   :  { %2828 = vrcp.f32 %v1334_v49 }
 0xa1a   :  { %v1339_v52 = vsel %vm1331_vm12, %v1337_v50, 1.0 }
 0xa1b   :  { %v1343_v55 = vmul.f32 %v1339_v52, %v1303_v26  ;;  %v1341_v0 = vmul.f32 %v1339_v52, %v3506_v15 }
 0xa1d   :  { %v1345_v54 = vmul.f32 %v1343_v55, %v1339_v52  ;;  %v1397_v32 = vadd.f32 1e-05, %v1341_v0 }
 0xa1f   :  { %v2829_v56 = vpop.eup %2828  ;;  %2830 = vrsqrt.f32 %v1345_v54  ;;  %vm1354_vm14 = vcmp.eq.f32.partialorder %v1345_v54, inf  ;;  %v1357_v11 = vand.u32 2147483648, %v1345_v54  ;;  %vm1356_vm15 = vcmp.eq.f32.partialorder %v1345_v54, 0.0 }
 0xa20   :  { %v1338_v57 = vmul.f32 0.99999, %v2829_v56  ;;  %vm1377_vm6 = vweird.f32 %v1345_v54 }
 0xa22   :  { %v1340_v58 = vsel %vm1332_vm13, %v1338_v57, 1.0 }
 0xa23   :  { %v1344_v59 = vmul.f32 %v1340_v58, %v1306_v29  ;;  %v1342_v23 = vmul.f32 %v1340_v58, %v3511_v24  ;;  %v2987_v24 = vld [vmem:[#allocation2 + $0x8] sm:$0xff] }
 0xa25   :  { %v2831_v60 = vpop.eup %2830  ;;  %v1346_v63 = vmul.f32 %v1344_v59, %v1340_v58  ;;  %v1398_v29 = vadd.f32 1e-05, %v1342_v23 }
 0xa26   :  { %v1348_v1 = vmul.f32 %v2831_v60, %v1345_v54  ;;  %vm1378_vm4 = vweird.f32 %v2831_v60 }
 0xa27   :  { %2832 = vrsqrt.f32 %v1346_v63  ;;  %vm1366_vm1 = vcmp.eq.f32.partialorder %v1346_v63, inf  ;;  %v1369_v19 = vand.u32 2147483648, %v1346_v63  ;;  %vm1368_vm3 = vcmp.eq.f32.partialorder %v1346_v63, 0.0  ;;  %vm1379_vm10 = vmor %vm1377_vm6, %vm1378_vm4 }
 0xa28   :  { %v1349_v2 = vmul.f32 %v2831_v60, %v1348_v1  ;;  %vm1387_vm7 = vweird.f32 %v1346_v63 }
 0xa2a   :  { %v1350_v62 = vmul.f32 0.5, %v1349_v2 }
 0xa2c   :  { %v1351_v3 = vsub.f32 1.5, %v1350_v62 }
 0xa2d   :  { %v2833_v5 = vpop.eup %2832 }
 0xa2e   :  { %v1360_v53 = vmul.f32 %v2833_v5, %v1346_v63  ;;  %v1352_v6 = vmul.f32 %v2831_v60, %v1351_v3  ;;  %vm1388_vm5 = vweird.f32 %v2833_v5 }
 0xa2f   :  { %vm1389_vm11 = vmor %vm1387_vm7, %vm1388_vm5 }
 0xa30   :  { %v1361_v7 = vmul.f32 %v2833_v5, %v1360_v53  ;;  %v1353_v8 = vmul.f32 %v1352_v6, %v1345_v54  ;;  %v1380_v28 = vsel %vm1379_vm10, %v2831_v60, %v1352_v6 }
 0xa32   :  { %v1362_v9 = vmul.f32 0.5, %v1361_v7  ;;  %v1355_v10 = vsel %vm1354_vm14, %v1345_v54, %v1353_v8 }
 0xa33   :  { %v1358_v14 = vsel %vm1356_vm15, %v1357_v11, %v1355_v10 }
 0xa34   :  { %v1363_v12 = vsub.f32 1.5, %v1362_v9  ;;  %v1391_v18 = vmin.f32 %v1358_v14, 0.99999 }
 0xa36   :  { %v1364_v16 = vmul.f32 %v2833_v5, %v1363_v12  ;;  %2834 = vrcp.f32 %v1391_v18 }
 0xa38   :  { %v1365_v17 = vmul.f32 %v1364_v16, %v1346_v63  ;;  %v1390_v26 = vsel %vm1389_vm11, %v2833_v5, %v1364_v16 }
 0xa3a   :  { %v1367_v4 = vsel %vm1366_vm1, %v1346_v63, %v1365_v17 }
 0xa3b   :  { %v1370_v20 = vsel %vm1368_vm3, %v1369_v19, %v1367_v4 }
 0xa3c   :  { %v1392_v21 = vmin.f32 %v1370_v20, 0.99999  ;;  %v2835_v51 = vpop.eup %2834 }
 0xa3d   :  { %v1395_v30 = vmul.f32 %v2835_v51, %v1380_v28 }
 0xa3e   :  { %2836 = vrcp.f32 %v1392_v21 }
 0xa3f   :  { %v1399_v33 = vmul.f32 %v1397_v32, %v1395_v30 }
 0xa44   :  { %v2837_v61 = vpop.eup %2836 }
 0xa45   :  { %v1396_v25 = vmul.f32 %v2837_v61, %v1390_v26 }
 0xa47   :  { %v1400_v31 = vmul.f32 %v1398_v29, %v1396_v25 }
 0xa49   :  { %1415 = vmatpush.msrb.mxu1 %v1400_v31 }
 0xa4b   :  { %1416 = vmatpush.msrb.mxu1 %v1399_v33 }
 0xa4c   :  { %2659 = vmatmul.msk.f32.vlgmr.msrb.gmra.mxu1 %vm159_vm0, %v2986_v34 }
 0xa54   :  { %2660 = vmatmul.msk.f32.gmra.mxu1 %vm159_vm0, %v2987_v24 }
 0xac9   :  { %v1418_v35 = vpop.f32.mrf.mxu1 }
 0xaca   :  { %v3520_v37 = vadd.f32 1e-05, %v1418_v35 }
 0xacc   :  { %v1424_v15 = vmul.f32 %v3520_v37, %v3520_v37 }
 0xace   :  { %v1426_v38 = vsel %vm776_vm2, %v1424_v15, 0.0 }
 0xacf   :  { %1427 = vadd.xlane.f32.xlu0 %v1426_v38 }
 0xad1   :  { %v1421_v39 = vpop.f32.mrf.mxu1 }
 0xad2   :  { %v3525_v40 = vadd.f32 1e-05, %v1421_v39 }
 0xad4   :  { %v1425_v27 = vmul.f32 %v3525_v40, %v3525_v40 }
 0xad6   :  { %v1429_v36 = vsel %vm776_vm2, %v1425_v27, 0.0 }
 0xad7   :  { %1430 = vadd.xlane.f32.xlu1 %v1429_v36 }
 0xb42   :  { %v1428_v45 = vpop.xlane.xlu0 %1427 }
 0xb43   :  { %2838 = vrsqrt.f32 %v1428_v45  ;;  %vm1439_vm12 = vcmp.eq.f32.partialorder %v1428_v45, inf  ;;  %v1442_v59 = vand.u32 2147483648, %v1428_v45  ;;  %vm1441_vm13 = vcmp.eq.f32.partialorder %v1428_v45, 0.0 }
 0xb44   :  { %vm1462_vm15 = vweird.f32 %v1428_v45 }
 0xb49   :  { %v2839_v46 = vpop.eup %2838 }
 0xb4a   :  { %v1433_v47 = vmul.f32 %v2839_v46, %v1428_v45  ;;  %v1431_v48 = vpop.xlane.xlu1 %1430  ;;  %vm1463_vm14 = vweird.f32 %v2839_v46 }
 0xb4b   :  { %2840 = vrsqrt.f32 %v1431_v48  ;;  %vm1464_vm1 = vmor %vm1462_vm15, %vm1463_vm14  ;;  %vm1451_vm3 = vcmp.eq.f32.partialorder %v1431_v48, inf  ;;  %v1454_v6 = vand.u32 2147483648, %v1431_v48  ;;  %vm1453_vm4 = vcmp.eq.f32.partialorder %v1431_v48, 0.0 }
 0xb4c   :  { %v1434_v49 = vmul.f32 %v2839_v46, %v1433_v47  ;;  %vm1472_vm6 = vweird.f32 %v1431_v48 }
 0xb4e   :  { %v1435_v50 = vmul.f32 0.5, %v1434_v49 }
 0xb50   :  { %v1436_v52 = vsub.f32 1.5, %v1435_v50  ;;  %v1094_v50 = vld [vmem:[%s3723_s11] sm:$0x1] }
 0xb51   :  { %v2841_v55 = vpop.eup %2840 }
 0xb52   :  { %v1437_v54 = vmul.f32 %v2839_v46, %v1436_v52  ;;  %v1445_v56 = vmul.f32 %v2841_v55, %v1431_v48  ;;  %vm1473_vm5 = vweird.f32 %v2841_v55  ;;  %v3539_v52 = vadd.f32 1e-05, %v1094_v50 }
 0xb53   :  { %vm1474_vm7 = vmor %vm1472_vm6, %vm1473_vm5 }
 0xb54   :  { %v1438_v57 = vmul.f32 %v1437_v54, %v1428_v45  ;;  %v1446_v58 = vmul.f32 %v2841_v55, %v1445_v56  ;;  %v1465_v3 = vsel %vm1464_vm1, %v2839_v46, %v1437_v54  ;;  %v1697_v54 = vmul.f32 %v3539_v52, %v3539_v52 }
 0xb55   :  { %v1702_v50 = vperm.slane %v3539_v52, 0 }
 0xb56   :  { %v1440_v60 = vsel %vm1439_vm12, %v1428_v45, %v1438_v57  ;;  %v1447_v63 = vmul.f32 0.5, %v1446_v58  ;;  %v1698_v58 = vsel %vm855_vm9, %v1697_v54, 0.0 }
 0xb57   :  { %v1443_v1 = vsel %vm1441_vm13, %v1442_v59, %v1440_v60  ;;  %1699 = vadd.xlane.f32.xlu1 %v1698_v58 }
 0xb58   :  { %2842 = vtanh.f32 %v1443_v1  ;;  %v1448_v2 = vsub.f32 1.5, %v1447_v63  ;;  %v1482_v53 = vmul.f32 %v1465_v3, %v1443_v1  ;;  %v1608_v1 = vpop.f32.mrf.mxu3 }
 0xb5a   :  { %v1449_v62 = vmul.f32 %v2841_v55, %v1448_v2 }
 0xb5c   :  { %v1450_v5 = vmul.f32 %v1449_v62, %v1431_v48  ;;  %v1475_v12 = vsel %vm1474_vm7, %v2841_v55, %v1449_v62 }
 0xb5e   :  { %v2843_v7 = vpop.eup %2842  ;;  %v1452_v8 = vsel %vm1451_vm3, %v1431_v48, %v1450_v5 }
 0xb5f   :  { %v1484_v9 = vmul.f32 %v2843_v7, %v1482_v53  ;;  %v1455_v10 = vsel %vm1453_vm4, %v1454_v6, %v1452_v8  ;;  %v1478_v17 = vmul.f32 %v2843_v7, %v1465_v3 }
 0xb60   :  { %2844 = vtanh.f32 %v1455_v10  ;;  %v1483_v14 = vmul.f32 %v1475_v12, %v1455_v10 }
 0xb61   :  { %v1488_v11 = vadd.f32 1e-07, %v1484_v9  ;;  %v1480_v21 = vmul.f32 %v1478_v17, %v3520_v37  ;;  %vm1486_vm10 = vcmp.gt.f32.partialorder %v1484_v9, 0.99999 }
 0xb63   :  { %2846 = vrcp.f32 %v1488_v11 }
 0xb66   :  { %v2845_v16 = vpop.eup %2844 }
 0xb67   :  { %v1485_v18 = vmul.f32 %v2845_v16, %v1483_v14  ;;  %v1479_v26 = vmul.f32 %v2845_v16, %v1475_v12 }
 0xb69   :  { %v2847_v19 = vpop.eup %2846  ;;  %v1489_v4 = vadd.f32 1e-07, %v1485_v18  ;;  %v1481_v29 = vmul.f32 %v1479_v26, %v3525_v40  ;;  %vm1487_vm11 = vcmp.gt.f32.partialorder %v1485_v18, 0.99999 }
 0xb6a   :  { %v1492_v20 = vmul.f32 0.99999, %v2847_v19 }
 0xb6b   :  { %2848 = vrcp.f32 %v1489_v4 }
 0xb6c   :  { %v1494_v23 = vsel %vm1486_vm10, %v1492_v20, 1.0 }
 0xb6d   :  { %v1496_v51 = vmul.f32 %v1494_v23, %v1480_v21  ;;  %v1498_v0 = vmul.f32 %v1494_v23, %v1484_v9  ;;  %v1611_v9 = vpop.f32.mrf.mxu3 }
 0xb6f   :  { %v1554_v61 = vadd.f32 1e-05, %v1496_v51  ;;  %v1500_v34 = vmul.f32 %v1498_v0, %v1498_v0 }
 0xb71   :  { %v2849_v28 = vpop.eup %2848  ;;  %2661 = vmatmul.msk.f32.vlgmr.msrb.gmra.mxu2 %vm776_vm2, %v1554_v61  ;;  %v1502_v24 = vadd.f32 %v1500_v34, %v3463_v13 }
 0xb72   :  { %v1493_v25 = vmul.f32 0.99999, %v2849_v28 }
 0xb73   :  { %2850 = vrsqrt.f32 %v1502_v24  ;;  %vm1511_vm12 = vcmp.eq.f32.partialorder %v1502_v24, inf  ;;  %v1514_v48 = vand.u32 2147483648, %v1502_v24  ;;  %vm1513_vm13 = vcmp.eq.f32.partialorder %v1502_v24, 0.0 }
 0xb74   :  { %v1495_v30 = vsel %vm1487_vm11, %v1493_v25, 1.0  ;;  %vm1538_vm3 = vweird.f32 %v1502_v24 }
 0xb75   :  { %v1497_v31 = vmul.f32 %v1495_v30, %v1481_v29  ;;  %v1499_v32 = vmul.f32 %v1495_v30, %v1485_v18 }
 0xb77   :  { %v1555_v33 = vadd.f32 1e-05, %v1497_v31  ;;  %v1501_v35 = vmul.f32 %v1499_v32, %v1499_v32 }
 0xb79   :  { %2662 = vmatmul.msk.f32.gmra.mxu2 %vm776_vm2, %v1555_v33  ;;  %v1503_v37 = vadd.f32 %v1501_v35, %v3468_v22  ;;  %v2851_v15 = vpop.eup %2850 }
 0xb7a   :  { %v1505_v38 = vmul.f32 %v2851_v15, %v1502_v24  ;;  %vm1539_vm1 = vweird.f32 %v2851_v15 }
 0xb7b   :  { %2852 = vrsqrt.f32 %v1503_v37  ;;  %vm1523_vm14 = vcmp.eq.f32.partialorder %v1503_v37, inf  ;;  %v1526_v57 = vand.u32 2147483648, %v1503_v37  ;;  %vm1525_vm15 = vcmp.eq.f32.partialorder %v1503_v37, 0.0  ;;  %vm1540_vm4 = vmor %vm1538_vm3, %vm1539_vm1 }
 0xb7c   :  { %v1506_v39 = vmul.f32 %v2851_v15, %v1505_v38  ;;  %vm1548_vm6 = vweird.f32 %v1503_v37 }
 0xb7e   :  { %v1507_v40 = vmul.f32 0.5, %v1506_v39 }
 0xb80   :  { %v1508_v41 = vsub.f32 1.5, %v1507_v40 }
 0xb81   :  { %v2853_v27 = vpop.eup %2852 }
 0xb82   :  { %v1517_v36 = vmul.f32 %v2853_v27, %v1503_v37  ;;  %v1509_v43 = vmul.f32 %v2851_v15, %v1508_v41  ;;  %vm1549_vm5 = vweird.f32 %v2853_v27 }
 0xb83   :  { %vm1550_vm7 = vmor %vm1548_vm6, %vm1549_vm5 }
 0xb84   :  { %v1518_v42 = vmul.f32 %v2853_v27, %v1517_v36  ;;  %v1510_v45 = vmul.f32 %v1509_v43, %v1502_v24  ;;  %v1541_v2 = vsel %vm1540_vm4, %v2851_v15, %v1509_v43 }
 0xb86   :  { %v1519_v44 = vmul.f32 0.5, %v1518_v42  ;;  %v1512_v47 = vsel %vm1511_vm12, %v1502_v24, %v1510_v45 }
 0xb87   :  { %v1515_v49 = vsel %vm1513_vm13, %v1514_v48, %v1512_v47 }
 0xb88   :  { %v1520_v46 = vsub.f32 1.5, %v1519_v44  ;;  %v1528_v55 = vmin.f32 %v1515_v49, 0.99999 }
 0xb8a   :  { %v1521_v13 = vmul.f32 %v2853_v27, %v1520_v46  ;;  %2854 = vrcp.f32 %v1528_v55 }
 0xb8c   :  { %v1522_v22 = vmul.f32 %v1521_v13, %v1503_v37  ;;  %v1551_v10 = vsel %vm1550_vm7, %v2853_v27, %v1521_v13 }
 0xb8e   :  { %v1524_v56 = vsel %vm1523_vm14, %v1503_v37, %v1522_v22 }
 0xb8f   :  { %v1527_v59 = vsel %vm1525_vm15, %v1526_v57, %v1524_v56 }
 0xb90   :  { %v1529_v60 = vmin.f32 %v1527_v59, 0.99999  ;;  %v2855_v63 = vpop.eup %2854 }
 0xb91   :  { %v1552_v3 = vmul.f32 %v2855_v63, %v1541_v2 }
 0xb92   :  { %2856 = vrcp.f32 %v1529_v60 }
 0xb98   :  { %v2857_v7 = vpop.eup %2856 }
 0xb99   :  { %v1553_v12 = vmul.f32 %v2857_v7, %v1551_v10 }
 0xbf4   :  { %v1579_v62 = vpop.f32.mrf.mxu2 }
 0xbf5   :  { %v1609_v5 = vadd.f32 %v1608_v1, %v1579_v62 }
 0xbf7   :  { %v1614_v53 = vmul.f32 %v1609_v5, %v1552_v3 }
 0xbf9   :  { %v3544_v6 = vadd.f32 1e-05, %v1614_v53 }
 0xbfb   :  { %v1618_v8 = vmul.f32 %v3544_v6, %v3544_v6 }
 0xbfc   :  { %v1582_v11 = vpop.f32.mrf.mxu2 }
 0xbfd   :  { %v1612_v14 = vadd.f32 %v1611_v9, %v1582_v11  ;;  %v1620_v16 = vsel %vm776_vm2, %v1618_v8, 0.0 }
 0xbfe   :  { %1621 = vadd.xlane.f32.xlu2 %v1620_v16 }
 0xbff   :  { %v1615_v17 = vmul.f32 %v1612_v14, %v1553_v12 }
 0xc01   :  { %v3549_v18 = vadd.f32 1e-05, %v1615_v17 }
 0xc03   :  { %v1619_v19 = vmul.f32 %v3549_v18, %v3549_v18 }
 0xc05   :  { %v1623_v4 = vsel %vm776_vm2, %v1619_v19, 0.0 }
 0xc06   :  { %1624 = vadd.xlane.f32.xlu0 %v1623_v4 }
 0xc71   :  { %v1622_v20 = vpop.xlane.xlu2 %1621 }
 0xc72   :  { %2858 = vrsqrt.f32 %v1622_v20  ;;  %vm1633_vm10 = vcmp.eq.f32.partialorder %v1622_v20, inf  ;;  %v1636_v32 = vand.u32 2147483648, %v1622_v20  ;;  %vm1635_vm11 = vcmp.eq.f32.partialorder %v1622_v20, 0.0 }
 0xc73   :  { %vm1656_vm13 = vweird.f32 %v1622_v20 }
 0xc78   :  { %v2859_v21 = vpop.eup %2858 }
 0xc79   :  { %v1625_v23 = vpop.xlane.xlu0 %1624  ;;  %v1627_v51 = vmul.f32 %v2859_v21, %v1622_v20  ;;  %vm1657_vm12 = vweird.f32 %v2859_v21 }
 0xc7a   :  { %2860 = vrsqrt.f32 %v1625_v23  ;;  %vm1658_vm14 = vmor %vm1656_vm13, %vm1657_vm12  ;;  %vm1645_vm15 = vcmp.eq.f32.partialorder %v1625_v23, inf  ;;  %v1648_v27 = vand.u32 2147483648, %v1625_v23  ;;  %vm1647_vm1 = vcmp.eq.f32.partialorder %v1625_v23, 0.0 }
 0xc7b   :  { %v1628_v0 = vmul.f32 %v2859_v21, %v1627_v51  ;;  %vm1666_vm4 = vweird.f32 %v1625_v23 }
 0xc7d   :  { %v1629_v61 = vmul.f32 0.5, %v1628_v0 }
 0xc7f   :  { %v1630_v26 = vsub.f32 1.5, %v1629_v61 }
 0xc80   :  { %v2861_v28 = vpop.eup %2860 }
 0xc81   :  { %v1631_v25 = vmul.f32 %v2859_v21, %v1630_v26  ;;  %v1639_v29 = vmul.f32 %v2861_v28, %v1625_v23  ;;  %vm1667_vm3 = vweird.f32 %v2861_v28 }
 0xc82   :  { %vm1668_vm5 = vmor %vm1666_vm4, %vm1667_vm3 }
 0xc83   :  { %v1632_v30 = vmul.f32 %v1631_v25, %v1622_v20  ;;  %v1640_v31 = vmul.f32 %v2861_v28, %v1639_v29  ;;  %v1659_v15 = vsel %vm1658_vm14, %v2859_v21, %v1631_v25 }
 0xc85   :  { %v1634_v33 = vsel %vm1633_vm10, %v1622_v20, %v1632_v30  ;;  %v1641_v34 = vmul.f32 0.5, %v1640_v31 }
 0xc86   :  { %v1637_v24 = vsel %vm1635_vm11, %v1636_v32, %v1634_v33 }
 0xc87   :  { %2862 = vtanh.f32 %v1637_v24  ;;  %v1642_v35 = vsub.f32 1.5, %v1641_v34  ;;  %v1676_v39 = vmul.f32 %v1659_v15, %v1637_v24 }
 0xc89   :  { %v1643_v37 = vmul.f32 %v2861_v28, %v1642_v35 }
 0xc8b   :  { %v1644_v38 = vmul.f32 %v1643_v37, %v1625_v23  ;;  %v1669_v44 = vsel %vm1668_vm5, %v2861_v28, %v1643_v37 }
 0xc8d   :  { %v2863_v40 = vpop.eup %2862  ;;  %v1646_v36 = vsel %vm1645_vm15, %v1625_v23, %v1644_v38 }
 0xc8e   :  { %v1678_v41 = vmul.f32 %v2863_v40, %v1676_v39  ;;  %v1649_v42 = vsel %vm1647_vm1, %v1648_v27, %v1646_v36  ;;  %v1672_v47 = vmul.f32 %v2863_v40, %v1659_v15 }
 0xc8f   :  { %2864 = vtanh.f32 %v1649_v42  ;;  %v1677_v45 = vmul.f32 %v1669_v44, %v1649_v42 }
 0xc90   :  { %v1682_v43 = vadd.f32 1e-07, %v1678_v41  ;;  %v1674_v55 = vmul.f32 %v1672_v47, %v3544_v6  ;;  %vm1680_vm6 = vcmp.gt.f32.partialorder %v1678_v41, 0.99999  ;;  %v1700_v6 = vpop.xlane.xlu1 %1699 }
 0xc91   :  { %v1716_v7 = vperm.slane %v1700_v6, 0 }
 0xc92   :  { %2866 = vrcp.f32 %v1682_v43 }
 0xc95   :  { %v2865_v46 = vpop.eup %2864 }
 0xc96   :  { %v1679_v13 = vmul.f32 %v2865_v46, %v1677_v45  ;;  %v1673_v59 = vmul.f32 %v2865_v46, %v1669_v44 }
 0xc98   :  { %v2867_v48 = vpop.eup %2866  ;;  %v1683_v49 = vadd.f32 1e-07, %v1679_v13  ;;  %v1675_v2 = vmul.f32 %v1673_v59, %v3549_v18  ;;  %vm1681_vm7 = vcmp.gt.f32.partialorder %v1679_v13, 0.99999 }
 0xc99   :  { %v1686_v22 = vmul.f32 0.99999, %v2867_v48 }
 0xc9a   :  { %2868 = vrcp.f32 %v1683_v49 }
 0xc9b   :  { %v1688_v54 = vsel %vm1680_vm6, %v1686_v22, 1.0 }
 0xc9c   :  { %v1690_v56 = vmul.f32 %v1688_v54, %v1674_v55  ;;  %v1692_v57 = vmul.f32 %v1688_v54, %v1678_v41 }
 0xc9e   :  { %v1704_v58 = vmul.f32 %v1702_v50, %v1690_v56  ;;  %v1694_v8 = vmul.f32 %v1692_v57, %v1692_v57 }
 0xca0   :  { %v2869_v60 = vpop.eup %2868  ;;  %v1706_v63 = vsel %vm776_vm2, %v1704_v58, 0.0  ;;  %v1717_v11 = vmul.f32 %v1716_v7, %v1694_v8  ;;  %v1731_v23 = vsub.f32 1.0, %v1694_v8 }
 0xca1   :  { %1707 = vadd.xlane.f32.xlu2 %v1706_v63  ;;  %v1687_v1 = vmul.f32 0.99999, %v2869_v60 }
 0xca3   :  { %v1689_v62 = vsel %vm1681_vm7, %v1687_v1, 1.0 }
 0xca4   :  { %v1691_v3 = vmul.f32 %v1689_v62, %v1675_v2  ;;  %v1693_v52 = vmul.f32 %v1689_v62, %v1679_v13 }
 0xca6   :  { %v1705_v5 = vmul.f32 %v1702_v50, %v1691_v3  ;;  %v1695_v17 = vmul.f32 %v1693_v52, %v1693_v52 }
 0xca8   :  { %v1709_v53 = vsel %vm776_vm2, %v1705_v5, 0.0  ;;  %v1718_v4 = vmul.f32 %v1716_v7, %v1695_v17  ;;  %v1732_v31 = vsub.f32 1.0, %v1695_v17 }
 0xca9   :  { %1710 = vadd.xlane.f32.xlu0 %v1709_v53 }
 0xd14   :  { %v1708_v9 = vpop.xlane.xlu2 %1707 }
 0xd15   :  { %v1712_v10 = vmul.f32 2.0, %v1708_v9 }
 0xd17   :  { %v1714_v12 = vadd.f32 1.0, %v1712_v10 }
 0xd19   :  { %v1719_v14 = vadd.f32 %v1717_v11, %v1714_v12  ;;  %v1725_v51 = vadd.f32 %v1716_v7, %v1714_v12 }
 0xd1b   :  { %v1721_v16 = vadd.f32 1e-05, %v1719_v14 }
 0xd1c   :  { %v1711_v19 = vpop.xlane.xlu0 %1710 }
 0xd1d   :  { %2870 = vrcp.f32 %v1721_v16  ;;  %v1713_v18 = vmul.f32 2.0, %v1711_v19 }
 0xd1f   :  { %v1715_v20 = vadd.f32 1.0, %v1713_v18 }
 0xd21   :  { %v1720_v21 = vadd.f32 %v1718_v4, %v1715_v20  ;;  %v1726_v32 = vadd.f32 %v1716_v7, %v1715_v20 }
 0xd23   :  { %v2871_v0 = vpop.eup %2870  ;;  %v1722_v61 = vadd.f32 1e-05, %v1720_v21 }
 0xd24   :  { %v1727_v26 = vmul.f32 %v2871_v0, %v1725_v51  ;;  %v1733_v28 = vmul.f32 %v2871_v0, %v1731_v23 }
 0xd25   :  { %2872 = vrcp.f32 %v1722_v61 }
 0xd26   :  { %v1729_v25 = vmul.f32 %v1727_v26, %v1690_v56  ;;  %v1735_v29 = vmul.f32 %v1733_v28, %v1702_v50 }
 0xd28   :  { %v3559_v30 = vadd.f32 %v1735_v29, %v1729_v25 }
 0xd2a   :  { %v1739_v33 = vmul.f32 %v3559_v30, %v3559_v30 }
 0xd2b   :  { %v2873_v34 = vpop.eup %2872 }
 0xd2c   :  { %v1728_v24 = vmul.f32 %v2873_v34, %v1726_v32  ;;  %v1741_v35 = vsel %vm776_vm2, %v1739_v33, 0.0  ;;  %v1734_v37 = vmul.f32 %v2873_v34, %v1732_v31 }
 0xd2d   :  { %1742 = vadd.xlane.f32.xlu1 %v1741_v35 }
 0xd2e   :  { %v1730_v15 = vmul.f32 %v1728_v24, %v1691_v3  ;;  %v1736_v38 = vmul.f32 %v1734_v37, %v1702_v50 }
 0xd30   :  { %v3564_v39 = vadd.f32 %v1736_v38, %v1730_v15 }
 0xd32   :  { %v1740_v27 = vmul.f32 %v3564_v39, %v3564_v39 }
 0xd34   :  { %v1744_v40 = vsel %vm776_vm2, %v1740_v27, 0.0 }
 0xd35   :  { %1745 = vadd.xlane.f32.xlu2 %v1744_v40 }
 0xda0   :  { %v1743_v36 = vpop.xlane.xlu1 %1742 }
 0xda1   :  { %2874 = vrsqrt.f32 %v1743_v36  ;;  %vm1754_vm10 = vcmp.eq.f32.partialorder %v1743_v36, inf  ;;  %v1757_v50 = vand.u32 2147483648, %v1743_v36  ;;  %vm1756_vm11 = vcmp.eq.f32.partialorder %v1743_v36, 0.0 }
 0xda7   :  { %v2875_v41 = vpop.eup %2874 }
 0xda8   :  { %v1748_v42 = vmul.f32 %v2875_v41, %v1743_v36  ;;  %v1746_v43 = vpop.xlane.xlu2 %1745 }
 0xda9   :  { %2876 = vrsqrt.f32 %v1746_v43  ;;  %vm1766_vm12 = vcmp.eq.f32.partialorder %v1746_v43, inf  ;;  %v1769_v63 = vand.u32 2147483648, %v1746_v43  ;;  %vm1768_vm13 = vcmp.eq.f32.partialorder %v1746_v43, 0.0 }
 0xdaa   :  { %v1749_v44 = vmul.f32 %v2875_v41, %v1748_v42 }
 0xdac   :  { %v1750_v45 = vmul.f32 0.5, %v1749_v44 }
 0xdae   :  { %v1751_v46 = vsub.f32 1.5, %v1750_v45 }
 0xdaf   :  { %v2877_v47 = vpop.eup %2876 }
 0xdb0   :  { %v1760_v13 = vmul.f32 %v2877_v47, %v1746_v43  ;;  %v1752_v48 = vmul.f32 %v2875_v41, %v1751_v46 }
 0xdb2   :  { %v1761_v49 = vmul.f32 %v2877_v47, %v1760_v13  ;;  %v1753_v22 = vmul.f32 %v1752_v48, %v1743_v36 }
 0xdb4   :  { %v1762_v55 = vmul.f32 0.5, %v1761_v49  ;;  %v1755_v54 = vsel %vm1754_vm10, %v1743_v36, %v1753_v22 }
 0xdb5   :  { %v1758_v56 = vsel %vm1756_vm11, %v1757_v50, %v1755_v54  ;;  %v1931_v50 = vld [vmem:[%s3726_s14 + $0x18] sm:$0xff]  ;;  %v1929_v54 = vld [vmem:[%s3726_s14 + $0x8] sm:$0xff] }
 0xdb6   :  { %v1763_v57 = vsub.f32 1.5, %v1762_v55  ;;  %v1773_v58 = vadd.f32 1e-07, %v1758_v56  ;;  %vm1771_vm14 = vcmp.gt.f32.partialorder %v1758_v56, 0.99999  ;;  %v1930_v55 = vld [vmem:[%s3726_s14 + $0x10] sm:$0xff]  ;;  %2445 = vmatpush.msra.mxu3 %v1931_v50 }
 0xdb7   :  { %v1928_v56 = vld [vmem:[%s3726_s14] sm:$0xff] }
 0xdb8   :  { %2878 = vrcp.f32 %v1773_v58  ;;  %v1764_v59 = vmul.f32 %v2877_v47, %v1763_v57  ;;  %2446 = vmatpush.msra.mxu3 %v1930_v55 }
 0xdba   :  { %v1765_v60 = vmul.f32 %v1764_v59, %v1746_v43  ;;  %2447 = vmatpush.msra.mxu3 %v1929_v54 }
 0xdbc   :  { %v1767_v1 = vsel %vm1766_vm12, %v1746_v43, %v1765_v60  ;;  %2448 = vmatpush.msra.mxu3 %v1928_v56 }
 0xdbd   :  { %v1770_v2 = vsel %vm1768_vm13, %v1769_v63, %v1767_v1 }
 0xdbe   :  { %v2879_v62 = vpop.eup %2878  ;;  %v1774_v3 = vadd.f32 1e-07, %v1770_v2  ;;  %vm1772_vm15 = vcmp.gt.f32.partialorder %v1770_v2, 0.99999 }
 0xdbf   :  { %v1777_v52 = vmul.f32 0.99999, %v2879_v62 }
 0xdc0   :  { %2880 = vrcp.f32 %v1774_v3 }
 0xdc1   :  { %v1779_v5 = vsel %vm1771_vm14, %v1777_v52, 1.0 }
 0xdc2   :  { %v1783_v53 = vmul.f32 %v1779_v5, %v1743_v36  ;;  %v1781_v32 = vmul.f32 %v1779_v5, %v3559_v30 }
 0xdc4   :  { %v1785_v6 = vmul.f32 %v1783_v53, %v1779_v5  ;;  %v1837_v27 = vadd.f32 1e-05, %v1781_v32 }
 0xdc6   :  { %v2881_v7 = vpop.eup %2880  ;;  %2882 = vrsqrt.f32 %v1785_v6  ;;  %vm1794_vm1 = vcmp.eq.f32.partialorder %v1785_v6, inf  ;;  %v1797_v51 = vand.u32 2147483648, %v1785_v6  ;;  %vm1796_vm3 = vcmp.eq.f32.partialorder %v1785_v6, 0.0 }
 0xdc7   :  { %v1778_v8 = vmul.f32 0.99999, %v2881_v7  ;;  %vm1817_vm6 = vweird.f32 %v1785_v6 }
 0xdc9   :  { %v1780_v9 = vsel %vm1772_vm15, %v1778_v8, 1.0 }
 0xdca   :  { %v1784_v10 = vmul.f32 %v1780_v9, %v1746_v43  ;;  %v1782_v41 = vmul.f32 %v1780_v9, %v3564_v39 }
 0xdcc   :  { %v2883_v11 = vpop.eup %2882  ;;  %v1786_v12 = vmul.f32 %v1784_v10, %v1780_v9  ;;  %v1838_v46 = vadd.f32 1e-05, %v1782_v41 }
 0xdcd   :  { %v1788_v14 = vmul.f32 %v2883_v11, %v1785_v6  ;;  %vm1818_vm4 = vweird.f32 %v2883_v11 }
 0xdce   :  { %2884 = vrsqrt.f32 %v1786_v12  ;;  %vm1806_vm5 = vcmp.eq.f32.partialorder %v1786_v12, inf  ;;  %v1809_v33 = vand.u32 2147483648, %v1786_v12  ;;  %vm1808_vm7 = vcmp.eq.f32.partialorder %v1786_v12, 0.0  ;;  %vm1819_vm10 = vmor %vm1817_vm6, %vm1818_vm4 }
 0xdcf   :  { %v1789_v16 = vmul.f32 %v2883_v11, %v1788_v14  ;;  %vm1827_vm12 = vweird.f32 %v1786_v12 }
 0xdd1   :  { %v1790_v17 = vmul.f32 0.5, %v1789_v16  ;;  %v1924_v16 = vld [vmem:[#allocation11 + $0x8] sm:$0xff] }
 0xdd3   :  { %v1791_v19 = vsub.f32 1.5, %v1790_v17 }
 0xdd4   :  { %v2885_v18 = vpop.eup %2884 }
 0xdd5   :  { %v1792_v4 = vmul.f32 %v2883_v11, %v1791_v19  ;;  %v1800_v20 = vmul.f32 %v2885_v18, %v1786_v12  ;;  %vm1828_vm11 = vweird.f32 %v2885_v18 }
 0xdd6   :  { %vm1829_vm13 = vmor %vm1827_vm12, %vm1828_vm11 }
 0xdd7   :  { %v1793_v21 = vmul.f32 %v1792_v4, %v1785_v6  ;;  %v1801_v23 = vmul.f32 %v2885_v18, %v1800_v20  ;;  %v1820_v37 = vsel %vm1819_vm10, %v2883_v11, %v1792_v4  ;;  %v1926_v11 = vld [vmem:[#allocation11 + $0x18] sm:$0xff]  ;;  %v1923_v20 = vld [vmem:[#allocation11] sm:$0xff] }
 0xdd8   :  { %2009 = vmatpush.msra.mxu0 %v1926_v11 }
 0xdd9   :  { %v1795_v0 = vsel %vm1794_vm1, %v1785_v6, %v1793_v21  ;;  %v1802_v61 = vmul.f32 0.5, %v1801_v23 }
 0xdda   :  { %v1798_v26 = vsel %vm1796_vm3, %v1797_v51, %v1795_v0 }
 0xddb   :  { %v1831_v28 = vmin.f32 %v1798_v26, 0.99999  ;;  %v1803_v25 = vsub.f32 1.5, %v1802_v61 }
 0xddd   :  { %2886 = vrcp.f32 %v1831_v28  ;;  %v1804_v29 = vmul.f32 %v2885_v18, %v1803_v25 }
 0xddf   :  { %v1805_v31 = vmul.f32 %v1804_v29, %v1786_v12  ;;  %v1830_v43 = vsel %vm1829_vm13, %v2885_v18, %v1804_v29 }
 0xde1   :  { %v1807_v34 = vsel %vm1806_vm5, %v1786_v12, %v1805_v31  ;;  %v1925_v12 = vld [vmem:[#allocation11 + $0x10] sm:$0xff] }
 0xde2   :  { %v1810_v24 = vsel %vm1808_vm7, %v1809_v33, %v1807_v34  ;;  %2010 = vmatpush.msra.mxu0 %v1925_v12 }
 0xde3   :  { %v2887_v35 = vpop.eup %2886  ;;  %v1832_v15 = vmin.f32 %v1810_v24, 0.99999 }
 0xde4   :  { %v1835_v38 = vmul.f32 %v2887_v35, %v1820_v37  ;;  %2011 = vmatpush.msra.mxu0 %v1924_v16  ;;  %v1927_v16 = vld [vmem:[%s3725_s13] sm:$0x1] }
 0xde5   :  { %2888 = vrcp.f32 %v1832_v15 }
 0xde6   :  { %v1839_v40 = vmul.f32 %v1837_v27, %v1835_v38  ;;  %2012 = vmatpush.msra.mxu0 %v1923_v20 }
 0xde8   :  { %v1841_v36 = vmax.f32 %v1839_v40, 0.0 }
 0xdea   :  { %v3571_v30 = vadd.f32 1e-05, %v1841_v36 }
 0xdeb   :  { %v2889_v42 = vpop.eup %2888 }
 0xdec   :  { %v1845_v44 = vmul.f32 %v3571_v30, %v3571_v30  ;;  %v1836_v45 = vmul.f32 %v2889_v42, %v1830_v43 }
 0xdee   :  { %v1847_v47 = vsel %vm776_vm2, %v1845_v44, 0.0  ;;  %v1840_v13 = vmul.f32 %v1838_v46, %v1836_v45 }
 0xdef   :  { %1848 = vadd.xlane.f32.xlu0 %v1847_v47 }
 0xdf0   :  { %v1842_v48 = vmax.f32 %v1840_v13, 0.0 }
 0xdf2   :  { %v3576_v49 = vadd.f32 1e-05, %v1842_v48 }
 0xdf4   :  { %v1846_v39 = vmul.f32 %v3576_v49, %v3576_v49 }
 0xdf6   :  { %v1850_v22 = vsel %vm776_vm2, %v1846_v39, 0.0 }
 0xdf7   :  { %1851 = vadd.xlane.f32.xlu1 %v1850_v22 }
 0xe62   :  { %v1849_v57 = vpop.xlane.xlu0 %1848 }
 0xe63   :  { %2890 = vrsqrt.f32 %v1849_v57  ;;  %vm1860_vm14 = vcmp.eq.f32.partialorder %v1849_v57, inf  ;;  %v1863_v6 = vand.u32 2147483648, %v1849_v57  ;;  %vm1862_vm15 = vcmp.eq.f32.partialorder %v1849_v57, 0.0 }
 0xe64   :  { %vm1883_vm3 = vweird.f32 %v1849_v57 }
 0xe69   :  { %v2891_v58 = vpop.eup %2890 }
 0xe6a   :  { %v1854_v59 = vmul.f32 %v2891_v58, %v1849_v57  ;;  %v1852_v60 = vpop.xlane.xlu1 %1851  ;;  %vm1884_vm1 = vweird.f32 %v2891_v58 }
 0xe6b   :  { %2892 = vrsqrt.f32 %v1852_v60  ;;  %vm1885_vm4 = vmor %vm1883_vm3, %vm1884_vm1  ;;  %vm1872_vm5 = vcmp.eq.f32.partialorder %v1852_v60, inf  ;;  %v1875_v4 = vand.u32 2147483648, %v1852_v60  ;;  %vm1874_vm6 = vcmp.eq.f32.partialorder %v1852_v60, 0.0 }
 0xe6c   :  { %v1855_v63 = vmul.f32 %v2891_v58, %v1854_v59  ;;  %vm1893_vm10 = vweird.f32 %v1852_v60 }
 0xe6e   :  { %v1856_v1 = vmul.f32 0.5, %v1855_v63 }
 0xe70   :  { %v1857_v2 = vsub.f32 1.5, %v1856_v1 }
 0xe71   :  { %v2893_v62 = vpop.eup %2892 }
 0xe72   :  { %v1858_v3 = vmul.f32 %v2891_v58, %v1857_v2  ;;  %v1866_v52 = vmul.f32 %v2893_v62, %v1852_v60  ;;  %vm1894_vm7 = vweird.f32 %v2893_v62 }
 0xe73   :  { %vm1895_vm11 = vmor %vm1893_vm10, %vm1894_vm7 }
 0xe74   :  { %v1859_v5 = vmul.f32 %v1858_v3, %v1849_v57  ;;  %v1867_v53 = vmul.f32 %v2893_v62, %v1866_v52  ;;  %v1886_v17 = vsel %vm1885_vm4, %v2891_v58, %v1858_v3 }
 0xe76   :  { %v1861_v7 = vsel %vm1860_vm14, %v1849_v57, %v1859_v5  ;;  %v1868_v8 = vmul.f32 0.5, %v1867_v53 }
 0xe77   :  { %v1864_v9 = vsel %vm1862_vm15, %v1863_v6, %v1861_v7 }
 0xe78   :  { %2894 = vtanh.f32 %v1864_v9  ;;  %v1869_v10 = vsub.f32 1.5, %v1868_v8  ;;  %v1903_v18 = vmul.f32 %v1886_v17, %v1864_v9 }
 0xe7a   :  { %v1870_v14 = vmul.f32 %v2893_v62, %v1869_v10 }
 0xe7c   :  { %v1871_v19 = vmul.f32 %v1870_v14, %v1852_v60  ;;  %v1896_v26 = vsel %vm1895_vm11, %v2893_v62, %v1870_v14 }
 0xe7e   :  { %v2895_v21 = vpop.eup %2894  ;;  %v1873_v23 = vsel %vm1872_vm5, %v1852_v60, %v1871_v19 }
 0xe7f   :  { %v1905_v51 = vmul.f32 %v2895_v21, %v1903_v18  ;;  %v1876_v0 = vsel %vm1874_vm6, %v1875_v4, %v1873_v23  ;;  %v1899_v29 = vmul.f32 %v2895_v21, %v1886_v17  ;;  %v3622_v17 = vadd.f32 1e-05, %v1927_v16 }
 0xe80   :  { %2896 = vtanh.f32 %v1876_v0  ;;  %v1904_v28 = vmul.f32 %v1896_v26, %v1876_v0 }
 0xe81   :  { %v1909_v61 = vadd.f32 1e-07, %v1905_v51  ;;  %v1901_v24 = vmul.f32 %v1899_v29, %v3571_v30  ;;  %vm1907_vm12 = vcmp.gt.f32.partialorder %v1905_v51, 0.99999  ;;  %v2099_v19 = vmul.f32 %v3622_v17, %v3622_v17 }
 0xe83   :  { %2898 = vrcp.f32 %v1909_v61  ;;  %v2100_v18 = vsel %vm855_vm9, %v2099_v19, 0.0 }
 0xe84   :  { %2101 = vadd.xlane.f32.xlu1 %v2100_v18 }
 0xe86   :  { %v2897_v25 = vpop.eup %2896 }
 0xe87   :  { %v1906_v31 = vmul.f32 %v2897_v25, %v1904_v28  ;;  %v1900_v40 = vmul.f32 %v2897_v25, %v1896_v26 }
 0xe89   :  { %v2899_v32 = vpop.eup %2898  ;;  %v1910_v33 = vadd.f32 1e-07, %v1906_v31  ;;  %v1902_v42 = vmul.f32 %v1900_v40, %v3576_v49  ;;  %vm1908_vm13 = vcmp.gt.f32.partialorder %v1906_v31, 0.99999 }
 0xe8a   :  { %v1913_v34 = vmul.f32 0.99999, %v2899_v32 }
 0xe8b   :  { %2900 = vrcp.f32 %v1910_v33 }
 0xe8c   :  { %v1915_v35 = vsel %vm1907_vm12, %v1913_v34, 1.0 }
 0xe8d   :  { %v1917_v37 = vmul.f32 %v1915_v35, %v1901_v24  ;;  %v1919_v15 = vmul.f32 %v1915_v35, %v1905_v51 }
 0xe8f   :  { %v3594_v38 = vmul.f32 %v1919_v15, %v1919_v15  ;;  %v1987_v27 = vadd.f32 1e-05, %v1917_v37 }
 0xe91   :  { %v2901_v36 = vpop.eup %2900  ;;  %2902 = vrsqrt.f32 %v3594_v38  ;;  %2671 = vmatmul.msk.f32.vlgmr.msra.gmra.mxu3 %vm776_vm2, %v1987_v27  ;;  %vm1944_vm14 = vcmp.eq.f32.partialorder %v3594_v38, inf  ;;  %v1947_v57 = vand.u32 2147483648, %v3594_v38  ;;  %vm1946_vm15 = vcmp.eq.f32.partialorder %v3594_v38, 0.0 }
 0xe92   :  { %v1914_v41 = vmul.f32 0.99999, %v2901_v36  ;;  %vm1967_vm4 = vweird.f32 %v3594_v38 }
 0xe94   :  { %v1916_v43 = vsel %vm1908_vm13, %v1914_v41, 1.0 }
 0xe95   :  { %v1918_v30 = vmul.f32 %v1916_v43, %v1902_v42  ;;  %v1920_v44 = vmul.f32 %v1916_v43, %v1906_v31 }
 0xe97   :  { %v2903_v45 = vpop.eup %2902  ;;  %v3599_v46 = vmul.f32 %v1920_v44, %v1920_v44  ;;  %v1988_v47 = vadd.f32 1e-05, %v1918_v30 }
 0xe98   :  { %v1938_v13 = vmul.f32 %v2903_v45, %v3594_v38  ;;  %vm1968_vm1 = vweird.f32 %v2903_v45 }
 0xe99   :  { %2904 = vrsqrt.f32 %v3599_v46  ;;  %2672 = vmatmul.msk.f32.gmra.mxu3 %vm776_vm2, %v1988_v47  ;;  %vm1956_vm3 = vcmp.eq.f32.partialorder %v3599_v46, inf  ;;  %v1959_v3 = vand.u32 2147483648, %v3599_v46  ;;  %vm1958_vm5 = vcmp.eq.f32.partialorder %v3599_v46, 0.0  ;;  %vm1969_vm6 = vmor %vm1967_vm4, %vm1968_vm1 }
 0xe9a   :  { %v1939_v48 = vmul.f32 %v2903_v45, %v1938_v13  ;;  %vm1977_vm10 = vweird.f32 %v3599_v46 }
 0xe9c   :  { %v1940_v39 = vmul.f32 0.5, %v1939_v48 }
 0xe9e   :  { %v1941_v22 = vsub.f32 1.5, %v1940_v39 }
 0xe9f   :  { %v2905_v50 = vpop.eup %2904 }
 0xea0   :  { %v1942_v55 = vmul.f32 %v2903_v45, %v1941_v22  ;;  %v1950_v49 = vmul.f32 %v2905_v50, %v3599_v46  ;;  %vm1978_vm7 = vweird.f32 %v2905_v50 }
 0xea1   :  { %vm1979_vm11 = vmor %vm1977_vm10, %vm1978_vm7 }
 0xea2   :  { %v1943_v54 = vmul.f32 %v1942_v55, %v3594_v38  ;;  %v1951_v56 = vmul.f32 %v2905_v50, %v1950_v49  ;;  %v1970_v6 = vsel %vm1969_vm6, %v2903_v45, %v1942_v55 }
 0xea4   :  { %v1945_v58 = vsel %vm1944_vm14, %v3594_v38, %v1943_v54  ;;  %v1952_v59 = vmul.f32 0.5, %v1951_v56 }
 0xea5   :  { %v1948_v60 = vsel %vm1946_vm15, %v1947_v57, %v1945_v58 }
 0xea6   :  { %v1981_v63 = vmin.f32 %v1948_v60, 0.99999  ;;  %v1953_v1 = vsub.f32 1.5, %v1952_v59 }
 0xea8   :  { %2906 = vrcp.f32 %v1981_v63  ;;  %v1954_v2 = vmul.f32 %v2905_v50, %v1953_v1  ;;  %v2104_v1 = vperm.slane %v3622_v17, 0 }
 0xeaa   :  { %v1955_v62 = vmul.f32 %v1954_v2, %v3599_v46  ;;  %v1980_v11 = vsel %vm1979_vm11, %v2905_v50, %v1954_v2 }
 0xeac   :  { %v1957_v52 = vsel %vm1956_vm3, %v3599_v46, %v1955_v62 }
 0xead   :  { %v1960_v5 = vsel %vm1958_vm5, %v1959_v3, %v1957_v52 }
 0xeae   :  { %v2907_v53 = vpop.eup %2906  ;;  %v1982_v7 = vmin.f32 %v1960_v5, 0.99999 }
 0xeaf   :  { %v1985_v8 = vmul.f32 %v2907_v53, %v1970_v6 }
 0xeb0   :  { %2908 = vrcp.f32 %v1982_v7 }
 0xeb1   :  { %v1989_v9 = vmul.f32 %v1987_v27, %v1985_v8 }
 0xeb3   :  { %2665 = vmatmul.msk.f32.vlgmr.msra.gmra.mxu0 %vm776_vm2, %v1989_v9 }
 0xeb6   :  { %v2909_v10 = vpop.eup %2908 }
 0xeb7   :  { %v1986_v12 = vmul.f32 %v2909_v10, %v1980_v11 }
 0xeb9   :  { %v1990_v14 = vmul.f32 %v1988_v47, %v1986_v12 }
 0xebb   :  { %2666 = vmatmul.msk.f32.gmra.mxu0 %vm776_vm2, %v1990_v14 }
 0xef7   :  { %v2102_v17 = vpop.xlane.xlu1 %2101 }
 0xef8   :  { %v2118_v19 = vperm.slane %v2102_v17, 0 }
 0xf30   :  { %v2014_v4 = vpop.f32.mrf.mxu0 }
 0xf31   :  { %v2015_v20 = vadd.f32 1e-05, %v2014_v4 }
 0xf33   :  { %v2020_v21 = vmul.f32 %v2015_v20, %v2015_v20 }
 0xf35   :  { %v2022_v23 = vsel %vm776_vm2, %v2020_v21, 0.0 }
 0xf36   :  { %2023 = vadd.xlane.f32.xlu0 %v2022_v23 }
 0xf38   :  { %v2017_v51 = vpop.f32.mrf.mxu0 }
 0xf39   :  { %v3628_v0 = vadd.f32 1e-05, %v2017_v51 }
 0xf3b   :  { %v2021_v61 = vmul.f32 %v3628_v0, %v3628_v0 }
 0xf3d   :  { %v2025_v26 = vsel %vm776_vm2, %v2021_v61, 0.0 }
 0xf3e   :  { %2026 = vadd.xlane.f32.xlu2 %v2025_v26 }
 0xfa9   :  { %v2024_v28 = vpop.xlane.xlu0 %2023 }
 0xfaa   :  { %2910 = vrsqrt.f32 %v2024_v28  ;;  %vm2035_vm9 = vcmp.eq.f32.partialorder %v2024_v28, inf  ;;  %v2038_v40 = vand.u32 2147483648, %v2024_v28  ;;  %vm2037_vm12 = vcmp.eq.f32.partialorder %v2024_v28, 0.0 }
 0xfab   :  { %vm2058_vm14 = vweird.f32 %v2024_v28 }
 0xfb0   :  { %v2911_v25 = vpop.eup %2910 }
 0xfb1   :  { %v2027_v29 = vpop.xlane.xlu2 %2026  ;;  %v2029_v31 = vmul.f32 %v2911_v25, %v2024_v28  ;;  %vm2059_vm13 = vweird.f32 %v2911_v25 }
 0xfb2   :  { %2912 = vrsqrt.f32 %v2027_v29  ;;  %vm2060_vm15 = vmor %vm2058_vm14, %vm2059_vm13  ;;  %vm2047_vm1 = vcmp.eq.f32.partialorder %v2027_v29, inf  ;;  %v2050_v13 = vand.u32 2147483648, %v2027_v29  ;;  %vm2049_vm3 = vcmp.eq.f32.partialorder %v2027_v29, 0.0 }
 0xfb3   :  { %v2030_v32 = vmul.f32 %v2911_v25, %v2029_v31  ;;  %vm2068_vm5 = vweird.f32 %v2027_v29 }
 0xfb5   :  { %v2031_v33 = vmul.f32 0.5, %v2030_v32 }
 0xfb7   :  { %v2032_v34 = vsub.f32 1.5, %v2031_v33 }
 0xfb8   :  { %v2913_v24 = vpop.eup %2912 }
 0xfb9   :  { %v2033_v35 = vmul.f32 %v2911_v25, %v2032_v34  ;;  %v2041_v37 = vmul.f32 %v2913_v24, %v2027_v29  ;;  %vm2069_vm4 = vweird.f32 %v2913_v24 }
 0xfba   :  { %vm2070_vm6 = vmor %vm2068_vm5, %vm2069_vm4 }
 0xfbb   :  { %v2034_v15 = vmul.f32 %v2033_v35, %v2024_v28  ;;  %v2042_v27 = vmul.f32 %v2913_v24, %v2041_v37  ;;  %v2061_v44 = vsel %vm2060_vm15, %v2911_v25, %v2033_v35 }
 0xfbd   :  { %v2036_v36 = vsel %vm2035_vm9, %v2024_v28, %v2034_v15  ;;  %v2043_v41 = vmul.f32 0.5, %v2042_v27 }
 0xfbe   :  { %v2039_v42 = vsel %vm2037_vm12, %v2038_v40, %v2036_v36 }
 0xfbf   :  { %2914 = vtanh.f32 %v2039_v42  ;;  %v2044_v43 = vsub.f32 1.5, %v2043_v41  ;;  %v2078_v47 = vmul.f32 %v2061_v44, %v2039_v42 }
 0xfc1   :  { %v2045_v30 = vmul.f32 %v2913_v24, %v2044_v43 }
 0xfc3   :  { %v2046_v45 = vmul.f32 %v2045_v30, %v2027_v29  ;;  %v2071_v49 = vsel %vm2070_vm6, %v2913_v24, %v2045_v30 }
 0xfc5   :  { %v2915_v48 = vpop.eup %2914  ;;  %v2048_v39 = vsel %vm2047_vm1, %v2027_v29, %v2046_v45 }
 0xfc6   :  { %v2080_v22 = vmul.f32 %v2915_v48, %v2078_v47  ;;  %v2051_v50 = vsel %vm2049_vm3, %v2050_v13, %v2048_v39  ;;  %v2074_v57 = vmul.f32 %v2915_v48, %v2061_v44 }
 0xfc7   :  { %2916 = vtanh.f32 %v2051_v50  ;;  %v2079_v54 = vmul.f32 %v2071_v49, %v2051_v50 }
 0xfc8   :  { %v2084_v55 = vadd.f32 1e-07, %v2080_v22  ;;  %v2076_v2 = vmul.f32 %v2074_v57, %v2015_v20  ;;  %vm2082_vm7 = vcmp.gt.f32.partialorder %v2080_v22, 0.99999 }
 0xfca   :  { %2918 = vrcp.f32 %v2084_v55 }
 0xfcd   :  { %v2917_v56 = vpop.eup %2916 }
 0xfce   :  { %v2081_v58 = vmul.f32 %v2917_v56, %v2079_v54  ;;  %v2075_v53 = vmul.f32 %v2917_v56, %v2071_v49 }
 0xfd0   :  { %v2919_v59 = vpop.eup %2918  ;;  %v2085_v60 = vadd.f32 1e-07, %v2081_v58  ;;  %v2077_v9 = vmul.f32 %v2075_v53, %v3628_v0  ;;  %vm2083_vm10 = vcmp.gt.f32.partialorder %v2081_v58, 0.99999 }
 0xfd1   :  { %v2088_v63 = vmul.f32 0.99999, %v2919_v59 }
 0xfd2   :  { %2920 = vrcp.f32 %v2085_v60 }
 0xfd3   :  { %v2090_v62 = vsel %vm2082_vm7, %v2088_v63, 1.0 }
 0xfd4   :  { %v2092_v3 = vmul.f32 %v2090_v62, %v2076_v2  ;;  %v2094_v52 = vmul.f32 %v2090_v62, %v2080_v22 }
 0xfd6   :  { %v2106_v5 = vmul.f32 %v2104_v1, %v2092_v3  ;;  %v2096_v18 = vmul.f32 %v2094_v52, %v2094_v52 }
 0xfd8   :  { %v2921_v6 = vpop.eup %2920  ;;  %v2108_v7 = vsel %vm776_vm2, %v2106_v5, 0.0  ;;  %v2119_v21 = vmul.f32 %v2118_v19, %v2096_v18  ;;  %v2133_v32 = vsub.f32 1.0, %v2096_v18 }
 0xfd9   :  { %2109 = vadd.xlane.f32.xlu0 %v2108_v7  ;;  %v2089_v8 = vmul.f32 0.99999, %v2921_v6 }
 0xfdb   :  { %v2091_v10 = vsel %vm2083_vm10, %v2089_v8, 1.0 }
 0xfdc   :  { %v2093_v11 = vmul.f32 %v2091_v10, %v2077_v9  ;;  %v2095_v12 = vmul.f32 %v2091_v10, %v2081_v58 }
 0xfde   :  { %v2107_v14 = vmul.f32 %v2104_v1, %v2093_v11  ;;  %v2097_v26 = vmul.f32 %v2095_v12, %v2095_v12 }
 0xfe0   :  { %v2111_v16 = vsel %vm776_vm2, %v2107_v14, 0.0  ;;  %v2120_v25 = vmul.f32 %v2118_v19, %v2097_v26  ;;  %v2134_v36 = vsub.f32 1.0, %v2097_v26 }
 0xfe1   :  { %2112 = vadd.xlane.f32.xlu2 %v2111_v16 }
0x104c   :  { %v2110_v4 = vpop.xlane.xlu0 %2109 }
0x104d   :  { %v2114_v20 = vmul.f32 2.0, %v2110_v4 }
0x104f   :  { %v2116_v23 = vadd.f32 1.0, %v2114_v20 }
0x1051   :  { %v2121_v51 = vadd.f32 %v2119_v21, %v2116_v23  ;;  %v2127_v33 = vadd.f32 %v2118_v19, %v2116_v23 }
0x1053   :  { %v2123_v61 = vadd.f32 1e-05, %v2121_v51 }
0x1054   :  { %v2113_v28 = vpop.xlane.xlu2 %2112 }
0x1055   :  { %2922 = vrcp.f32 %v2123_v61  ;;  %v2115_v0 = vmul.f32 2.0, %v2113_v28 }
0x1057   :  { %v2117_v29 = vadd.f32 1.0, %v2115_v0 }
0x1059   :  { %v2122_v31 = vadd.f32 %v2120_v25, %v2117_v29  ;;  %v2128_v41 = vadd.f32 %v2118_v19, %v2117_v29 }
0x105b   :  { %v2923_v34 = vpop.eup %2922  ;;  %v2124_v24 = vadd.f32 1e-05, %v2122_v31 }
0x105c   :  { %v2129_v35 = vmul.f32 %v2923_v34, %v2127_v33  ;;  %v2135_v37 = vmul.f32 %v2923_v34, %v2133_v32 }
0x105d   :  { %2924 = vrcp.f32 %v2124_v24 }
0x105e   :  { %v2131_v15 = vmul.f32 %v2129_v35, %v2092_v3  ;;  %v2137_v27 = vmul.f32 %v2135_v37, %v2104_v1 }
0x1060   :  { %v3637_v40 = vadd.f32 %v2137_v27, %v2131_v15 }
0x1062   :  { %v2141_v42 = vmul.f32 %v3637_v40, %v3637_v40 }
0x1063   :  { %v2925_v43 = vpop.eup %2924 }
0x1064   :  { %v2130_v30 = vmul.f32 %v2925_v43, %v2128_v41  ;;  %v2143_v44 = vsel %vm776_vm2, %v2141_v42, 0.0  ;;  %v2136_v45 = vmul.f32 %v2925_v43, %v2134_v36 }
0x1065   :  { %2144 = vadd.xlane.f32.xlu2 %v2143_v44 }
0x1066   :  { %v2132_v47 = vmul.f32 %v2130_v30, %v2093_v11  ;;  %v2138_v13 = vmul.f32 %v2136_v45, %v2104_v1 }
0x1068   :  { %v3642_v48 = vadd.f32 %v2138_v13, %v2132_v47 }
0x106a   :  { %v2142_v39 = vmul.f32 %v3642_v48, %v3642_v48 }
0x106c   :  { %v2146_v22 = vsel %vm776_vm2, %v2142_v39, 0.0 }
0x106d   :  { %2147 = vadd.xlane.f32.xlu1 %v2146_v22 }
0x10d8   :  { %v2145_v50 = vpop.xlane.xlu2 %2144 }
0x10d9   :  { %2926 = vrsqrt.f32 %v2145_v50  ;;  %vm2156_vm11 = vcmp.eq.f32.partialorder %v2145_v50, inf  ;;  %v2159_v62 = vand.u32 2147483648, %v2145_v50  ;;  %vm2158_vm9 = vcmp.eq.f32.partialorder %v2145_v50, 0.0 }
0x10df   :  { %v2927_v55 = vpop.eup %2926 }
0x10e0   :  { %v2150_v49 = vmul.f32 %v2927_v55, %v2145_v50  ;;  %v2148_v54 = vpop.xlane.xlu1 %2147 }
0x10e1   :  { %2928 = vrsqrt.f32 %v2148_v54  ;;  %vm2168_vm12 = vcmp.eq.f32.partialorder %v2148_v54, inf  ;;  %v2171_v9 = vand.u32 2147483648, %v2148_v54  ;;  %vm2170_vm13 = vcmp.eq.f32.partialorder %v2148_v54, 0.0 }
0x10e2   :  { %v2151_v56 = vmul.f32 %v2927_v55, %v2150_v49 }
0x10e4   :  { %v2152_v57 = vmul.f32 0.5, %v2151_v56 }
0x10e6   :  { %v2153_v58 = vsub.f32 1.5, %v2152_v57 }
0x10e7   :  { %v2929_v59 = vpop.eup %2928 }
0x10e8   :  { %v2162_v60 = vmul.f32 %v2929_v59, %v2148_v54  ;;  %v2154_v63 = vmul.f32 %v2927_v55, %v2153_v58 }
0x10ea   :  { %v2163_v1 = vmul.f32 %v2929_v59, %v2162_v60  ;;  %v2155_v2 = vmul.f32 %v2154_v63, %v2145_v50  ;;  %v2988_v60 = vld [vmem:[#allocation2] sm:$0xff] }
0x10ec   :  { %v2164_v3 = vmul.f32 0.5, %v2163_v1  ;;  %v2157_v52 = vsel %vm2156_vm11, %v2145_v50, %v2155_v2 }
0x10ed   :  { %v2160_v5 = vsel %vm2158_vm9, %v2159_v62, %v2157_v52 }
0x10ee   :  { %v2165_v53 = vsub.f32 1.5, %v2164_v3  ;;  %v2175_v6 = vadd.f32 1e-07, %v2160_v5  ;;  %vm2173_vm14 = vcmp.gt.f32.partialorder %v2160_v5, 0.99999 }
0x10f0   :  { %v2166_v7 = vmul.f32 %v2929_v59, %v2165_v53  ;;  %2930 = vrcp.f32 %v2175_v6  ;;  %v1935_v53 = vld [vmem:[%s3727_s15 + $0x18] sm:$0xff]  ;;  %v1934_v6 = vld [vmem:[%s3727_s15 + $0x10] sm:$0xff] }
0x10f1   :  { %2416 = vmatpush.msra.mxu2 %v1935_v53 }
0x10f2   :  { %v2167_v8 = vmul.f32 %v2166_v7, %v2148_v54  ;;  %v1933_v7 = vld [vmem:[%s3727_s15 + $0x8] sm:$0xff] }
0x10f3   :  { %2417 = vmatpush.msra.mxu2 %v1934_v6 }
0x10f4   :  { %v2169_v10 = vsel %vm2168_vm12, %v2148_v54, %v2167_v8  ;;  %v1932_v8 = vld [vmem:[%s3727_s15] sm:$0xff] }
0x10f5   :  { %v2172_v11 = vsel %vm2170_vm13, %v2171_v9, %v2169_v10  ;;  %2418 = vmatpush.msra.mxu2 %v1933_v7 }
0x10f6   :  { %v2931_v12 = vpop.eup %2930  ;;  %v2176_v14 = vadd.f32 1e-07, %v2172_v11  ;;  %vm2174_vm15 = vcmp.gt.f32.partialorder %v2172_v11, 0.99999 }
0x10f7   :  { %v2179_v16 = vmul.f32 0.99999, %v2931_v12  ;;  %2419 = vmatpush.msra.mxu2 %v1932_v8 }
0x10f8   :  { %2932 = vrcp.f32 %v2176_v14 }
0x10f9   :  { %v2181_v17 = vsel %vm2173_vm14, %v2179_v16, 1.0 }
0x10fa   :  { %v2185_v19 = vmul.f32 %v2181_v17, %v2145_v50  ;;  %v2183_v39 = vmul.f32 %v2181_v17, %v3637_v40 }
0x10fc   :  { %v2187_v18 = vmul.f32 %v2185_v19, %v2181_v17  ;;  %v2239_v58 = vadd.f32 1e-05, %v2183_v39 }
0x10fe   :  { %v2933_v4 = vpop.eup %2932  ;;  %2934 = vrsqrt.f32 %v2187_v18  ;;  %vm2196_vm1 = vcmp.eq.f32.partialorder %v2187_v18, inf  ;;  %v2199_v37 = vand.u32 2147483648, %v2187_v18  ;;  %vm2198_vm3 = vcmp.eq.f32.partialorder %v2187_v18, 0.0 }
0x10ff   :  { %v2180_v20 = vmul.f32 0.99999, %v2933_v4  ;;  %vm2219_vm10 = vweird.f32 %v2187_v18 }
0x1101   :  { %v2182_v21 = vsel %vm2174_vm15, %v2180_v20, 1.0 }
0x1102   :  { %v2186_v23 = vmul.f32 %v2182_v21, %v2148_v54  ;;  %v2184_v47 = vmul.f32 %v2182_v21, %v3642_v48  ;;  %v2989_v48 = vld [vmem:[#allocation2 + $0x8] sm:$0xff] }
0x1104   :  { %v2935_v51 = vpop.eup %2934  ;;  %v2188_v61 = vmul.f32 %v2186_v23, %v2182_v21  ;;  %v2240_v54 = vadd.f32 1e-05, %v2184_v47 }
0x1105   :  { %v2190_v26 = vmul.f32 %v2935_v51, %v2187_v18  ;;  %vm2220_vm6 = vweird.f32 %v2935_v51 }
0x1106   :  { %2936 = vrsqrt.f32 %v2188_v61  ;;  %vm2208_vm4 = vcmp.eq.f32.partialorder %v2188_v61, inf  ;;  %v2211_v43 = vand.u32 2147483648, %v2188_v61  ;;  %vm2210_vm5 = vcmp.eq.f32.partialorder %v2188_v61, 0.0  ;;  %vm2221_vm9 = vmor %vm2219_vm10, %vm2220_vm6 }
0x1107   :  { %v2191_v28 = vmul.f32 %v2935_v51, %v2190_v26  ;;  %vm2229_vm11 = vweird.f32 %v2188_v61 }
0x1109   :  { %v2192_v0 = vmul.f32 0.5, %v2191_v28 }
0x110b   :  { %v2193_v25 = vsub.f32 1.5, %v2192_v0 }
0x110c   :  { %v2937_v29 = vpop.eup %2936 }
0x110d   :  { %v2202_v31 = vmul.f32 %v2937_v29, %v2188_v61  ;;  %v2194_v32 = vmul.f32 %v2935_v51, %v2193_v25  ;;  %vm2230_vm7 = vweird.f32 %v2937_v29 }
0x110e   :  { %vm2231_vm12 = vmor %vm2229_vm11, %vm2230_vm7 }
0x110f   :  { %v2203_v33 = vmul.f32 %v2937_v29, %v2202_v31  ;;  %v2195_v34 = vmul.f32 %v2194_v32, %v2187_v18  ;;  %v2222_v55 = vsel %vm2221_vm9, %v2935_v51, %v2194_v32 }
0x1111   :  { %v2204_v24 = vmul.f32 0.5, %v2203_v33  ;;  %v2197_v35 = vsel %vm2196_vm1, %v2187_v18, %v2195_v34 }
0x1112   :  { %v2200_v27 = vsel %vm2198_vm3, %v2199_v37, %v2197_v35 }
0x1113   :  { %v2205_v15 = vsub.f32 1.5, %v2204_v24  ;;  %v2233_v42 = vmin.f32 %v2200_v27, 0.99999 }
0x1115   :  { %v2206_v36 = vmul.f32 %v2937_v29, %v2205_v15  ;;  %2938 = vrcp.f32 %v2233_v42 }
0x1117   :  { %v2207_v41 = vmul.f32 %v2206_v36, %v2188_v61  ;;  %v2232_v50 = vsel %vm2231_vm12, %v2937_v29, %v2206_v36 }
0x1119   :  { %v2209_v30 = vsel %vm2208_vm4, %v2188_v61, %v2207_v41 }
0x111a   :  { %v2212_v44 = vsel %vm2210_vm5, %v2211_v43, %v2209_v30 }
0x111b   :  { %v2234_v45 = vmin.f32 %v2212_v44, 0.99999  ;;  %v2939_v13 = vpop.eup %2938 }
0x111c   :  { %v2237_v56 = vmul.f32 %v2939_v13, %v2222_v55 }
0x111d   :  { %2940 = vrcp.f32 %v2234_v45 }
0x111e   :  { %v2241_v59 = vmul.f32 %v2239_v58, %v2237_v56 }
0x1123   :  { %v2941_v22 = vpop.eup %2940 }
0x1124   :  { %v2238_v49 = vmul.f32 %v2941_v22, %v2232_v50 }
0x1126   :  { %v2242_v57 = vmul.f32 %v2240_v54, %v2238_v49 }
0x1128   :  { %2257 = vmatpush.msra.mxu1 %v2242_v57 }
0x112a   :  { %2258 = vmatpush.msra.mxu1 %v2241_v59 }
0x112b   :  { %2667 = vmatmul.msk.f32.vlgmr.msra.gmra.mxu1 %vm159_vm0, %v2988_v60 }
0x1133   :  { %2668 = vmatmul.msk.f32.gmra.mxu1 %vm159_vm0, %v2989_v48 }
0x11a8   :  { %v2260_v63 = vpop.f32.mrf.mxu1 }
0x11a9   :  { %v3651_v1 = vadd.f32 1e-05, %v2260_v63 }
0x11ab   :  { %v2266_v40 = vmul.f32 %v3651_v1, %v3651_v1 }
0x11ad   :  { %v2268_v2 = vsel %vm776_vm2, %v2266_v40, 0.0 }
0x11ae   :  { %2269 = vadd.xlane.f32.xlu0 %v2268_v2 }
0x11b0   :  { %v2263_v62 = vpop.f32.mrf.mxu1 }
0x11b1   :  { %v3656_v3 = vadd.f32 1e-05, %v2263_v62 }
0x11b3   :  { %v2267_v52 = vmul.f32 %v3656_v3, %v3656_v3 }
0x11b5   :  { %v2271_v5 = vsel %vm776_vm2, %v2267_v52, 0.0 }
0x11b6   :  { %2272 = vadd.xlane.f32.xlu1 %v2271_v5 }
0x1221   :  { %v2270_v9 = vpop.xlane.xlu0 %2269 }
0x1222   :  { %2942 = vrsqrt.f32 %v2270_v9  ;;  %vm2281_vm13 = vcmp.eq.f32.partialorder %v2270_v9, inf  ;;  %v2284_v23 = vand.u32 2147483648, %v2270_v9  ;;  %vm2283_vm14 = vcmp.eq.f32.partialorder %v2270_v9, 0.0 }
0x1223   :  { %vm2304_vm1 = vweird.f32 %v2270_v9 }
0x1228   :  { %v2943_v10 = vpop.eup %2942 }
0x1229   :  { %v2275_v11 = vmul.f32 %v2943_v10, %v2270_v9  ;;  %v2273_v12 = vpop.xlane.xlu1 %2272  ;;  %vm2305_vm15 = vweird.f32 %v2943_v10 }
0x122a   :  { %2944 = vrsqrt.f32 %v2273_v12  ;;  %vm2306_vm3 = vmor %vm2304_vm1, %vm2305_vm15  ;;  %vm2293_vm4 = vcmp.eq.f32.partialorder %v2273_v12, inf  ;;  %v2296_v32 = vand.u32 2147483648, %v2273_v12  ;;  %vm2295_vm5 = vcmp.eq.f32.partialorder %v2273_v12, 0.0 }
0x122b   :  { %v2276_v14 = vmul.f32 %v2943_v10, %v2275_v11  ;;  %vm2314_vm7 = vweird.f32 %v2273_v12 }
0x122d   :  { %v2277_v16 = vmul.f32 0.5, %v2276_v14 }
0x122f   :  { %v2278_v17 = vsub.f32 1.5, %v2277_v16  ;;  %v1936_v16 = vld [vmem:[%s3728_s16] sm:$0x1]  ;;  %s3176_s16 = smov [#allocation13]  }
0x1230   :  { %v2945_v19 = vpop.eup %2944  ;;  %s2631_s5 = sshll.u32 %s3176_s16, 4  ;;  %s2632_s5 = int_to_ptr.vmem [resolvable:$true] %s2631_s5 }
0x1231   :  { %v2279_v18 = vmul.f32 %v2943_v10, %v2278_v17  ;;  %v2287_v4 = vmul.f32 %v2945_v19, %v2273_v12  ;;  %vm2315_vm6 = vweird.f32 %v2945_v19  ;;  %v3682_v17 = vadd.f32 1e-05, %v1936_v16 }
0x1232   :  { %vm2316_vm10 = vmor %vm2314_vm7, %vm2315_vm6 }
0x1233   :  { %v2280_v20 = vmul.f32 %v2279_v18, %v2270_v9  ;;  %v2288_v21 = vmul.f32 %v2945_v19, %v2287_v4  ;;  %v2307_v25 = vsel %vm2306_vm3, %v2943_v10, %v2279_v18  ;;  %v2539_v18 = vmul.f32 %v3682_v17, %v3682_v17 }
0x1234   :  { %v2544_v16 = vperm.slane %v3682_v17, 0 }
0x1235   :  { %v2282_v51 = vsel %vm2281_vm13, %v2270_v9, %v2280_v20  ;;  %v2289_v61 = vmul.f32 0.5, %v2288_v21  ;;  %v2540_v21 = vsel %vm407_vm8, %v2539_v18, 0.0 }
0x1236   :  { %v2285_v26 = vsel %vm2283_vm14, %v2284_v23, %v2282_v51  ;;  %2541 = vadd.xlane.f32.xlu1 %v2540_v21 }
0x1237   :  { %2946 = vtanh.f32 %v2285_v26  ;;  %v2290_v28 = vsub.f32 1.5, %v2289_v61  ;;  %v2324_v31 = vmul.f32 %v2307_v25, %v2285_v26  ;;  %v2450_v26 = vpop.f32.mrf.mxu3 }
0x1239   :  { %v2291_v0 = vmul.f32 %v2945_v19, %v2290_v28 }
0x123b   :  { %v2292_v29 = vmul.f32 %v2291_v0, %v2273_v12  ;;  %v2317_v15 = vsel %vm2316_vm10, %v2945_v19, %v2291_v0 }
0x123d   :  { %v2947_v33 = vpop.eup %2946  ;;  %v2294_v34 = vsel %vm2293_vm4, %v2273_v12, %v2292_v29 }
0x123e   :  { %v2326_v24 = vmul.f32 %v2947_v33, %v2324_v31  ;;  %v2297_v35 = vsel %vm2295_vm5, %v2296_v32, %v2294_v34  ;;  %v2320_v41 = vmul.f32 %v2947_v33, %v2307_v25 }
0x123f   :  { %2948 = vtanh.f32 %v2297_v35  ;;  %v2325_v27 = vmul.f32 %v2317_v15, %v2297_v35 }
0x1240   :  { %v2330_v37 = vadd.f32 1e-07, %v2326_v24  ;;  %v2322_v45 = vmul.f32 %v2320_v41, %v3651_v1  ;;  %vm2328_vm11 = vcmp.gt.f32.partialorder %v2326_v24, 0.99999 }
0x1242   :  { %2950 = vrcp.f32 %v2330_v37 }
0x1245   :  { %v2949_v36 = vpop.eup %2948 }
0x1246   :  { %v2327_v42 = vmul.f32 %v2949_v36, %v2325_v27  ;;  %v2321_v50 = vmul.f32 %v2949_v36, %v2317_v15 }
0x1248   :  { %v2951_v43 = vpop.eup %2950  ;;  %v2331_v30 = vadd.f32 1e-07, %v2327_v42  ;;  %v2323_v54 = vmul.f32 %v2321_v50, %v3656_v3  ;;  %vm2329_vm9 = vcmp.gt.f32.partialorder %v2327_v42, 0.99999 }
0x1249   :  { %v2334_v44 = vmul.f32 0.99999, %v2951_v43 }
0x124a   :  { %2952 = vrcp.f32 %v2331_v30 }
0x124b   :  { %v2336_v47 = vsel %vm2328_vm11, %v2334_v44, 1.0 }
0x124c   :  { %v2338_v13 = vmul.f32 %v2336_v47, %v2322_v45  ;;  %v2340_v39 = vmul.f32 %v2336_v47, %v2326_v24  ;;  %v2453_v24 = vpop.f32.mrf.mxu3 }
0x124e   :  { %v2396_v22 = vadd.f32 1e-05, %v2338_v13  ;;  %v2342_v60 = vmul.f32 %v2340_v39, %v2340_v39 }
0x1250   :  { %v2953_v55 = vpop.eup %2952  ;;  %2669 = vmatmul.msk.f32.vlgmr.msra.gmra.mxu2 %vm776_vm2, %v2396_v22  ;;  %v2344_v48 = vadd.f32 %v2342_v60, %v3594_v38 }
0x1251   :  { %v2335_v49 = vmul.f32 0.99999, %v2953_v55 }
0x1252   :  { %2954 = vrsqrt.f32 %v2344_v48  ;;  %v2356_v12 = vand.u32 2147483648, %v2344_v48  ;;  %vm2355_vm12 = vcmp.eq.f32.partialorder %v2344_v48, 0.0  ;;  %vm2380_vm1 = vweird.f32 %v2344_v48 }
0x1253   :  { %v2337_v56 = vsel %vm2329_vm9, %v2335_v49, 1.0 }
0x1254   :  { %v2339_v57 = vmul.f32 %v2337_v56, %v2323_v54  ;;  %v2341_v58 = vmul.f32 %v2337_v56, %v2327_v42 }
0x1256   :  { %v2397_v59 = vadd.f32 1e-05, %v2339_v57  ;;  %v2343_v63 = vmul.f32 %v2341_v58, %v2341_v58 }
0x1258   :  { %2670 = vmatmul.msk.f32.gmra.mxu2 %vm776_vm2, %v2397_v59  ;;  %v2345_v1 = vadd.f32 %v2343_v63, %v3599_v46  ;;  %v2955_v40 = vpop.eup %2954  ;;  %vm2353_vm2 = vcmp.eq.f32.partialorder %v2344_v48, inf }
0x1259   :  { %v2347_v2 = vmul.f32 %v2955_v40, %v2344_v48  ;;  %vm2381_vm15 = vweird.f32 %v2955_v40 }
0x125a   :  { %2956 = vrsqrt.f32 %v2345_v1  ;;  %vm2365_vm13 = vcmp.eq.f32.partialorder %v2345_v1, inf  ;;  %v2368_v20 = vand.u32 2147483648, %v2345_v1  ;;  %vm2367_vm14 = vcmp.eq.f32.partialorder %v2345_v1, 0.0  ;;  %vm2382_vm3 = vmor %vm2380_vm1, %vm2381_vm15 }
0x125b   :  { %v2348_v62 = vmul.f32 %v2955_v40, %v2347_v2  ;;  %vm2390_vm8 = vweird.f32 %v2345_v1 }
0x125d   :  { %v2349_v3 = vmul.f32 0.5, %v2348_v62 }
0x125f   :  { %v2350_v53 = vsub.f32 1.5, %v2349_v3 }
0x1260   :  { %v2957_v52 = vpop.eup %2956 }
0x1261   :  { %v2359_v5 = vmul.f32 %v2957_v52, %v2345_v1  ;;  %v2351_v7 = vmul.f32 %v2955_v40, %v2350_v53  ;;  %vm2391_vm4 = vweird.f32 %v2957_v52 }
0x1262   :  { %vm2392_vm5 = vmor %vm2390_vm8, %vm2391_vm4 }
0x1263   :  { %v2360_v6 = vmul.f32 %v2957_v52, %v2359_v5  ;;  %v2352_v9 = vmul.f32 %v2351_v7, %v2344_v48  ;;  %v2383_v28 = vsel %vm2382_vm3, %v2955_v40, %v2351_v7 }
0x1265   :  { %v2361_v8 = vmul.f32 0.5, %v2360_v6  ;;  %v2354_v11 = vsel %vm2353_vm2, %v2344_v48, %v2352_v9 }
0x1266   :  { %v2357_v14 = vsel %vm2355_vm12, %v2356_v12, %v2354_v11 }
0x1267   :  { %v2362_v10 = vsub.f32 1.5, %v2361_v8  ;;  %v2370_v19 = vmin.f32 %v2357_v14, 0.99999 }
0x1269   :  { %v2363_v38 = vmul.f32 %v2957_v52, %v2362_v10  ;;  %2958 = vrcp.f32 %v2370_v19 }
0x126b   :  { %v2364_v46 = vmul.f32 %v2363_v38, %v2345_v1  ;;  %v2393_v35 = vsel %vm2392_vm5, %v2957_v52, %v2363_v38 }
0x126d   :  { %v2366_v4 = vsel %vm2365_vm13, %v2345_v1, %v2364_v46 }
0x126e   :  { %v2369_v23 = vsel %vm2367_vm14, %v2368_v20, %v2366_v4 }
0x126f   :  { %v2371_v51 = vmin.f32 %v2369_v23, 0.99999  ;;  %v2959_v61 = vpop.eup %2958 }
0x1270   :  { %v2394_v25 = vmul.f32 %v2959_v61, %v2383_v28 }
0x1271   :  { %2960 = vrcp.f32 %v2371_v51 }
0x1277   :  { %v2961_v33 = vpop.eup %2960 }
0x1278   :  { %v2395_v15 = vmul.f32 %v2961_v33, %v2393_v35 }
0x12d3   :  { %v2421_v0 = vpop.f32.mrf.mxu2 }
0x12d4   :  { %v2451_v29 = vadd.f32 %v2450_v26, %v2421_v0 }
0x12d6   :  { %v2456_v31 = vmul.f32 %v2451_v29, %v2394_v25 }
0x12d8   :  { %v3687_v32 = vadd.f32 1e-05, %v2456_v31 }
0x12da   :  { %v2460_v34 = vmul.f32 %v3687_v32, %v3687_v32 }
0x12db   :  { %v2424_v37 = vpop.f32.mrf.mxu2 }
0x12dc   :  { %v2454_v27 = vadd.f32 %v2453_v24, %v2424_v37  ;;  %v2462_v36 = vsel %vm159_vm0, %v2460_v34, 0.0 }
0x12dd   :  { %2463 = vadd.xlane.f32.xlu2 %v2462_v36 }
0x12de   :  { %v2457_v41 = vmul.f32 %v2454_v27, %v2395_v15 }
0x12e0   :  { %v3692_v42 = vadd.f32 1e-05, %v2457_v41 }
0x12e2   :  { %v2461_v43 = vmul.f32 %v3692_v42, %v3692_v42 }
0x12e4   :  { %v2465_v30 = vsel %vm159_vm0, %v2461_v43, 0.0 }
0x12e5   :  { %2466 = vadd.xlane.f32.xlu0 %v2465_v30 }
0x1350   :  { %v2464_v44 = vpop.xlane.xlu2 %2463 }
0x1351   :  { %2962 = vrsqrt.f32 %v2464_v44  ;;  %vm2475_vm6 = vcmp.eq.f32.partialorder %v2464_v44, inf  ;;  %v2478_v58 = vand.u32 2147483648, %v2464_v44  ;;  %vm2477_vm7 = vcmp.eq.f32.partialorder %v2464_v44, 0.0 }
0x1352   :  { %vm2498_vm11 = vweird.f32 %v2464_v44 }
0x1357   :  { %v2963_v45 = vpop.eup %2962 }
0x1358   :  { %v2467_v47 = vpop.xlane.xlu0 %2466  ;;  %v2469_v13 = vmul.f32 %v2963_v45, %v2464_v44  ;;  %vm2499_vm10 = vweird.f32 %v2963_v45 }
0x1359   :  { %2964 = vrsqrt.f32 %v2467_v47  ;;  %vm2500_vm9 = vmor %vm2498_vm11, %vm2499_vm10  ;;  %vm2487_vm2 = vcmp.eq.f32.partialorder %v2467_v47, inf  ;;  %v2490_v52 = vand.u32 2147483648, %v2467_v47  ;;  %vm2489_vm12 = vcmp.eq.f32.partialorder %v2467_v47, 0.0 }
0x135a   :  { %v2470_v39 = vmul.f32 %v2963_v45, %v2469_v13  ;;  %vm2508_vm14 = vweird.f32 %v2467_v47 }
0x135c   :  { %v2471_v22 = vmul.f32 0.5, %v2470_v39 }
0x135e   :  { %v2472_v50 = vsub.f32 1.5, %v2471_v22 }
0x135f   :  { %v2965_v55 = vpop.eup %2964 }
0x1360   :  { %v2473_v49 = vmul.f32 %v2963_v45, %v2472_v50  ;;  %v2481_v54 = vmul.f32 %v2965_v55, %v2467_v47  ;;  %vm2509_vm13 = vweird.f32 %v2965_v55 }
0x1361   :  { %vm2510_vm15 = vmor %vm2508_vm14, %vm2509_vm13 }
0x1362   :  { %v2474_v56 = vmul.f32 %v2473_v49, %v2464_v44  ;;  %v2482_v57 = vmul.f32 %v2965_v55, %v2481_v54  ;;  %v2501_v40 = vsel %vm2500_vm9, %v2963_v45, %v2473_v49 }
0x1364   :  { %v2476_v59 = vsel %vm2475_vm6, %v2464_v44, %v2474_v56  ;;  %v2483_v60 = vmul.f32 0.5, %v2482_v57 }
0x1365   :  { %v2479_v48 = vsel %vm2477_vm7, %v2478_v58, %v2476_v59 }
0x1366   :  { %2966 = vtanh.f32 %v2479_v48  ;;  %v2484_v63 = vsub.f32 1.5, %v2483_v60  ;;  %v2518_v62 = vmul.f32 %v2501_v40, %v2479_v48 }
0x1368   :  { %v2485_v1 = vmul.f32 %v2965_v55, %v2484_v63 }
0x136a   :  { %v2486_v2 = vmul.f32 %v2485_v1, %v2467_v47  ;;  %v2511_v8 = vsel %vm2510_vm15, %v2965_v55, %v2485_v1 }
0x136c   :  { %v2967_v3 = vpop.eup %2966  ;;  %v2488_v5 = vsel %vm2487_vm2, %v2467_v47, %v2486_v2 }
0x136d   :  { %v2520_v53 = vmul.f32 %v2967_v3, %v2518_v62  ;;  %v2491_v6 = vsel %vm2489_vm12, %v2490_v52, %v2488_v5  ;;  %v2514_v11 = vmul.f32 %v2967_v3, %v2501_v40 }
0x136e   :  { %2968 = vtanh.f32 %v2491_v6  ;;  %v2519_v9 = vmul.f32 %v2511_v8, %v2491_v6 }
0x136f   :  { %v2524_v7 = vadd.f32 1e-07, %v2520_v53  ;;  %v2516_v19 = vmul.f32 %v2514_v11, %v3687_v32  ;;  %vm2522_vm1 = vcmp.gt.f32.partialorder %v2520_v53, 0.99999  ;;  %v2542_v32 = vpop.xlane.xlu1 %2541 }
0x1370   :  { %v2558_v33 = vperm.slane %v2542_v32, 0 }
0x1371   :  { %2970 = vrcp.f32 %v2524_v7 }
0x1374   :  { %v2969_v10 = vpop.eup %2968 }
0x1375   :  { %v2521_v38 = vmul.f32 %v2969_v10, %v2519_v9  ;;  %v2515_v23 = vmul.f32 %v2969_v10, %v2511_v8 }
0x1377   :  { %v2971_v12 = vpop.eup %2970  ;;  %v2525_v14 = vadd.f32 1e-07, %v2521_v38  ;;  %v2517_v28 = vmul.f32 %v2515_v23, %v3692_v42  ;;  %vm2523_vm3 = vcmp.gt.f32.partialorder %v2521_v38, 0.99999 }
0x1378   :  { %v2528_v46 = vmul.f32 0.99999, %v2971_v12 }
0x1379   :  { %2972 = vrcp.f32 %v2525_v14 }
0x137a   :  { %v2530_v18 = vsel %vm2522_vm1, %v2528_v46, 1.0 }
0x137b   :  { %v2532_v4 = vmul.f32 %v2530_v18, %v2516_v19  ;;  %v2534_v20 = vmul.f32 %v2530_v18, %v2520_v53 }
0x137d   :  { %v2546_v21 = vmul.f32 %v2544_v16, %v2532_v4  ;;  %v2536_v34 = vmul.f32 %v2534_v20, %v2534_v20 }
0x137f   :  { %v2973_v51 = vpop.eup %2972  ;;  %v2548_v61 = vsel %vm159_vm0, %v2546_v21, 0.0  ;;  %v2559_v37 = vmul.f32 %v2558_v33, %v2536_v34  ;;  %v2573_v47 = vsub.f32 1.0, %v2536_v34 }
0x1380   :  { %2549 = vadd.xlane.f32.xlu2 %v2548_v61  ;;  %v2529_v26 = vmul.f32 0.99999, %v2973_v51 }
0x1382   :  { %v2531_v0 = vsel %vm2523_vm3, %v2529_v26, 1.0 }
0x1383   :  { %v2533_v25 = vmul.f32 %v2531_v0, %v2517_v28  ;;  %v2535_v17 = vmul.f32 %v2531_v0, %v2521_v38 }
0x1385   :  { %v2547_v29 = vmul.f32 %v2544_v16, %v2533_v25  ;;  %v2537_v41 = vmul.f32 %v2535_v17, %v2535_v17 }
0x1387   :  { %v2551_v31 = vsel %vm159_vm0, %v2547_v29, 0.0  ;;  %v2560_v30 = vmul.f32 %v2558_v33, %v2537_v41  ;;  %v2574_v57 = vsub.f32 1.0, %v2537_v41 }
0x1388   :  { %2552 = vadd.xlane.f32.xlu0 %v2551_v31 }
0x13f3   :  { %v2550_v24 = vpop.xlane.xlu2 %2549 }
0x13f4   :  { %v2554_v35 = vmul.f32 2.0, %v2550_v24 }
0x13f6   :  { %v2556_v15 = vadd.f32 1.0, %v2554_v35 }
0x13f8   :  { %v2561_v27 = vadd.f32 %v2559_v37, %v2556_v15  ;;  %v2567_v13 = vadd.f32 %v2558_v33, %v2556_v15 }
0x13fa   :  { %v2563_v36 = vadd.f32 1e-05, %v2561_v27 }
0x13fb   :  { %v2553_v43 = vpop.xlane.xlu0 %2552 }
0x13fc   :  { %2974 = vrcp.f32 %v2563_v36  ;;  %v2555_v42 = vmul.f32 2.0, %v2553_v43 }
0x13fe   :  { %v2557_v44 = vadd.f32 1.0, %v2555_v42 }
0x1400   :  { %v2562_v45 = vadd.f32 %v2560_v30, %v2557_v44  ;;  %v2568_v58 = vadd.f32 %v2558_v33, %v2557_v44 }
0x1402   :  { %v2975_v39 = vpop.eup %2974  ;;  %v2564_v22 = vadd.f32 1e-05, %v2562_v45 }
0x1403   :  { %v2569_v50 = vmul.f32 %v2975_v39, %v2567_v13  ;;  %v2575_v55 = vmul.f32 %v2975_v39, %v2573_v47 }
0x1404   :  { %2976 = vrcp.f32 %v2564_v22 }
0x1405   :  { %v2571_v49 = vmul.f32 %v2569_v50, %v2532_v4  ;;  %v2577_v54 = vmul.f32 %v2575_v55, %v2544_v16 }
0x1407   :  { %v2579_v56 = vadd.f32 %v2577_v54, %v2571_v49 }
0x1409   :  { %v2581_v59 = vmul.f32 %v2579_v56, %v2579_v56 }
0x140a   :  { %v2977_v60 = vpop.eup %2976 }
0x140b   :  { %v2570_v48 = vmul.f32 %v2977_v60, %v2568_v58  ;;  %v2583_v63 = vsel %vm159_vm0, %v2581_v59, 0.0  ;;  %v2576_v1 = vmul.f32 %v2977_v60, %v2574_v57 }
0x140c   :  { %2584 = vadd.xlane.f32.xlu1 %v2583_v63 }
0x140d   :  { %v2572_v40 = vmul.f32 %v2570_v48, %v2533_v25  ;;  %v2578_v2 = vmul.f32 %v2576_v1, %v2544_v16 }
0x140f   :  { %v2580_v62 = vadd.f32 %v2578_v2, %v2572_v40 }
0x1411   :  { %v2582_v52 = vmul.f32 %v2580_v62, %v2580_v62 }
0x1413   :  { %v2586_v3 = vsel %vm159_vm0, %v2582_v52, 0.0 }
0x1414   :  { %2587 = vadd.xlane.f32.xlu2 %v2586_v3 }
0x147f   :  { %v2585_v5 = vpop.xlane.xlu1 %2584 }
0x1480   :  { %2978 = vrsqrt.f32 %v2585_v5  ;;  %vm2596_vm4 = vcmp.eq.f32.partialorder %v2585_v5, inf  ;;  %v2599_v16 = vand.u32 2147483648, %v2585_v5  ;;  %vm2598_vm8 = vcmp.eq.f32.partialorder %v2585_v5, 0.0 }
0x1486   :  { %v2979_v53 = vpop.eup %2978 }
0x1487   :  { %v2590_v6 = vmul.f32 %v2979_v53, %v2585_v5  ;;  %v2588_v7 = vpop.xlane.xlu2 %2587 }
0x1488   :  { %2980 = vrsqrt.f32 %v2588_v7  ;;  %vm2608_vm5 = vcmp.eq.f32.partialorder %v2588_v7, inf  ;;  %v2611_v61 = vand.u32 2147483648, %v2588_v7  ;;  %vm2610_vm6 = vcmp.eq.f32.partialorder %v2588_v7, 0.0 }
0x1489   :  { %v2591_v8 = vmul.f32 %v2979_v53, %v2590_v6 }
0x148b   :  { %v2592_v9 = vmul.f32 0.5, %v2591_v8 }
0x148d   :  { %v2593_v10 = vsub.f32 1.5, %v2592_v9 }
0x148e   :  { %v2981_v11 = vpop.eup %2980 }
0x148f   :  { %v2594_v38 = vmul.f32 %v2979_v53, %v2593_v10  ;;  %v2602_v12 = vmul.f32 %v2981_v11, %v2588_v7 }
0x1491   :  { %v2595_v14 = vmul.f32 %v2594_v38, %v2585_v5  ;;  %v2603_v46 = vmul.f32 %v2981_v11, %v2602_v12 }
0x1493   :  { %v2597_v19 = vsel %vm2596_vm4, %v2585_v5, %v2595_v14  ;;  %v2604_v18 = vmul.f32 0.5, %v2603_v46 }
0x1494   :  { %v2600_v4 = vsel %vm2598_vm8, %v2599_v16, %v2597_v19 }
0x1495   :  { %v2605_v20 = vsub.f32 1.5, %v2604_v18  ;;  %v2615_v21 = vadd.f32 1e-07, %v2600_v4  ;;  %vm2613_vm7 = vcmp.gt.f32.partialorder %v2600_v4, 0.99999 }
0x1497   :  { %v2606_v23 = vmul.f32 %v2981_v11, %v2605_v20  ;;  %2982 = vrcp.f32 %v2615_v21 }
0x1499   :  { %v2607_v51 = vmul.f32 %v2606_v23, %v2588_v7 }
0x149b   :  { %v2609_v26 = vsel %vm2608_vm5, %v2588_v7, %v2607_v51 }
0x149c   :  { %v2612_v28 = vsel %vm2610_vm6, %v2611_v61, %v2609_v26 }
0x149d   :  { %v2983_v0 = vpop.eup %2982  ;;  %v2616_v25 = vadd.f32 1e-07, %v2612_v28  ;;  %vm2614_vm10 = vcmp.gt.f32.partialorder %v2612_v28, 0.99999 }
0x149e   :  { %v2619_v17 = vmul.f32 0.99999, %v2983_v0 }
0x149f   :  { %2984 = vrcp.f32 %v2616_v25 }
0x14a0   :  { %v2621_v29 = vsel %vm2613_vm7, %v2619_v17, 1.0 }
0x14a1   :  { %v2623_v31 = vmul.f32 %v2621_v29, %v2579_v56 }
0x14a3   :  { %2625 = vst.msk [vmem:[#allocation13] sm:$0xff] %vm159_vm0, %v2623_v31 }
0x14a5   :  { %v2985_v32 = vpop.eup %2984 }
0x14a6   :  { %v2620_v33 = vmul.f32 0.99999, %v2985_v32 }
0x14a8   :  { %v2622_v34 = vsel %vm2614_vm10, %v2620_v33, 1.0 }
0x14a9   :  { %v2624_v24 = vmul.f32 %v2622_v34, %v2580_v62 }
0x14ab   :  { %2626 = vst.msk [vmem:[#allocation13 + $0x8] sm:$0xff] %vm159_vm0, %v2624_v24 }
0x14ac   :  { %2639 = dma.vmem_to_hbm [thread:$0]  %s2632_s5, 256, %s2634_s7, [#allocation4], %s3169_s18, %s3169_s18, %s3170_s19  }
0x14ad   :  { %3166 = dma.done.wait [#allocation4], 256  }
0x14ae   :  { %3167 = vsyncadd [#allocation4], 4294967040 }
0x14af   :  { %2644 = vsyncpa [#allocation3], 1 }
0x14b0   :  { %2645 = vsyncpa [#allocation6], 1 }
0x14b1   :  { %2646 = vsyncpa [#allocation9], 1 }
0x14b2   :  { %2647 = vsyncpa [#allocation12], 1 }
0x14b3   :  { %2648 = vsyncpa [#allocation4], 1 }

</bundles_post_ra>
